<compile_context>
chip_gen: v7x
topology: tpu7x:2x2x1
jax: 0.10.0
libtpu: 0.0.40
codegen_flags: <defaults>
</compile_context>

<pallas_src>
import jax
import jax.numpy as jnp
from jax.experimental import pallas as pl
from jax.experimental.pallas import tpu as pltpu

# model config (matches the module's __init__ signature, small shapes)
VOCAB_SIZE = 50
EMBEDDING_DIM = 16
HIDDEN_DIM = 32
OUTPUT_DIM = 2
N_LAYERS = 2
BIDIRECTIONAL = True

SEQ_LEN = 8
BATCH = 4


# ----------------------------------------------------------------------------
# fused Pallas kernel: (pre-gathered embeddings) -> 2x bidirectional LSTM -> fc
# ----------------------------------------------------------------------------
def fused_lstm_kernel(x_ref, len_ref,
                      w0xf_ref, b0f_ref, w0hf_ref,
                      w0xb_ref, b0b_ref, w0hb_ref,
                      w1xft_ref, w1xfb_ref, b1f_ref, w1hf_ref,
                      w1xbt_ref, w1xbb_ref, b1b_ref, w1hb_ref,
                      wfc_ref, bfc_ref, out_ref):
    f32 = jnp.float32
    bf16 = jnp.bfloat16

    Bp = len_ref.shape[0]
    TB = x_ref.shape[0]
    T = TB // Bp
    H = w0hf_ref.shape[0]

    # --- hoisted per-timestep boolean masks, pre-broadcast to (Bp, H) --------
    # (reused by both layers and both directions; avoids re-materializing the
    #  broadcast inside the unrolled recurrence)
    t_iota = jax.lax.broadcasted_iota(jnp.int32, (Bp, T), 1)
    valid = t_iota < len_ref[...]                                  # (Bp, T) bool
    masks = [jnp.broadcast_to(valid[:, t:t + 1], (Bp, H)) for t in range(T)]

    # --- layer-0 input->gate contributions for ALL timesteps (one matmul/dir) -
    x_all = x_ref[...]                                             # (T*Bp, E) bf16
    xc0f = jnp.dot(x_all, w0xf_ref[...], preferred_element_type=f32) + b0f_ref[...]
    xc0b = jnp.dot(x_all, w0xb_ref[...], preferred_element_type=f32) + b0b_ref[...]

    def cell(xc_t, h, c, w_h, m_t):
        """One LSTM cell step. xc_t = x_t @ W_x + b (precomputed, f32).
        Full-vreg sigmoid/tanh, boolean-select mask freeze (packed semantics)."""
        gates = xc_t + jnp.dot(h.astype(bf16), w_h, preferred_element_type=f32)
        sg = jax.nn.sigmoid(gates)                                 # (Bp, 4H) 1 EUP push
        th = jnp.tanh(gates)                                       # (Bp, 4H) 1 EUP push
        i_g = sg[:, 0 * H:1 * H]
        f_g = sg[:, 1 * H:2 * H]
        o_g = sg[:, 3 * H:4 * H]
        g_g = th[:, 2 * H:3 * H]
        c_new = f_g * c + i_g * g_g
        h_new = o_g * jnp.tanh(c_new)
        return jnp.where(m_t, h_new, h), jnp.where(m_t, c_new, c)

    zeros = jnp.zeros((Bp, H), f32)

    # --- layer 0 (bidirectional), fwd/bwd interleaved, fully unrolled --------
    # Backward direction walks the padded time axis in reverse; trailing padding
    # (mask 0) comes first so state stays zero until the last valid element ->
    # exact within-length-reversed packed-sequence semantics.
    w0hf, w0hb = w0hf_ref[...], w0hb_ref[...]
    hf, cf = zeros, zeros
    hb, cb = zeros, zeros
    y0f = [None] * T
    y0b = [None] * T
    for s in range(T):
        tf = s
        tb = T - 1 - s
        hf, cf = cell(xc0f[tf * Bp:(tf + 1) * Bp, :], hf, cf, w0hf, masks[tf])
        hb, cb = cell(xc0b[tb * Bp:(tb + 1) * Bp, :], hb, cb, w0hb, masks[tb])
        y0f[tf] = hf
        y0b[tb] = hb

    # --- layer-1 inputs: sublane-stacked slabs, no per-timestep lane concat ---
    y0f_all = jnp.concatenate(y0f, axis=0).astype(bf16)            # (T*Bp, H)
    y0b_all = jnp.concatenate(y0b, axis=0).astype(bf16)            # (T*Bp, H)
    xc1f = (jnp.dot(y0f_all, w1xft_ref[...], preferred_element_type=f32)
            + jnp.dot(y0b_all, w1xfb_ref[...], preferred_element_type=f32)
            + b1f_ref[...])
    xc1b = (jnp.dot(y0f_all, w1xbt_ref[...], preferred_element_type=f32)
            + jnp.dot(y0b_all, w1xbb_ref[...], preferred_element_type=f32)
            + b1b_ref[...])

    # --- layer 1 (bidirectional): only the final hidden states are needed ----
    w1hf, w1hb = w1hf_ref[...], w1hb_ref[...]
    hf, cf = zeros, zeros
    hb, cb = zeros, zeros
    for s in range(T):
        tf = s
        tb = T - 1 - s
        hf, cf = cell(xc1f[tf * Bp:(tf + 1) * Bp, :], hf, cf, w1hf, masks[tf])
        hb, cb = cell(xc1b[tb * Bp:(tb + 1) * Bp, :], hb, cb, w1hb, masks[tb])

    # --- FC epilogue on concat(hidden[-2] fwd, hidden[-1] bwd) ----------------
    hidden = jnp.concatenate([hf, hb], axis=-1).astype(bf16)       # (Bp, 2H)
    out_ref[...] = (jnp.dot(hidden, wfc_ref[...], preferred_element_type=f32)
                    + bfc_ref[...])


# ----------------------------------------------------------------------------
# JAX wrapper
# ----------------------------------------------------------------------------
def lstm_model_forward(params, text, text_lengths):
    T, B = text.shape
    Bp = max(8, ((B + 7) // 8) * 8)          # pad batch to a sublane multiple
    pad_b = Bp - B
    text_p = jnp.pad(text.astype(jnp.int32), ((0, 0), (0, pad_b)))
    len_p = jnp.pad(text_lengths.astype(jnp.int32), (0, pad_b)).reshape(Bp, 1)

    # Embedding gather in the wrapper: overlaps with the kernel's weight DMA and
    # removes the one-hot matmul from the serialized kernel prologue.
    # NOTE: padded batch rows gather token id 0 (a real vocab row); harmless
    # because their length is 0 (state stays zero) and rows are sliced off below.
    flat_ids = text_p.reshape(T * Bp)        # row t*Bp + b <-> token (t, b)
    x_emb = jnp.take(params["embedding"], flat_ids, axis=0).astype(jnp.bfloat16)

    l0f, l0b = params["lstm"][0]["fwd"], params["lstm"][0]["bwd"]
    l1f, l1b = params["lstm"][1]["fwd"], params["lstm"][1]["bwd"]
    args = (x_emb, len_p,
            l0f["wx"], l0f["b"], l0f["wh"],
            l0b["wx"], l0b["b"], l0b["wh"],
            l1f["wx_top"], l1f["wx_bot"], l1f["b"], l1f["wh"],
            l1b["wx_top"], l1b["wx_bot"], l1b["b"], l1b["wh"],
            params["fc"]["w"], params["fc"]["b"])

    def full_block(a):
        nd = a.ndim
        return pl.BlockSpec(a.shape, lambda i, _nd=nd: (0,) * _nd)

    out = pl.pallas_call(
        fused_lstm_kernel,
        out_shape=jax.ShapeDtypeStruct((Bp, OUTPUT_DIM), jnp.float32),
        grid=(1,),
        in_specs=[full_block(a) for a in args],
        out_specs=pl.BlockSpec((Bp, OUTPUT_DIM), lambda i: (0, 0)),
        compiler_params=pltpu.CompilerParams(dimension_semantics=("arbitrary",)),
    )(*args)
    return out[:B]


# ----------------------------------------------------------------------------
# parameter init (PyTorch nn.LSTM / nn.Linear layouts, repacked for the kernel)
# ----------------------------------------------------------------------------
def init_params(key):
    k_scale = 1.0 / jnp.sqrt(jnp.float32(HIDDEN_DIM))

    def uni(k, shape):
        return jax.random.uniform(k, shape, jnp.float32, -k_scale, k_scale)

    keys = jax.random.split(key, 1 + N_LAYERS * 2 * 4 + 2)
    ki = iter(keys)

    params = {"embedding": jax.random.normal(next(ki), (VOCAB_SIZE, EMBEDDING_DIM),
                                             jnp.float32) * 0.1}
    lstm_params = []
    for layer in range(N_LAYERS):
        in_dim = EMBEDDING_DIM if layer == 0 else HIDDEN_DIM * (2 if BIDIRECTIONAL else 1)
        layer_p = {}
        for d in ("fwd", "bwd"):
            # PyTorch layout, gate order (i, f, g, o)
            w_ih = uni(next(ki), (4 * HIDDEN_DIM, in_dim))
            w_hh = uni(next(ki), (4 * HIDDEN_DIM, HIDDEN_DIM))
            b_ih = uni(next(ki), (4 * HIDDEN_DIM,))
            b_hh = uni(next(ki), (4 * HIDDEN_DIM,))
            wx = jnp.transpose(w_ih).astype(jnp.bfloat16)          # (in_dim, 4H) bf16
            wh = jnp.transpose(w_hh).astype(jnp.bfloat16)          # (H, 4H)     bf16
            b = (b_ih + b_hh).reshape(1, 4 * HIDDEN_DIM)           # f32
            if layer == 0:
                layer_p[d] = {"wx": wx, "wh": wh, "b": b}
            else:
                # split the 2H-row input weight: top -> fwd outputs, bottom -> bwd
                layer_p[d] = {"wx_top": wx[:HIDDEN_DIM],
                              "wx_bot": wx[HIDDEN_DIM:],
                              "wh": wh, "b": b}
        lstm_params.append(layer_p)
    params["lstm"] = lstm_params

    fc_in = HIDDEN_DIM * (2 if BIDIRECTIONAL else 1)
    fc_scale = 1.0 / jnp.sqrt(jnp.float32(fc_in))
    w_fc = jax.random.uniform(next(ki), (OUTPUT_DIM, fc_in), jnp.float32,
                              -fc_scale, fc_scale)
    b_fc = jax.random.uniform(next(ki), (OUTPUT_DIM,), jnp.float32,
                              -fc_scale, fc_scale)
    params["fc"] = {"w": jnp.transpose(w_fc).astype(jnp.bfloat16),
                    "b": b_fc.reshape(1, OUTPUT_DIM)}
    return params


if __name__ == "__main__":
    root = jax.random.PRNGKey(0)
    k_param, k_text = jax.random.split(root)
    params = init_params(k_param)

    text = jax.random.randint(k_text, (SEQ_LEN, BATCH), 0, VOCAB_SIZE, dtype=jnp.int32)
    # pack_padded_sequence default enforce_sorted=True -> lengths sorted descending
    text_lengths = jnp.array([8, 7, 5, 3], dtype=jnp.int32)

    out = jax.jit(lstm_model_forward)(params, text, text_lengths)
    jax.block_until_ready(out)
    assert out.shape == (BATCH, OUTPUT_DIM) and out.dtype == jnp.float32
    assert bool(jnp.all(jnp.isfinite(out)))
    print("KERNEL_OK")
</pallas_src>

<mosaic_0001>
module attributes {stable_mosaic.version = 11 : i64} {
  func.func @fused_lstm_kernel(%arg0: i32, %arg1: memref<64x16xbf16, #tpu.memory_space<vmem>>, %arg2: memref<8x1xi32, #tpu.memory_space<vmem>>, %arg3: memref<16x128xbf16, #tpu.memory_space<vmem>>, %arg4: memref<1x128xf32, #tpu.memory_space<vmem>>, %arg5: memref<32x128xbf16, #tpu.memory_space<vmem>>, %arg6: memref<16x128xbf16, #tpu.memory_space<vmem>>, %arg7: memref<1x128xf32, #tpu.memory_space<vmem>>, %arg8: memref<32x128xbf16, #tpu.memory_space<vmem>>, %arg9: memref<32x128xbf16, #tpu.memory_space<vmem>>, %arg10: memref<32x128xbf16, #tpu.memory_space<vmem>>, %arg11: memref<1x128xf32, #tpu.memory_space<vmem>>, %arg12: memref<32x128xbf16, #tpu.memory_space<vmem>>, %arg13: memref<32x128xbf16, #tpu.memory_space<vmem>>, %arg14: memref<32x128xbf16, #tpu.memory_space<vmem>>, %arg15: memref<1x128xf32, #tpu.memory_space<vmem>>, %arg16: memref<32x128xbf16, #tpu.memory_space<vmem>>, %arg17: memref<64x2xbf16, #tpu.memory_space<vmem>>, %arg18: memref<1x2xf32, #tpu.memory_space<vmem>>, %arg19: memref<8x2xf32, #tpu.memory_space<vmem>>) attributes {dimension_semantics = [#tpu.dimension_semantics<arbitrary>], iteration_bounds = array<i64: 1>, scalar_prefetch = 0 : i64, scratch_operands = 0 : i64, tpu.core_type = #tpu.core_type<tc>, window_params = [{pipeline_mode = #tpu.pipeline_mode<synchronous>, transform_indices = @transform_0, window_bounds = array<i64: 64, 16>}, {pipeline_mode = #tpu.pipeline_mode<synchronous>, transform_indices = @transform_1, window_bounds = array<i64: 8, 1>}, {pipeline_mode = #tpu.pipeline_mode<synchronous>, transform_indices = @transform_2, window_bounds = array<i64: 16, 128>}, {pipeline_mode = #tpu.pipeline_mode<synchronous>, transform_indices = @transform_3, window_bounds = array<i64: 1, 128>}, {pipeline_mode = #tpu.pipeline_mode<synchronous>, transform_indices = @transform_4, window_bounds = array<i64: 32, 128>}, {pipeline_mode = #tpu.pipeline_mode<synchronous>, transform_indices = @transform_5, window_bounds = array<i64: 16, 128>}, {pipeline_mode = #tpu.pipeline_mode<synchronous>, transform_indices = @transform_6, window_bounds = array<i64: 1, 128>}, {pipeline_mode = #tpu.pipeline_mode<synchronous>, transform_indices = @transform_7, window_bounds = array<i64: 32, 128>}, {pipeline_mode = #tpu.pipeline_mode<synchronous>, transform_indices = @transform_8, window_bounds = array<i64: 32, 128>}, {pipeline_mode = #tpu.pipeline_mode<synchronous>, transform_indices = @transform_9, window_bounds = array<i64: 32, 128>}, {pipeline_mode = #tpu.pipeline_mode<synchronous>, transform_indices = @transform_10, window_bounds = array<i64: 1, 128>}, {pipeline_mode = #tpu.pipeline_mode<synchronous>, transform_indices = @transform_11, window_bounds = array<i64: 32, 128>}, {pipeline_mode = #tpu.pipeline_mode<synchronous>, transform_indices = @transform_12, window_bounds = array<i64: 32, 128>}, {pipeline_mode = #tpu.pipeline_mode<synchronous>, transform_indices = @transform_13, window_bounds = array<i64: 32, 128>}, {pipeline_mode = #tpu.pipeline_mode<synchronous>, transform_indices = @transform_14, window_bounds = array<i64: 1, 128>}, {pipeline_mode = #tpu.pipeline_mode<synchronous>, transform_indices = @transform_15, window_bounds = array<i64: 32, 128>}, {pipeline_mode = #tpu.pipeline_mode<synchronous>, transform_indices = @transform_16, window_bounds = array<i64: 64, 2>}, {pipeline_mode = #tpu.pipeline_mode<synchronous>, transform_indices = @transform_17, window_bounds = array<i64: 1, 2>}, {pipeline_mode = #tpu.pipeline_mode<synchronous>, transform_indices = @transform_18, window_bounds = array<i64: 8, 2>}]} {
    %0 = tpu.iota {dimensions = array<i32: 1>} : vector<8x8xi32>
    %c0 = arith.constant 0 : index
    %c0_0 = arith.constant 0 : index
    %1 = vector.load %arg2[%c0, %c0_0] : memref<8x1xi32, #tpu.memory_space<vmem>>, vector<8x1xi32>
    %2 = vector.broadcast %1 : vector<8x1xi32> to vector<8x8xi32>
    %3 = arith.cmpi slt, %0, %2 : vector<8x8xi32>
    %4 = vector.extract_strided_slice %3 {offsets = [0, 0], sizes = [8, 1], strides = [1, 1]} : vector<8x8xi1> to vector<8x1xi1>
    %5 = vector.shape_cast %4 : vector<8x1xi1> to vector<8x1xi1>
    %6 = vector.broadcast %5 : vector<8x1xi1> to vector<8x32xi1>
    %7 = vector.extract_strided_slice %3 {offsets = [0, 1], sizes = [8, 1], strides = [1, 1]} : vector<8x8xi1> to vector<8x1xi1>
    %8 = vector.shape_cast %7 : vector<8x1xi1> to vector<8x1xi1>
    %9 = vector.broadcast %8 : vector<8x1xi1> to vector<8x32xi1>
    %10 = vector.extract_strided_slice %3 {offsets = [0, 2], sizes = [8, 1], strides = [1, 1]} : vector<8x8xi1> to vector<8x1xi1>
    %11 = vector.shape_cast %10 : vector<8x1xi1> to vector<8x1xi1>
    %12 = vector.broadcast %11 : vector<8x1xi1> to vector<8x32xi1>
    %13 = vector.extract_strided_slice %3 {offsets = [0, 3], sizes = [8, 1], strides = [1, 1]} : vector<8x8xi1> to vector<8x1xi1>
    %14 = vector.shape_cast %13 : vector<8x1xi1> to vector<8x1xi1>
    %15 = vector.broadcast %14 : vector<8x1xi1> to vector<8x32xi1>
    %16 = vector.extract_strided_slice %3 {offsets = [0, 4], sizes = [8, 1], strides = [1, 1]} : vector<8x8xi1> to vector<8x1xi1>
    %17 = vector.shape_cast %16 : vector<8x1xi1> to vector<8x1xi1>
    %18 = vector.broadcast %17 : vector<8x1xi1> to vector<8x32xi1>
    %19 = vector.extract_strided_slice %3 {offsets = [0, 5], sizes = [8, 1], strides = [1, 1]} : vector<8x8xi1> to vector<8x1xi1>
    %20 = vector.shape_cast %19 : vector<8x1xi1> to vector<8x1xi1>
    %21 = vector.broadcast %20 : vector<8x1xi1> to vector<8x32xi1>
    %22 = vector.extract_strided_slice %3 {offsets = [0, 6], sizes = [8, 1], strides = [1, 1]} : vector<8x8xi1> to vector<8x1xi1>
    %23 = vector.shape_cast %22 : vector<8x1xi1> to vector<8x1xi1>
    %24 = vector.broadcast %23 : vector<8x1xi1> to vector<8x32xi1>
    %25 = vector.extract_strided_slice %3 {offsets = [0, 7], sizes = [8, 1], strides = [1, 1]} : vector<8x8xi1> to vector<8x1xi1>
    %26 = vector.shape_cast %25 : vector<8x1xi1> to vector<8x1xi1>
    %27 = vector.broadcast %26 : vector<8x1xi1> to vector<8x32xi1>
    %c0_1 = arith.constant 0 : index
    %c0_2 = arith.constant 0 : index
    %28 = vector.load %arg1[%c0_1, %c0_2] : memref<64x16xbf16, #tpu.memory_space<vmem>>, vector<64x16xbf16>
    %c0_3 = arith.constant 0 : index
    %c0_4 = arith.constant 0 : index
    %29 = vector.load %arg3[%c0_3, %c0_4] : memref<16x128xbf16, #tpu.memory_space<vmem>>, vector<16x128xbf16>
    %cst = arith.constant dense<0.000000e+00> : vector<64x128xf32>
    %30 = tpu.matmul %28, %29, %cst {dimension_numbers = #tpu.dot_dimension_numbers<[1], [0], [0], [1], [0, 0, 1, 1], [], []>} : vector<64x16xbf16>, vector<16x128xbf16>, vector<64x128xf32> -> vector<64x128xf32>
    %c0_5 = arith.constant 0 : index
    %c0_6 = arith.constant 0 : index
    %31 = vector.load %arg4[%c0_5, %c0_6] : memref<1x128xf32, #tpu.memory_space<vmem>>, vector<1x128xf32>
    %32 = vector.broadcast %31 : vector<1x128xf32> to vector<64x128xf32>
    %33 = arith.addf %30, %32 : vector<64x128xf32>
    %c0_7 = arith.constant 0 : index
    %c0_8 = arith.constant 0 : index
    %34 = vector.load %arg6[%c0_7, %c0_8] : memref<16x128xbf16, #tpu.memory_space<vmem>>, vector<16x128xbf16>
    %cst_9 = arith.constant dense<0.000000e+00> : vector<64x128xf32>
    %35 = tpu.matmul %28, %34, %cst_9 {dimension_numbers = #tpu.dot_dimension_numbers<[1], [0], [0], [1], [0, 0, 1, 1], [], []>} : vector<64x16xbf16>, vector<16x128xbf16>, vector<64x128xf32> -> vector<64x128xf32>
    %c0_10 = arith.constant 0 : index
    %c0_11 = arith.constant 0 : index
    %36 = vector.load %arg7[%c0_10, %c0_11] : memref<1x128xf32, #tpu.memory_space<vmem>>, vector<1x128xf32>
    %37 = vector.broadcast %36 : vector<1x128xf32> to vector<64x128xf32>
    %38 = arith.addf %35, %37 : vector<64x128xf32>
    %cst_12 = arith.constant 0.000000e+00 : f32
    %39 = vector.broadcast %cst_12 : f32 to vector<8x32xf32>
    %c0_13 = arith.constant 0 : index
    %c0_14 = arith.constant 0 : index
    %40 = vector.load %arg5[%c0_13, %c0_14] : memref<32x128xbf16, #tpu.memory_space<vmem>>, vector<32x128xbf16>
    %c0_15 = arith.constant 0 : index
    %c0_16 = arith.constant 0 : index
    %41 = vector.load %arg8[%c0_15, %c0_16] : memref<32x128xbf16, #tpu.memory_space<vmem>>, vector<32x128xbf16>
    %42 = vector.extract_strided_slice %33 {offsets = [0, 0], sizes = [8, 128], strides = [1, 1]} : vector<64x128xf32> to vector<8x128xf32>
    %43 = arith.truncf %39 : vector<8x32xf32> to vector<8x32xbf16>
    %cst_17 = arith.constant dense<0.000000e+00> : vector<8x128xf32>
    %44 = tpu.matmul %43, %40, %cst_17 {dimension_numbers = #tpu.dot_dimension_numbers<[1], [0], [0], [1], [0, 0, 1, 1], [], []>} : vector<8x32xbf16>, vector<32x128xbf16>, vector<8x128xf32> -> vector<8x128xf32>
    %45 = arith.addf %42, %44 : vector<8x128xf32>
    %46 = arith.negf %45 : vector<8x128xf32>
    %47 = math.exp %46 : vector<8x128xf32>
    %cst_18 = arith.constant 1.000000e+00 : f32
    %48 = vector.broadcast %cst_18 : f32 to vector<8x128xf32>
    %49 = arith.addf %48, %47 : vector<8x128xf32>
    %50 = arith.divf %48, %49 : vector<8x128xf32>
    %51 = math.tanh %45 : vector<8x128xf32>
    %52 = vector.extract_strided_slice %50 {offsets = [0, 0], sizes = [8, 32], strides = [1, 1]} : vector<8x128xf32> to vector<8x32xf32>
    %53 = vector.extract_strided_slice %50 {offsets = [0, 32], sizes = [8, 32], strides = [1, 1]} : vector<8x128xf32> to vector<8x32xf32>
    %54 = vector.extract_strided_slice %50 {offsets = [0, 96], sizes = [8, 32], strides = [1, 1]} : vector<8x128xf32> to vector<8x32xf32>
    %55 = vector.extract_strided_slice %51 {offsets = [0, 64], sizes = [8, 32], strides = [1, 1]} : vector<8x128xf32> to vector<8x32xf32>
    %56 = arith.mulf %53, %39 : vector<8x32xf32>
    %57 = arith.mulf %52, %55 : vector<8x32xf32>
    %58 = arith.addf %56, %57 : vector<8x32xf32>
    %59 = math.tanh %58 : vector<8x32xf32>
    %60 = arith.mulf %54, %59 : vector<8x32xf32>
    %61 = arith.select %6, %60, %39 : vector<8x32xi1>, vector<8x32xf32>
    %62 = arith.select %6, %58, %39 : vector<8x32xi1>, vector<8x32xf32>
    %63 = vector.extract_strided_slice %38 {offsets = [56, 0], sizes = [8, 128], strides = [1, 1]} : vector<64x128xf32> to vector<8x128xf32>
    %64 = arith.truncf %39 : vector<8x32xf32> to vector<8x32xbf16>
    %cst_19 = arith.constant dense<0.000000e+00> : vector<8x128xf32>
    %65 = tpu.matmul %64, %41, %cst_19 {dimension_numbers = #tpu.dot_dimension_numbers<[1], [0], [0], [1], [0, 0, 1, 1], [], []>} : vector<8x32xbf16>, vector<32x128xbf16>, vector<8x128xf32> -> vector<8x128xf32>
    %66 = arith.addf %63, %65 : vector<8x128xf32>
    %67 = arith.negf %66 : vector<8x128xf32>
    %68 = math.exp %67 : vector<8x128xf32>
    %cst_20 = arith.constant 1.000000e+00 : f32
    %69 = vector.broadcast %cst_20 : f32 to vector<8x128xf32>
    %70 = arith.addf %69, %68 : vector<8x128xf32>
    %71 = arith.divf %69, %70 : vector<8x128xf32>
    %72 = math.tanh %66 : vector<8x128xf32>
    %73 = vector.extract_strided_slice %71 {offsets = [0, 0], sizes = [8, 32], strides = [1, 1]} : vector<8x128xf32> to vector<8x32xf32>
    %74 = vector.extract_strided_slice %71 {offsets = [0, 32], sizes = [8, 32], strides = [1, 1]} : vector<8x128xf32> to vector<8x32xf32>
    %75 = vector.extract_strided_slice %71 {offsets = [0, 96], sizes = [8, 32], strides = [1, 1]} : vector<8x128xf32> to vector<8x32xf32>
    %76 = vector.extract_strided_slice %72 {offsets = [0, 64], sizes = [8, 32], strides = [1, 1]} : vector<8x128xf32> to vector<8x32xf32>
    %77 = arith.mulf %74, %39 : vector<8x32xf32>
    %78 = arith.mulf %73, %76 : vector<8x32xf32>
    %79 = arith.addf %77, %78 : vector<8x32xf32>
    %80 = math.tanh %79 : vector<8x32xf32>
    %81 = arith.mulf %75, %80 : vector<8x32xf32>
    %82 = arith.select %27, %81, %39 : vector<8x32xi1>, vector<8x32xf32>
    %83 = arith.select %27, %79, %39 : vector<8x32xi1>, vector<8x32xf32>
    %84 = vector.extract_strided_slice %33 {offsets = [8, 0], sizes = [8, 128], strides = [1, 1]} : vector<64x128xf32> to vector<8x128xf32>
    %85 = arith.truncf %61 : vector<8x32xf32> to vector<8x32xbf16>
    %cst_21 = arith.constant dense<0.000000e+00> : vector<8x128xf32>
    %86 = tpu.matmul %85, %40, %cst_21 {dimension_numbers = #tpu.dot_dimension_numbers<[1], [0], [0], [1], [0, 0, 1, 1], [], []>} : vector<8x32xbf16>, vector<32x128xbf16>, vector<8x128xf32> -> vector<8x128xf32>
    %87 = arith.addf %84, %86 : vector<8x128xf32>
    %88 = arith.negf %87 : vector<8x128xf32>
    %89 = math.exp %88 : vector<8x128xf32>
    %cst_22 = arith.constant 1.000000e+00 : f32
    %90 = vector.broadcast %cst_22 : f32 to vector<8x128xf32>
    %91 = arith.addf %90, %89 : vector<8x128xf32>
    %92 = arith.divf %90, %91 : vector<8x128xf32>
    %93 = math.tanh %87 : vector<8x128xf32>
    %94 = vector.extract_strided_slice %92 {offsets = [0, 0], sizes = [8, 32], strides = [1, 1]} : vector<8x128xf32> to vector<8x32xf32>
    %95 = vector.extract_strided_slice %92 {offsets = [0, 32], sizes = [8, 32], strides = [1, 1]} : vector<8x128xf32> to vector<8x32xf32>
    %96 = vector.extract_strided_slice %92 {offsets = [0, 96], sizes = [8, 32], strides = [1, 1]} : vector<8x128xf32> to vector<8x32xf32>
    %97 = vector.extract_strided_slice %93 {offsets = [0, 64], sizes = [8, 32], strides = [1, 1]} : vector<8x128xf32> to vector<8x32xf32>
    %98 = arith.mulf %95, %62 : vector<8x32xf32>
    %99 = arith.mulf %94, %97 : vector<8x32xf32>
    %100 = arith.addf %98, %99 : vector<8x32xf32>
    %101 = math.tanh %100 : vector<8x32xf32>
    %102 = arith.mulf %96, %101 : vector<8x32xf32>
    %103 = arith.select %9, %102, %61 : vector<8x32xi1>, vector<8x32xf32>
    %104 = arith.select %9, %100, %62 : vector<8x32xi1>, vector<8x32xf32>
    %105 = vector.extract_strided_slice %38 {offsets = [48, 0], sizes = [8, 128], strides = [1, 1]} : vector<64x128xf32> to vector<8x128xf32>
    %106 = arith.truncf %82 : vector<8x32xf32> to vector<8x32xbf16>
    %cst_23 = arith.constant dense<0.000000e+00> : vector<8x128xf32>
    %107 = tpu.matmul %106, %41, %cst_23 {dimension_numbers = #tpu.dot_dimension_numbers<[1], [0], [0], [1], [0, 0, 1, 1], [], []>} : vector<8x32xbf16>, vector<32x128xbf16>, vector<8x128xf32> -> vector<8x128xf32>
    %108 = arith.addf %105, %107 : vector<8x128xf32>
    %109 = arith.negf %108 : vector<8x128xf32>
    %110 = math.exp %109 : vector<8x128xf32>
    %cst_24 = arith.constant 1.000000e+00 : f32
    %111 = vector.broadcast %cst_24 : f32 to vector<8x128xf32>
    %112 = arith.addf %111, %110 : vector<8x128xf32>
    %113 = arith.divf %111, %112 : vector<8x128xf32>
    %114 = math.tanh %108 : vector<8x128xf32>
    %115 = vector.extract_strided_slice %113 {offsets = [0, 0], sizes = [8, 32], strides = [1, 1]} : vector<8x128xf32> to vector<8x32xf32>
    %116 = vector.extract_strided_slice %113 {offsets = [0, 32], sizes = [8, 32], strides = [1, 1]} : vector<8x128xf32> to vector<8x32xf32>
    %117 = vector.extract_strided_slice %113 {offsets = [0, 96], sizes = [8, 32], strides = [1, 1]} : vector<8x128xf32> to vector<8x32xf32>
    %118 = vector.extract_strided_slice %114 {offsets = [0, 64], sizes = [8, 32], strides = [1, 1]} : vector<8x128xf32> to vector<8x32xf32>
    %119 = arith.mulf %116, %83 : vector<8x32xf32>
    %120 = arith.mulf %115, %118 : vector<8x32xf32>
    %121 = arith.addf %119, %120 : vector<8x32xf32>
    %122 = math.tanh %121 : vector<8x32xf32>
    %123 = arith.mulf %117, %122 : vector<8x32xf32>
    %124 = arith.select %24, %123, %82 : vector<8x32xi1>, vector<8x32xf32>
    %125 = arith.select %24, %121, %83 : vector<8x32xi1>, vector<8x32xf32>
    %126 = vector.extract_strided_slice %33 {offsets = [16, 0], sizes = [8, 128], strides = [1, 1]} : vector<64x128xf32> to vector<8x128xf32>
    %127 = arith.truncf %103 : vector<8x32xf32> to vector<8x32xbf16>
    %cst_25 = arith.constant dense<0.000000e+00> : vector<8x128xf32>
    %128 = tpu.matmul %127, %40, %cst_25 {dimension_numbers = #tpu.dot_dimension_numbers<[1], [0], [0], [1], [0, 0, 1, 1], [], []>} : vector<8x32xbf16>, vector<32x128xbf16>, vector<8x128xf32> -> vector<8x128xf32>
    %129 = arith.addf %126, %128 : vector<8x128xf32>
    %130 = arith.negf %129 : vector<8x128xf32>
    %131 = math.exp %130 : vector<8x128xf32>
    %cst_26 = arith.constant 1.000000e+00 : f32
    %132 = vector.broadcast %cst_26 : f32 to vector<8x128xf32>
    %133 = arith.addf %132, %131 : vector<8x128xf32>
    %134 = arith.divf %132, %133 : vector<8x128xf32>
    %135 = math.tanh %129 : vector<8x128xf32>
    %136 = vector.extract_strided_slice %134 {offsets = [0, 0], sizes = [8, 32], strides = [1, 1]} : vector<8x128xf32> to vector<8x32xf32>
    %137 = vector.extract_strided_slice %134 {offsets = [0, 32], sizes = [8, 32], strides = [1, 1]} : vector<8x128xf32> to vector<8x32xf32>
    %138 = vector.extract_strided_slice %134 {offsets = [0, 96], sizes = [8, 32], strides = [1, 1]} : vector<8x128xf32> to vector<8x32xf32>
    %139 = vector.extract_strided_slice %135 {offsets = [0, 64], sizes = [8, 32], strides = [1, 1]} : vector<8x128xf32> to vector<8x32xf32>
    %140 = arith.mulf %137, %104 : vector<8x32xf32>
    %141 = arith.mulf %136, %139 : vector<8x32xf32>
    %142 = arith.addf %140, %141 : vector<8x32xf32>
    %143 = math.tanh %142 : vector<8x32xf32>
    %144 = arith.mulf %138, %143 : vector<8x32xf32>
    %145 = arith.select %12, %144, %103 : vector<8x32xi1>, vector<8x32xf32>
    %146 = arith.select %12, %142, %104 : vector<8x32xi1>, vector<8x32xf32>
    %147 = vector.extract_strided_slice %38 {offsets = [40, 0], sizes = [8, 128], strides = [1, 1]} : vector<64x128xf32> to vector<8x128xf32>
    %148 = arith.truncf %124 : vector<8x32xf32> to vector<8x32xbf16>
    %cst_27 = arith.constant dense<0.000000e+00> : vector<8x128xf32>
    %149 = tpu.matmul %148, %41, %cst_27 {dimension_numbers = #tpu.dot_dimension_numbers<[1], [0], [0], [1], [0, 0, 1, 1], [], []>} : vector<8x32xbf16>, vector<32x128xbf16>, vector<8x128xf32> -> vector<8x128xf32>
    %150 = arith.addf %147, %149 : vector<8x128xf32>
    %151 = arith.negf %150 : vector<8x128xf32>
    %152 = math.exp %151 : vector<8x128xf32>
    %cst_28 = arith.constant 1.000000e+00 : f32
    %153 = vector.broadcast %cst_28 : f32 to vector<8x128xf32>
    %154 = arith.addf %153, %152 : vector<8x128xf32>
    %155 = arith.divf %153, %154 : vector<8x128xf32>
    %156 = math.tanh %150 : vector<8x128xf32>
    %157 = vector.extract_strided_slice %155 {offsets = [0, 0], sizes = [8, 32], strides = [1, 1]} : vector<8x128xf32> to vector<8x32xf32>
    %158 = vector.extract_strided_slice %155 {offsets = [0, 32], sizes = [8, 32], strides = [1, 1]} : vector<8x128xf32> to vector<8x32xf32>
    %159 = vector.extract_strided_slice %155 {offsets = [0, 96], sizes = [8, 32], strides = [1, 1]} : vector<8x128xf32> to vector<8x32xf32>
    %160 = vector.extract_strided_slice %156 {offsets = [0, 64], sizes = [8, 32], strides = [1, 1]} : vector<8x128xf32> to vector<8x32xf32>
    %161 = arith.mulf %158, %125 : vector<8x32xf32>
    %162 = arith.mulf %157, %160 : vector<8x32xf32>
    %163 = arith.addf %161, %162 : vector<8x32xf32>
    %164 = math.tanh %163 : vector<8x32xf32>
    %165 = arith.mulf %159, %164 : vector<8x32xf32>
    %166 = arith.select %21, %165, %124 : vector<8x32xi1>, vector<8x32xf32>
    %167 = arith.select %21, %163, %125 : vector<8x32xi1>, vector<8x32xf32>
    %168 = vector.extract_strided_slice %33 {offsets = [24, 0], sizes = [8, 128], strides = [1, 1]} : vector<64x128xf32> to vector<8x128xf32>
    %169 = arith.truncf %145 : vector<8x32xf32> to vector<8x32xbf16>
    %cst_29 = arith.constant dense<0.000000e+00> : vector<8x128xf32>
    %170 = tpu.matmul %169, %40, %cst_29 {dimension_numbers = #tpu.dot_dimension_numbers<[1], [0], [0], [1], [0, 0, 1, 1], [], []>} : vector<8x32xbf16>, vector<32x128xbf16>, vector<8x128xf32> -> vector<8x128xf32>
    %171 = arith.addf %168, %170 : vector<8x128xf32>
    %172 = arith.negf %171 : vector<8x128xf32>
    %173 = math.exp %172 : vector<8x128xf32>
    %cst_30 = arith.constant 1.000000e+00 : f32
    %174 = vector.broadcast %cst_30 : f32 to vector<8x128xf32>
    %175 = arith.addf %174, %173 : vector<8x128xf32>
    %176 = arith.divf %174, %175 : vector<8x128xf32>
    %177 = math.tanh %171 : vector<8x128xf32>
    %178 = vector.extract_strided_slice %176 {offsets = [0, 0], sizes = [8, 32], strides = [1, 1]} : vector<8x128xf32> to vector<8x32xf32>
    %179 = vector.extract_strided_slice %176 {offsets = [0, 32], sizes = [8, 32], strides = [1, 1]} : vector<8x128xf32> to vector<8x32xf32>
    %180 = vector.extract_strided_slice %176 {offsets = [0, 96], sizes = [8, 32], strides = [1, 1]} : vector<8x128xf32> to vector<8x32xf32>
    %181 = vector.extract_strided_slice %177 {offsets = [0, 64], sizes = [8, 32], strides = [1, 1]} : vector<8x128xf32> to vector<8x32xf32>
    %182 = arith.mulf %179, %146 : vector<8x32xf32>
    %183 = arith.mulf %178, %181 : vector<8x32xf32>
    %184 = arith.addf %182, %183 : vector<8x32xf32>
    %185 = math.tanh %184 : vector<8x32xf32>
    %186 = arith.mulf %180, %185 : vector<8x32xf32>
    %187 = arith.select %15, %186, %145 : vector<8x32xi1>, vector<8x32xf32>
    %188 = arith.select %15, %184, %146 : vector<8x32xi1>, vector<8x32xf32>
    %189 = vector.extract_strided_slice %38 {offsets = [32, 0], sizes = [8, 128], strides = [1, 1]} : vector<64x128xf32> to vector<8x128xf32>
    %190 = arith.truncf %166 : vector<8x32xf32> to vector<8x32xbf16>
    %cst_31 = arith.constant dense<0.000000e+00> : vector<8x128xf32>
    %191 = tpu.matmul %190, %41, %cst_31 {dimension_numbers = #tpu.dot_dimension_numbers<[1], [0], [0], [1], [0, 0, 1, 1], [], []>} : vector<8x32xbf16>, vector<32x128xbf16>, vector<8x128xf32> -> vector<8x128xf32>
    %192 = arith.addf %189, %191 : vector<8x128xf32>
    %193 = arith.negf %192 : vector<8x128xf32>
    %194 = math.exp %193 : vector<8x128xf32>
    %cst_32 = arith.constant 1.000000e+00 : f32
    %195 = vector.broadcast %cst_32 : f32 to vector<8x128xf32>
    %196 = arith.addf %195, %194 : vector<8x128xf32>
    %197 = arith.divf %195, %196 : vector<8x128xf32>
    %198 = math.tanh %192 : vector<8x128xf32>
    %199 = vector.extract_strided_slice %197 {offsets = [0, 0], sizes = [8, 32], strides = [1, 1]} : vector<8x128xf32> to vector<8x32xf32>
    %200 = vector.extract_strided_slice %197 {offsets = [0, 32], sizes = [8, 32], strides = [1, 1]} : vector<8x128xf32> to vector<8x32xf32>
    %201 = vector.extract_strided_slice %197 {offsets = [0, 96], sizes = [8, 32], strides = [1, 1]} : vector<8x128xf32> to vector<8x32xf32>
    %202 = vector.extract_strided_slice %198 {offsets = [0, 64], sizes = [8, 32], strides = [1, 1]} : vector<8x128xf32> to vector<8x32xf32>
    %203 = arith.mulf %200, %167 : vector<8x32xf32>
    %204 = arith.mulf %199, %202 : vector<8x32xf32>
    %205 = arith.addf %203, %204 : vector<8x32xf32>
    %206 = math.tanh %205 : vector<8x32xf32>
    %207 = arith.mulf %201, %206 : vector<8x32xf32>
    %208 = arith.select %18, %207, %166 : vector<8x32xi1>, vector<8x32xf32>
    %209 = arith.select %18, %205, %167 : vector<8x32xi1>, vector<8x32xf32>
    %210 = vector.extract_strided_slice %33 {offsets = [32, 0], sizes = [8, 128], strides = [1, 1]} : vector<64x128xf32> to vector<8x128xf32>
    %211 = arith.truncf %187 : vector<8x32xf32> to vector<8x32xbf16>
    %cst_33 = arith.constant dense<0.000000e+00> : vector<8x128xf32>
    %212 = tpu.matmul %211, %40, %cst_33 {dimension_numbers = #tpu.dot_dimension_numbers<[1], [0], [0], [1], [0, 0, 1, 1], [], []>} : vector<8x32xbf16>, vector<32x128xbf16>, vector<8x128xf32> -> vector<8x128xf32>
    %213 = arith.addf %210, %212 : vector<8x128xf32>
    %214 = arith.negf %213 : vector<8x128xf32>
    %215 = math.exp %214 : vector<8x128xf32>
    %cst_34 = arith.constant 1.000000e+00 : f32
    %216 = vector.broadcast %cst_34 : f32 to vector<8x128xf32>
    %217 = arith.addf %216, %215 : vector<8x128xf32>
    %218 = arith.divf %216, %217 : vector<8x128xf32>
    %219 = math.tanh %213 : vector<8x128xf32>
    %220 = vector.extract_strided_slice %218 {offsets = [0, 0], sizes = [8, 32], strides = [1, 1]} : vector<8x128xf32> to vector<8x32xf32>
    %221 = vector.extract_strided_slice %218 {offsets = [0, 32], sizes = [8, 32], strides = [1, 1]} : vector<8x128xf32> to vector<8x32xf32>
    %222 = vector.extract_strided_slice %218 {offsets = [0, 96], sizes = [8, 32], strides = [1, 1]} : vector<8x128xf32> to vector<8x32xf32>
    %223 = vector.extract_strided_slice %219 {offsets = [0, 64], sizes = [8, 32], strides = [1, 1]} : vector<8x128xf32> to vector<8x32xf32>
    %224 = arith.mulf %221, %188 : vector<8x32xf32>
    %225 = arith.mulf %220, %223 : vector<8x32xf32>
    %226 = arith.addf %224, %225 : vector<8x32xf32>
    %227 = math.tanh %226 : vector<8x32xf32>
    %228 = arith.mulf %222, %227 : vector<8x32xf32>
    %229 = arith.select %18, %228, %187 : vector<8x32xi1>, vector<8x32xf32>
    %230 = arith.select %18, %226, %188 : vector<8x32xi1>, vector<8x32xf32>
    %231 = vector.extract_strided_slice %38 {offsets = [24, 0], sizes = [8, 128], strides = [1, 1]} : vector<64x128xf32> to vector<8x128xf32>
    %232 = arith.truncf %208 : vector<8x32xf32> to vector<8x32xbf16>
    %cst_35 = arith.constant dense<0.000000e+00> : vector<8x128xf32>
    %233 = tpu.matmul %232, %41, %cst_35 {dimension_numbers = #tpu.dot_dimension_numbers<[1], [0], [0], [1], [0, 0, 1, 1], [], []>} : vector<8x32xbf16>, vector<32x128xbf16>, vector<8x128xf32> -> vector<8x128xf32>
    %234 = arith.addf %231, %233 : vector<8x128xf32>
    %235 = arith.negf %234 : vector<8x128xf32>
    %236 = math.exp %235 : vector<8x128xf32>
    %cst_36 = arith.constant 1.000000e+00 : f32
    %237 = vector.broadcast %cst_36 : f32 to vector<8x128xf32>
    %238 = arith.addf %237, %236 : vector<8x128xf32>
    %239 = arith.divf %237, %238 : vector<8x128xf32>
    %240 = math.tanh %234 : vector<8x128xf32>
    %241 = vector.extract_strided_slice %239 {offsets = [0, 0], sizes = [8, 32], strides = [1, 1]} : vector<8x128xf32> to vector<8x32xf32>
    %242 = vector.extract_strided_slice %239 {offsets = [0, 32], sizes = [8, 32], strides = [1, 1]} : vector<8x128xf32> to vector<8x32xf32>
    %243 = vector.extract_strided_slice %239 {offsets = [0, 96], sizes = [8, 32], strides = [1, 1]} : vector<8x128xf32> to vector<8x32xf32>
    %244 = vector.extract_strided_slice %240 {offsets = [0, 64], sizes = [8, 32], strides = [1, 1]} : vector<8x128xf32> to vector<8x32xf32>
    %245 = arith.mulf %242, %209 : vector<8x32xf32>
    %246 = arith.mulf %241, %244 : vector<8x32xf32>
    %247 = arith.addf %245, %246 : vector<8x32xf32>
    %248 = math.tanh %247 : vector<8x32xf32>
    %249 = arith.mulf %243, %248 : vector<8x32xf32>
    %250 = arith.select %15, %249, %208 : vector<8x32xi1>, vector<8x32xf32>
    %251 = arith.select %15, %247, %209 : vector<8x32xi1>, vector<8x32xf32>
    %252 = vector.extract_strided_slice %33 {offsets = [40, 0], sizes = [8, 128], strides = [1, 1]} : vector<64x128xf32> to vector<8x128xf32>
    %253 = arith.truncf %229 : vector<8x32xf32> to vector<8x32xbf16>
    %cst_37 = arith.constant dense<0.000000e+00> : vector<8x128xf32>
    %254 = tpu.matmul %253, %40, %cst_37 {dimension_numbers = #tpu.dot_dimension_numbers<[1], [0], [0], [1], [0, 0, 1, 1], [], []>} : vector<8x32xbf16>, vector<32x128xbf16>, vector<8x128xf32> -> vector<8x128xf32>
    %255 = arith.addf %252, %254 : vector<8x128xf32>
    %256 = arith.negf %255 : vector<8x128xf32>
    %257 = math.exp %256 : vector<8x128xf32>
    %cst_38 = arith.constant 1.000000e+00 : f32
    %258 = vector.broadcast %cst_38 : f32 to vector<8x128xf32>
    %259 = arith.addf %258, %257 : vector<8x128xf32>
    %260 = arith.divf %258, %259 : vector<8x128xf32>
    %261 = math.tanh %255 : vector<8x128xf32>
    %262 = vector.extract_strided_slice %260 {offsets = [0, 0], sizes = [8, 32], strides = [1, 1]} : vector<8x128xf32> to vector<8x32xf32>
    %263 = vector.extract_strided_slice %260 {offsets = [0, 32], sizes = [8, 32], strides = [1, 1]} : vector<8x128xf32> to vector<8x32xf32>
    %264 = vector.extract_strided_slice %260 {offsets = [0, 96], sizes = [8, 32], strides = [1, 1]} : vector<8x128xf32> to vector<8x32xf32>
    %265 = vector.extract_strided_slice %261 {offsets = [0, 64], sizes = [8, 32], strides = [1, 1]} : vector<8x128xf32> to vector<8x32xf32>
    %266 = arith.mulf %263, %230 : vector<8x32xf32>
    %267 = arith.mulf %262, %265 : vector<8x32xf32>
    %268 = arith.addf %266, %267 : vector<8x32xf32>
    %269 = math.tanh %268 : vector<8x32xf32>
    %270 = arith.mulf %264, %269 : vector<8x32xf32>
    %271 = arith.select %21, %270, %229 : vector<8x32xi1>, vector<8x32xf32>
    %272 = arith.select %21, %268, %230 : vector<8x32xi1>, vector<8x32xf32>
    %273 = vector.extract_strided_slice %38 {offsets = [16, 0], sizes = [8, 128], strides = [1, 1]} : vector<64x128xf32> to vector<8x128xf32>
    %274 = arith.truncf %250 : vector<8x32xf32> to vector<8x32xbf16>
    %cst_39 = arith.constant dense<0.000000e+00> : vector<8x128xf32>
    %275 = tpu.matmul %274, %41, %cst_39 {dimension_numbers = #tpu.dot_dimension_numbers<[1], [0], [0], [1], [0, 0, 1, 1], [], []>} : vector<8x32xbf16>, vector<32x128xbf16>, vector<8x128xf32> -> vector<8x128xf32>
    %276 = arith.addf %273, %275 : vector<8x128xf32>
    %277 = arith.negf %276 : vector<8x128xf32>
    %278 = math.exp %277 : vector<8x128xf32>
    %cst_40 = arith.constant 1.000000e+00 : f32
    %279 = vector.broadcast %cst_40 : f32 to vector<8x128xf32>
    %280 = arith.addf %279, %278 : vector<8x128xf32>
    %281 = arith.divf %279, %280 : vector<8x128xf32>
    %282 = math.tanh %276 : vector<8x128xf32>
    %283 = vector.extract_strided_slice %281 {offsets = [0, 0], sizes = [8, 32], strides = [1, 1]} : vector<8x128xf32> to vector<8x32xf32>
    %284 = vector.extract_strided_slice %281 {offsets = [0, 32], sizes = [8, 32], strides = [1, 1]} : vector<8x128xf32> to vector<8x32xf32>
    %285 = vector.extract_strided_slice %281 {offsets = [0, 96], sizes = [8, 32], strides = [1, 1]} : vector<8x128xf32> to vector<8x32xf32>
    %286 = vector.extract_strided_slice %282 {offsets = [0, 64], sizes = [8, 32], strides = [1, 1]} : vector<8x128xf32> to vector<8x32xf32>
    %287 = arith.mulf %284, %251 : vector<8x32xf32>
    %288 = arith.mulf %283, %286 : vector<8x32xf32>
    %289 = arith.addf %287, %288 : vector<8x32xf32>
    %290 = math.tanh %289 : vector<8x32xf32>
    %291 = arith.mulf %285, %290 : vector<8x32xf32>
    %292 = arith.select %12, %291, %250 : vector<8x32xi1>, vector<8x32xf32>
    %293 = arith.select %12, %289, %251 : vector<8x32xi1>, vector<8x32xf32>
    %294 = vector.extract_strided_slice %33 {offsets = [48, 0], sizes = [8, 128], strides = [1, 1]} : vector<64x128xf32> to vector<8x128xf32>
    %295 = arith.truncf %271 : vector<8x32xf32> to vector<8x32xbf16>
    %cst_41 = arith.constant dense<0.000000e+00> : vector<8x128xf32>
    %296 = tpu.matmul %295, %40, %cst_41 {dimension_numbers = #tpu.dot_dimension_numbers<[1], [0], [0], [1], [0, 0, 1, 1], [], []>} : vector<8x32xbf16>, vector<32x128xbf16>, vector<8x128xf32> -> vector<8x128xf32>
    %297 = arith.addf %294, %296 : vector<8x128xf32>
    %298 = arith.negf %297 : vector<8x128xf32>
    %299 = math.exp %298 : vector<8x128xf32>
    %cst_42 = arith.constant 1.000000e+00 : f32
    %300 = vector.broadcast %cst_42 : f32 to vector<8x128xf32>
    %301 = arith.addf %300, %299 : vector<8x128xf32>
    %302 = arith.divf %300, %301 : vector<8x128xf32>
    %303 = math.tanh %297 : vector<8x128xf32>
    %304 = vector.extract_strided_slice %302 {offsets = [0, 0], sizes = [8, 32], strides = [1, 1]} : vector<8x128xf32> to vector<8x32xf32>
    %305 = vector.extract_strided_slice %302 {offsets = [0, 32], sizes = [8, 32], strides = [1, 1]} : vector<8x128xf32> to vector<8x32xf32>
    %306 = vector.extract_strided_slice %302 {offsets = [0, 96], sizes = [8, 32], strides = [1, 1]} : vector<8x128xf32> to vector<8x32xf32>
    %307 = vector.extract_strided_slice %303 {offsets = [0, 64], sizes = [8, 32], strides = [1, 1]} : vector<8x128xf32> to vector<8x32xf32>
    %308 = arith.mulf %305, %272 : vector<8x32xf32>
    %309 = arith.mulf %304, %307 : vector<8x32xf32>
    %310 = arith.addf %308, %309 : vector<8x32xf32>
    %311 = math.tanh %310 : vector<8x32xf32>
    %312 = arith.mulf %306, %311 : vector<8x32xf32>
    %313 = arith.select %24, %312, %271 : vector<8x32xi1>, vector<8x32xf32>
    %314 = arith.select %24, %310, %272 : vector<8x32xi1>, vector<8x32xf32>
    %315 = vector.extract_strided_slice %38 {offsets = [8, 0], sizes = [8, 128], strides = [1, 1]} : vector<64x128xf32> to vector<8x128xf32>
    %316 = arith.truncf %292 : vector<8x32xf32> to vector<8x32xbf16>
    %cst_43 = arith.constant dense<0.000000e+00> : vector<8x128xf32>
    %317 = tpu.matmul %316, %41, %cst_43 {dimension_numbers = #tpu.dot_dimension_numbers<[1], [0], [0], [1], [0, 0, 1, 1], [], []>} : vector<8x32xbf16>, vector<32x128xbf16>, vector<8x128xf32> -> vector<8x128xf32>
    %318 = arith.addf %315, %317 : vector<8x128xf32>
    %319 = arith.negf %318 : vector<8x128xf32>
    %320 = math.exp %319 : vector<8x128xf32>
    %cst_44 = arith.constant 1.000000e+00 : f32
    %321 = vector.broadcast %cst_44 : f32 to vector<8x128xf32>
    %322 = arith.addf %321, %320 : vector<8x128xf32>
    %323 = arith.divf %321, %322 : vector<8x128xf32>
    %324 = math.tanh %318 : vector<8x128xf32>
    %325 = vector.extract_strided_slice %323 {offsets = [0, 0], sizes = [8, 32], strides = [1, 1]} : vector<8x128xf32> to vector<8x32xf32>
    %326 = vector.extract_strided_slice %323 {offsets = [0, 32], sizes = [8, 32], strides = [1, 1]} : vector<8x128xf32> to vector<8x32xf32>
    %327 = vector.extract_strided_slice %323 {offsets = [0, 96], sizes = [8, 32], strides = [1, 1]} : vector<8x128xf32> to vector<8x32xf32>
    %328 = vector.extract_strided_slice %324 {offsets = [0, 64], sizes = [8, 32], strides = [1, 1]} : vector<8x128xf32> to vector<8x32xf32>
    %329 = arith.mulf %326, %293 : vector<8x32xf32>
    %330 = arith.mulf %325, %328 : vector<8x32xf32>
    %331 = arith.addf %329, %330 : vector<8x32xf32>
    %332 = math.tanh %331 : vector<8x32xf32>
    %333 = arith.mulf %327, %332 : vector<8x32xf32>
    %334 = arith.select %9, %333, %292 : vector<8x32xi1>, vector<8x32xf32>
    %335 = arith.select %9, %331, %293 : vector<8x32xi1>, vector<8x32xf32>
    %336 = vector.extract_strided_slice %33 {offsets = [56, 0], sizes = [8, 128], strides = [1, 1]} : vector<64x128xf32> to vector<8x128xf32>
    %337 = arith.truncf %313 : vector<8x32xf32> to vector<8x32xbf16>
    %cst_45 = arith.constant dense<0.000000e+00> : vector<8x128xf32>
    %338 = tpu.matmul %337, %40, %cst_45 {dimension_numbers = #tpu.dot_dimension_numbers<[1], [0], [0], [1], [0, 0, 1, 1], [], []>} : vector<8x32xbf16>, vector<32x128xbf16>, vector<8x128xf32> -> vector<8x128xf32>
    %339 = arith.addf %336, %338 : vector<8x128xf32>
    %340 = arith.negf %339 : vector<8x128xf32>
    %341 = math.exp %340 : vector<8x128xf32>
    %cst_46 = arith.constant 1.000000e+00 : f32
    %342 = vector.broadcast %cst_46 : f32 to vector<8x128xf32>
    %343 = arith.addf %342, %341 : vector<8x128xf32>
    %344 = arith.divf %342, %343 : vector<8x128xf32>
    %345 = math.tanh %339 : vector<8x128xf32>
    %346 = vector.extract_strided_slice %344 {offsets = [0, 0], sizes = [8, 32], strides = [1, 1]} : vector<8x128xf32> to vector<8x32xf32>
    %347 = vector.extract_strided_slice %344 {offsets = [0, 32], sizes = [8, 32], strides = [1, 1]} : vector<8x128xf32> to vector<8x32xf32>
    %348 = vector.extract_strided_slice %344 {offsets = [0, 96], sizes = [8, 32], strides = [1, 1]} : vector<8x128xf32> to vector<8x32xf32>
    %349 = vector.extract_strided_slice %345 {offsets = [0, 64], sizes = [8, 32], strides = [1, 1]} : vector<8x128xf32> to vector<8x32xf32>
    %350 = arith.mulf %347, %314 : vector<8x32xf32>
    %351 = arith.mulf %346, %349 : vector<8x32xf32>
    %352 = arith.addf %350, %351 : vector<8x32xf32>
    %353 = math.tanh %352 : vector<8x32xf32>
    %354 = arith.mulf %348, %353 : vector<8x32xf32>
    %355 = arith.select %27, %354, %313 : vector<8x32xi1>, vector<8x32xf32>
    %356 = vector.extract_strided_slice %38 {offsets = [0, 0], sizes = [8, 128], strides = [1, 1]} : vector<64x128xf32> to vector<8x128xf32>
    %357 = arith.truncf %334 : vector<8x32xf32> to vector<8x32xbf16>
    %cst_47 = arith.constant dense<0.000000e+00> : vector<8x128xf32>
    %358 = tpu.matmul %357, %41, %cst_47 {dimension_numbers = #tpu.dot_dimension_numbers<[1], [0], [0], [1], [0, 0, 1, 1], [], []>} : vector<8x32xbf16>, vector<32x128xbf16>, vector<8x128xf32> -> vector<8x128xf32>
    %359 = arith.addf %356, %358 : vector<8x128xf32>
    %360 = arith.negf %359 : vector<8x128xf32>
    %361 = math.exp %360 : vector<8x128xf32>
    %cst_48 = arith.constant 1.000000e+00 : f32
    %362 = vector.broadcast %cst_48 : f32 to vector<8x128xf32>
    %363 = arith.addf %362, %361 : vector<8x128xf32>
    %364 = arith.divf %362, %363 : vector<8x128xf32>
    %365 = math.tanh %359 : vector<8x128xf32>
    %366 = vector.extract_strided_slice %364 {offsets = [0, 0], sizes = [8, 32], strides = [1, 1]} : vector<8x128xf32> to vector<8x32xf32>
    %367 = vector.extract_strided_slice %364 {offsets = [0, 32], sizes = [8, 32], strides = [1, 1]} : vector<8x128xf32> to vector<8x32xf32>
    %368 = vector.extract_strided_slice %364 {offsets = [0, 96], sizes = [8, 32], strides = [1, 1]} : vector<8x128xf32> to vector<8x32xf32>
    %369 = vector.extract_strided_slice %365 {offsets = [0, 64], sizes = [8, 32], strides = [1, 1]} : vector<8x128xf32> to vector<8x32xf32>
    %370 = arith.mulf %367, %335 : vector<8x32xf32>
    %371 = arith.mulf %366, %369 : vector<8x32xf32>
    %372 = arith.addf %370, %371 : vector<8x32xf32>
    %373 = math.tanh %372 : vector<8x32xf32>
    %374 = arith.mulf %368, %373 : vector<8x32xf32>
    %375 = arith.select %6, %374, %334 : vector<8x32xi1>, vector<8x32xf32>
    %376 = tpu.concatenate %61, %103, %145, %187, %229, %271, %313, %355 in 0 : vector<8x32xf32>, vector<8x32xf32>, vector<8x32xf32>, vector<8x32xf32>, vector<8x32xf32>, vector<8x32xf32>, vector<8x32xf32>, vector<8x32xf32> -> vector<64x32xf32>
    %377 = arith.truncf %376 : vector<64x32xf32> to vector<64x32xbf16>
    %378 = tpu.concatenate %375, %334, %292, %250, %208, %166, %124, %82 in 0 : vector<8x32xf32>, vector<8x32xf32>, vector<8x32xf32>, vector<8x32xf32>, vector<8x32xf32>, vector<8x32xf32>, vector<8x32xf32>, vector<8x32xf32> -> vector<64x32xf32>
    %379 = arith.truncf %378 : vector<64x32xf32> to vector<64x32xbf16>
    %c0_49 = arith.constant 0 : index
    %c0_50 = arith.constant 0 : index
    %380 = vector.load %arg9[%c0_49, %c0_50] : memref<32x128xbf16, #tpu.memory_space<vmem>>, vector<32x128xbf16>
    %cst_51 = arith.constant dense<0.000000e+00> : vector<64x128xf32>
    %381 = tpu.matmul %377, %380, %cst_51 {dimension_numbers = #tpu.dot_dimension_numbers<[1], [0], [0], [1], [0, 0, 1, 1], [], []>} : vector<64x32xbf16>, vector<32x128xbf16>, vector<64x128xf32> -> vector<64x128xf32>
    %c0_52 = arith.constant 0 : index
    %c0_53 = arith.constant 0 : index
    %382 = vector.load %arg10[%c0_52, %c0_53] : memref<32x128xbf16, #tpu.memory_space<vmem>>, vector<32x128xbf16>
    %cst_54 = arith.constant dense<0.000000e+00> : vector<64x128xf32>
    %383 = tpu.matmul %379, %382, %cst_54 {dimension_numbers = #tpu.dot_dimension_numbers<[1], [0], [0], [1], [0, 0, 1, 1], [], []>} : vector<64x32xbf16>, vector<32x128xbf16>, vector<64x128xf32> -> vector<64x128xf32>
    %384 = arith.addf %381, %383 : vector<64x128xf32>
    %c0_55 = arith.constant 0 : index
    %c0_56 = arith.constant 0 : index
    %385 = vector.load %arg11[%c0_55, %c0_56] : memref<1x128xf32, #tpu.memory_space<vmem>>, vector<1x128xf32>
    %386 = vector.broadcast %385 : vector<1x128xf32> to vector<64x128xf32>
    %387 = arith.addf %384, %386 : vector<64x128xf32>
    %c0_57 = arith.constant 0 : index
    %c0_58 = arith.constant 0 : index
    %388 = vector.load %arg13[%c0_57, %c0_58] : memref<32x128xbf16, #tpu.memory_space<vmem>>, vector<32x128xbf16>
    %cst_59 = arith.constant dense<0.000000e+00> : vector<64x128xf32>
    %389 = tpu.matmul %377, %388, %cst_59 {dimension_numbers = #tpu.dot_dimension_numbers<[1], [0], [0], [1], [0, 0, 1, 1], [], []>} : vector<64x32xbf16>, vector<32x128xbf16>, vector<64x128xf32> -> vector<64x128xf32>
    %c0_60 = arith.constant 0 : index
    %c0_61 = arith.constant 0 : index
    %390 = vector.load %arg14[%c0_60, %c0_61] : memref<32x128xbf16, #tpu.memory_space<vmem>>, vector<32x128xbf16>
    %cst_62 = arith.constant dense<0.000000e+00> : vector<64x128xf32>
    %391 = tpu.matmul %379, %390, %cst_62 {dimension_numbers = #tpu.dot_dimension_numbers<[1], [0], [0], [1], [0, 0, 1, 1], [], []>} : vector<64x32xbf16>, vector<32x128xbf16>, vector<64x128xf32> -> vector<64x128xf32>
    %392 = arith.addf %389, %391 : vector<64x128xf32>
    %c0_63 = arith.constant 0 : index
    %c0_64 = arith.constant 0 : index
    %393 = vector.load %arg15[%c0_63, %c0_64] : memref<1x128xf32, #tpu.memory_space<vmem>>, vector<1x128xf32>
    %394 = vector.broadcast %393 : vector<1x128xf32> to vector<64x128xf32>
    %395 = arith.addf %392, %394 : vector<64x128xf32>
    %c0_65 = arith.constant 0 : index
    %c0_66 = arith.constant 0 : index
    %396 = vector.load %arg12[%c0_65, %c0_66] : memref<32x128xbf16, #tpu.memory_space<vmem>>, vector<32x128xbf16>
    %c0_67 = arith.constant 0 : index
    %c0_68 = arith.constant 0 : index
    %397 = vector.load %arg16[%c0_67, %c0_68] : memref<32x128xbf16, #tpu.memory_space<vmem>>, vector<32x128xbf16>
    %398 = vector.extract_strided_slice %387 {offsets = [0, 0], sizes = [8, 128], strides = [1, 1]} : vector<64x128xf32> to vector<8x128xf32>
    %399 = arith.truncf %39 : vector<8x32xf32> to vector<8x32xbf16>
    %cst_69 = arith.constant dense<0.000000e+00> : vector<8x128xf32>
    %400 = tpu.matmul %399, %396, %cst_69 {dimension_numbers = #tpu.dot_dimension_numbers<[1], [0], [0], [1], [0, 0, 1, 1], [], []>} : vector<8x32xbf16>, vector<32x128xbf16>, vector<8x128xf32> -> vector<8x128xf32>
    %401 = arith.addf %398, %400 : vector<8x128xf32>
    %402 = arith.negf %401 : vector<8x128xf32>
    %403 = math.exp %402 : vector<8x128xf32>
    %cst_70 = arith.constant 1.000000e+00 : f32
    %404 = vector.broadcast %cst_70 : f32 to vector<8x128xf32>
    %405 = arith.addf %404, %403 : vector<8x128xf32>
    %406 = arith.divf %404, %405 : vector<8x128xf32>
    %407 = math.tanh %401 : vector<8x128xf32>
    %408 = vector.extract_strided_slice %406 {offsets = [0, 0], sizes = [8, 32], strides = [1, 1]} : vector<8x128xf32> to vector<8x32xf32>
    %409 = vector.extract_strided_slice %406 {offsets = [0, 32], sizes = [8, 32], strides = [1, 1]} : vector<8x128xf32> to vector<8x32xf32>
    %410 = vector.extract_strided_slice %406 {offsets = [0, 96], sizes = [8, 32], strides = [1, 1]} : vector<8x128xf32> to vector<8x32xf32>
    %411 = vector.extract_strided_slice %407 {offsets = [0, 64], sizes = [8, 32], strides = [1, 1]} : vector<8x128xf32> to vector<8x32xf32>
    %412 = arith.mulf %409, %39 : vector<8x32xf32>
    %413 = arith.mulf %408, %411 : vector<8x32xf32>
    %414 = arith.addf %412, %413 : vector<8x32xf32>
    %415 = math.tanh %414 : vector<8x32xf32>
    %416 = arith.mulf %410, %415 : vector<8x32xf32>
    %417 = arith.select %6, %416, %39 : vector<8x32xi1>, vector<8x32xf32>
    %418 = arith.select %6, %414, %39 : vector<8x32xi1>, vector<8x32xf32>
    %419 = vector.extract_strided_slice %395 {offsets = [56, 0], sizes = [8, 128], strides = [1, 1]} : vector<64x128xf32> to vector<8x128xf32>
    %420 = arith.truncf %39 : vector<8x32xf32> to vector<8x32xbf16>
    %cst_71 = arith.constant dense<0.000000e+00> : vector<8x128xf32>
    %421 = tpu.matmul %420, %397, %cst_71 {dimension_numbers = #tpu.dot_dimension_numbers<[1], [0], [0], [1], [0, 0, 1, 1], [], []>} : vector<8x32xbf16>, vector<32x128xbf16>, vector<8x128xf32> -> vector<8x128xf32>
    %422 = arith.addf %419, %421 : vector<8x128xf32>
    %423 = arith.negf %422 : vector<8x128xf32>
    %424 = math.exp %423 : vector<8x128xf32>
    %cst_72 = arith.constant 1.000000e+00 : f32
    %425 = vector.broadcast %cst_72 : f32 to vector<8x128xf32>
    %426 = arith.addf %425, %424 : vector<8x128xf32>
    %427 = arith.divf %425, %426 : vector<8x128xf32>
    %428 = math.tanh %422 : vector<8x128xf32>
    %429 = vector.extract_strided_slice %427 {offsets = [0, 0], sizes = [8, 32], strides = [1, 1]} : vector<8x128xf32> to vector<8x32xf32>
    %430 = vector.extract_strided_slice %427 {offsets = [0, 32], sizes = [8, 32], strides = [1, 1]} : vector<8x128xf32> to vector<8x32xf32>
    %431 = vector.extract_strided_slice %427 {offsets = [0, 96], sizes = [8, 32], strides = [1, 1]} : vector<8x128xf32> to vector<8x32xf32>
    %432 = vector.extract_strided_slice %428 {offsets = [0, 64], sizes = [8, 32], strides = [1, 1]} : vector<8x128xf32> to vector<8x32xf32>
    %433 = arith.mulf %430, %39 : vector<8x32xf32>
    %434 = arith.mulf %429, %432 : vector<8x32xf32>
    %435 = arith.addf %433, %434 : vector<8x32xf32>
    %436 = math.tanh %435 : vector<8x32xf32>
    %437 = arith.mulf %431, %436 : vector<8x32xf32>
    %438 = arith.select %27, %437, %39 : vector<8x32xi1>, vector<8x32xf32>
    %439 = arith.select %27, %435, %39 : vector<8x32xi1>, vector<8x32xf32>
    %440 = vector.extract_strided_slice %387 {offsets = [8, 0], sizes = [8, 128], strides = [1, 1]} : vector<64x128xf32> to vector<8x128xf32>
    %441 = arith.truncf %417 : vector<8x32xf32> to vector<8x32xbf16>
    %cst_73 = arith.constant dense<0.000000e+00> : vector<8x128xf32>
    %442 = tpu.matmul %441, %396, %cst_73 {dimension_numbers = #tpu.dot_dimension_numbers<[1], [0], [0], [1], [0, 0, 1, 1], [], []>} : vector<8x32xbf16>, vector<32x128xbf16>, vector<8x128xf32> -> vector<8x128xf32>
    %443 = arith.addf %440, %442 : vector<8x128xf32>
    %444 = arith.negf %443 : vector<8x128xf32>
    %445 = math.exp %444 : vector<8x128xf32>
    %cst_74 = arith.constant 1.000000e+00 : f32
    %446 = vector.broadcast %cst_74 : f32 to vector<8x128xf32>
    %447 = arith.addf %446, %445 : vector<8x128xf32>
    %448 = arith.divf %446, %447 : vector<8x128xf32>
    %449 = math.tanh %443 : vector<8x128xf32>
    %450 = vector.extract_strided_slice %448 {offsets = [0, 0], sizes = [8, 32], strides = [1, 1]} : vector<8x128xf32> to vector<8x32xf32>
    %451 = vector.extract_strided_slice %448 {offsets = [0, 32], sizes = [8, 32], strides = [1, 1]} : vector<8x128xf32> to vector<8x32xf32>
    %452 = vector.extract_strided_slice %448 {offsets = [0, 96], sizes = [8, 32], strides = [1, 1]} : vector<8x128xf32> to vector<8x32xf32>
    %453 = vector.extract_strided_slice %449 {offsets = [0, 64], sizes = [8, 32], strides = [1, 1]} : vector<8x128xf32> to vector<8x32xf32>
    %454 = arith.mulf %451, %418 : vector<8x32xf32>
    %455 = arith.mulf %450, %453 : vector<8x32xf32>
    %456 = arith.addf %454, %455 : vector<8x32xf32>
    %457 = math.tanh %456 : vector<8x32xf32>
    %458 = arith.mulf %452, %457 : vector<8x32xf32>
    %459 = arith.select %9, %458, %417 : vector<8x32xi1>, vector<8x32xf32>
    %460 = arith.select %9, %456, %418 : vector<8x32xi1>, vector<8x32xf32>
    %461 = vector.extract_strided_slice %395 {offsets = [48, 0], sizes = [8, 128], strides = [1, 1]} : vector<64x128xf32> to vector<8x128xf32>
    %462 = arith.truncf %438 : vector<8x32xf32> to vector<8x32xbf16>
    %cst_75 = arith.constant dense<0.000000e+00> : vector<8x128xf32>
    %463 = tpu.matmul %462, %397, %cst_75 {dimension_numbers = #tpu.dot_dimension_numbers<[1], [0], [0], [1], [0, 0, 1, 1], [], []>} : vector<8x32xbf16>, vector<32x128xbf16>, vector<8x128xf32> -> vector<8x128xf32>
    %464 = arith.addf %461, %463 : vector<8x128xf32>
    %465 = arith.negf %464 : vector<8x128xf32>
    %466 = math.exp %465 : vector<8x128xf32>
    %cst_76 = arith.constant 1.000000e+00 : f32
    %467 = vector.broadcast %cst_76 : f32 to vector<8x128xf32>
    %468 = arith.addf %467, %466 : vector<8x128xf32>
    %469 = arith.divf %467, %468 : vector<8x128xf32>
    %470 = math.tanh %464 : vector<8x128xf32>
    %471 = vector.extract_strided_slice %469 {offsets = [0, 0], sizes = [8, 32], strides = [1, 1]} : vector<8x128xf32> to vector<8x32xf32>
    %472 = vector.extract_strided_slice %469 {offsets = [0, 32], sizes = [8, 32], strides = [1, 1]} : vector<8x128xf32> to vector<8x32xf32>
    %473 = vector.extract_strided_slice %469 {offsets = [0, 96], sizes = [8, 32], strides = [1, 1]} : vector<8x128xf32> to vector<8x32xf32>
    %474 = vector.extract_strided_slice %470 {offsets = [0, 64], sizes = [8, 32], strides = [1, 1]} : vector<8x128xf32> to vector<8x32xf32>
    %475 = arith.mulf %472, %439 : vector<8x32xf32>
    %476 = arith.mulf %471, %474 : vector<8x32xf32>
    %477 = arith.addf %475, %476 : vector<8x32xf32>
    %478 = math.tanh %477 : vector<8x32xf32>
    %479 = arith.mulf %473, %478 : vector<8x32xf32>
    %480 = arith.select %24, %479, %438 : vector<8x32xi1>, vector<8x32xf32>
    %481 = arith.select %24, %477, %439 : vector<8x32xi1>, vector<8x32xf32>
    %482 = vector.extract_strided_slice %387 {offsets = [16, 0], sizes = [8, 128], strides = [1, 1]} : vector<64x128xf32> to vector<8x128xf32>
    %483 = arith.truncf %459 : vector<8x32xf32> to vector<8x32xbf16>
    %cst_77 = arith.constant dense<0.000000e+00> : vector<8x128xf32>
    %484 = tpu.matmul %483, %396, %cst_77 {dimension_numbers = #tpu.dot_dimension_numbers<[1], [0], [0], [1], [0, 0, 1, 1], [], []>} : vector<8x32xbf16>, vector<32x128xbf16>, vector<8x128xf32> -> vector<8x128xf32>
    %485 = arith.addf %482, %484 : vector<8x128xf32>
    %486 = arith.negf %485 : vector<8x128xf32>
    %487 = math.exp %486 : vector<8x128xf32>
    %cst_78 = arith.constant 1.000000e+00 : f32
    %488 = vector.broadcast %cst_78 : f32 to vector<8x128xf32>
    %489 = arith.addf %488, %487 : vector<8x128xf32>
    %490 = arith.divf %488, %489 : vector<8x128xf32>
    %491 = math.tanh %485 : vector<8x128xf32>
    %492 = vector.extract_strided_slice %490 {offsets = [0, 0], sizes = [8, 32], strides = [1, 1]} : vector<8x128xf32> to vector<8x32xf32>
    %493 = vector.extract_strided_slice %490 {offsets = [0, 32], sizes = [8, 32], strides = [1, 1]} : vector<8x128xf32> to vector<8x32xf32>
    %494 = vector.extract_strided_slice %490 {offsets = [0, 96], sizes = [8, 32], strides = [1, 1]} : vector<8x128xf32> to vector<8x32xf32>
    %495 = vector.extract_strided_slice %491 {offsets = [0, 64], sizes = [8, 32], strides = [1, 1]} : vector<8x128xf32> to vector<8x32xf32>
    %496 = arith.mulf %493, %460 : vector<8x32xf32>
    %497 = arith.mulf %492, %495 : vector<8x32xf32>
    %498 = arith.addf %496, %497 : vector<8x32xf32>
    %499 = math.tanh %498 : vector<8x32xf32>
    %500 = arith.mulf %494, %499 : vector<8x32xf32>
    %501 = arith.select %12, %500, %459 : vector<8x32xi1>, vector<8x32xf32>
    %502 = arith.select %12, %498, %460 : vector<8x32xi1>, vector<8x32xf32>
    %503 = vector.extract_strided_slice %395 {offsets = [40, 0], sizes = [8, 128], strides = [1, 1]} : vector<64x128xf32> to vector<8x128xf32>
    %504 = arith.truncf %480 : vector<8x32xf32> to vector<8x32xbf16>
    %cst_79 = arith.constant dense<0.000000e+00> : vector<8x128xf32>
    %505 = tpu.matmul %504, %397, %cst_79 {dimension_numbers = #tpu.dot_dimension_numbers<[1], [0], [0], [1], [0, 0, 1, 1], [], []>} : vector<8x32xbf16>, vector<32x128xbf16>, vector<8x128xf32> -> vector<8x128xf32>
    %506 = arith.addf %503, %505 : vector<8x128xf32>
    %507 = arith.negf %506 : vector<8x128xf32>
    %508 = math.exp %507 : vector<8x128xf32>
    %cst_80 = arith.constant 1.000000e+00 : f32
    %509 = vector.broadcast %cst_80 : f32 to vector<8x128xf32>
    %510 = arith.addf %509, %508 : vector<8x128xf32>
    %511 = arith.divf %509, %510 : vector<8x128xf32>
    %512 = math.tanh %506 : vector<8x128xf32>
    %513 = vector.extract_strided_slice %511 {offsets = [0, 0], sizes = [8, 32], strides = [1, 1]} : vector<8x128xf32> to vector<8x32xf32>
    %514 = vector.extract_strided_slice %511 {offsets = [0, 32], sizes = [8, 32], strides = [1, 1]} : vector<8x128xf32> to vector<8x32xf32>
    %515 = vector.extract_strided_slice %511 {offsets = [0, 96], sizes = [8, 32], strides = [1, 1]} : vector<8x128xf32> to vector<8x32xf32>
    %516 = vector.extract_strided_slice %512 {offsets = [0, 64], sizes = [8, 32], strides = [1, 1]} : vector<8x128xf32> to vector<8x32xf32>
    %517 = arith.mulf %514, %481 : vector<8x32xf32>
    %518 = arith.mulf %513, %516 : vector<8x32xf32>
    %519 = arith.addf %517, %518 : vector<8x32xf32>
    %520 = math.tanh %519 : vector<8x32xf32>
    %521 = arith.mulf %515, %520 : vector<8x32xf32>
    %522 = arith.select %21, %521, %480 : vector<8x32xi1>, vector<8x32xf32>
    %523 = arith.select %21, %519, %481 : vector<8x32xi1>, vector<8x32xf32>
    %524 = vector.extract_strided_slice %387 {offsets = [24, 0], sizes = [8, 128], strides = [1, 1]} : vector<64x128xf32> to vector<8x128xf32>
    %525 = arith.truncf %501 : vector<8x32xf32> to vector<8x32xbf16>
    %cst_81 = arith.constant dense<0.000000e+00> : vector<8x128xf32>
    %526 = tpu.matmul %525, %396, %cst_81 {dimension_numbers = #tpu.dot_dimension_numbers<[1], [0], [0], [1], [0, 0, 1, 1], [], []>} : vector<8x32xbf16>, vector<32x128xbf16>, vector<8x128xf32> -> vector<8x128xf32>
    %527 = arith.addf %524, %526 : vector<8x128xf32>
    %528 = arith.negf %527 : vector<8x128xf32>
    %529 = math.exp %528 : vector<8x128xf32>
    %cst_82 = arith.constant 1.000000e+00 : f32
    %530 = vector.broadcast %cst_82 : f32 to vector<8x128xf32>
    %531 = arith.addf %530, %529 : vector<8x128xf32>
    %532 = arith.divf %530, %531 : vector<8x128xf32>
    %533 = math.tanh %527 : vector<8x128xf32>
    %534 = vector.extract_strided_slice %532 {offsets = [0, 0], sizes = [8, 32], strides = [1, 1]} : vector<8x128xf32> to vector<8x32xf32>
    %535 = vector.extract_strided_slice %532 {offsets = [0, 32], sizes = [8, 32], strides = [1, 1]} : vector<8x128xf32> to vector<8x32xf32>
    %536 = vector.extract_strided_slice %532 {offsets = [0, 96], sizes = [8, 32], strides = [1, 1]} : vector<8x128xf32> to vector<8x32xf32>
    %537 = vector.extract_strided_slice %533 {offsets = [0, 64], sizes = [8, 32], strides = [1, 1]} : vector<8x128xf32> to vector<8x32xf32>
    %538 = arith.mulf %535, %502 : vector<8x32xf32>
    %539 = arith.mulf %534, %537 : vector<8x32xf32>
    %540 = arith.addf %538, %539 : vector<8x32xf32>
    %541 = math.tanh %540 : vector<8x32xf32>
    %542 = arith.mulf %536, %541 : vector<8x32xf32>
    %543 = arith.select %15, %542, %501 : vector<8x32xi1>, vector<8x32xf32>
    %544 = arith.select %15, %540, %502 : vector<8x32xi1>, vector<8x32xf32>
    %545 = vector.extract_strided_slice %395 {offsets = [32, 0], sizes = [8, 128], strides = [1, 1]} : vector<64x128xf32> to vector<8x128xf32>
    %546 = arith.truncf %522 : vector<8x32xf32> to vector<8x32xbf16>
    %cst_83 = arith.constant dense<0.000000e+00> : vector<8x128xf32>
    %547 = tpu.matmul %546, %397, %cst_83 {dimension_numbers = #tpu.dot_dimension_numbers<[1], [0], [0], [1], [0, 0, 1, 1], [], []>} : vector<8x32xbf16>, vector<32x128xbf16>, vector<8x128xf32> -> vector<8x128xf32>
    %548 = arith.addf %545, %547 : vector<8x128xf32>
    %549 = arith.negf %548 : vector<8x128xf32>
    %550 = math.exp %549 : vector<8x128xf32>
    %cst_84 = arith.constant 1.000000e+00 : f32
    %551 = vector.broadcast %cst_84 : f32 to vector<8x128xf32>
    %552 = arith.addf %551, %550 : vector<8x128xf32>
    %553 = arith.divf %551, %552 : vector<8x128xf32>
    %554 = math.tanh %548 : vector<8x128xf32>
    %555 = vector.extract_strided_slice %553 {offsets = [0, 0], sizes = [8, 32], strides = [1, 1]} : vector<8x128xf32> to vector<8x32xf32>
    %556 = vector.extract_strided_slice %553 {offsets = [0, 32], sizes = [8, 32], strides = [1, 1]} : vector<8x128xf32> to vector<8x32xf32>
    %557 = vector.extract_strided_slice %553 {offsets = [0, 96], sizes = [8, 32], strides = [1, 1]} : vector<8x128xf32> to vector<8x32xf32>
    %558 = vector.extract_strided_slice %554 {offsets = [0, 64], sizes = [8, 32], strides = [1, 1]} : vector<8x128xf32> to vector<8x32xf32>
    %559 = arith.mulf %556, %523 : vector<8x32xf32>
    %560 = arith.mulf %555, %558 : vector<8x32xf32>
    %561 = arith.addf %559, %560 : vector<8x32xf32>
    %562 = math.tanh %561 : vector<8x32xf32>
    %563 = arith.mulf %557, %562 : vector<8x32xf32>
    %564 = arith.select %18, %563, %522 : vector<8x32xi1>, vector<8x32xf32>
    %565 = arith.select %18, %561, %523 : vector<8x32xi1>, vector<8x32xf32>
    %566 = vector.extract_strided_slice %387 {offsets = [32, 0], sizes = [8, 128], strides = [1, 1]} : vector<64x128xf32> to vector<8x128xf32>
    %567 = arith.truncf %543 : vector<8x32xf32> to vector<8x32xbf16>
    %cst_85 = arith.constant dense<0.000000e+00> : vector<8x128xf32>
    %568 = tpu.matmul %567, %396, %cst_85 {dimension_numbers = #tpu.dot_dimension_numbers<[1], [0], [0], [1], [0, 0, 1, 1], [], []>} : vector<8x32xbf16>, vector<32x128xbf16>, vector<8x128xf32> -> vector<8x128xf32>
    %569 = arith.addf %566, %568 : vector<8x128xf32>
    %570 = arith.negf %569 : vector<8x128xf32>
    %571 = math.exp %570 : vector<8x128xf32>
    %cst_86 = arith.constant 1.000000e+00 : f32
    %572 = vector.broadcast %cst_86 : f32 to vector<8x128xf32>
    %573 = arith.addf %572, %571 : vector<8x128xf32>
    %574 = arith.divf %572, %573 : vector<8x128xf32>
    %575 = math.tanh %569 : vector<8x128xf32>
    %576 = vector.extract_strided_slice %574 {offsets = [0, 0], sizes = [8, 32], strides = [1, 1]} : vector<8x128xf32> to vector<8x32xf32>
    %577 = vector.extract_strided_slice %574 {offsets = [0, 32], sizes = [8, 32], strides = [1, 1]} : vector<8x128xf32> to vector<8x32xf32>
    %578 = vector.extract_strided_slice %574 {offsets = [0, 96], sizes = [8, 32], strides = [1, 1]} : vector<8x128xf32> to vector<8x32xf32>
    %579 = vector.extract_strided_slice %575 {offsets = [0, 64], sizes = [8, 32], strides = [1, 1]} : vector<8x128xf32> to vector<8x32xf32>
    %580 = arith.mulf %577, %544 : vector<8x32xf32>
    %581 = arith.mulf %576, %579 : vector<8x32xf32>
    %582 = arith.addf %580, %581 : vector<8x32xf32>
    %583 = math.tanh %582 : vector<8x32xf32>
    %584 = arith.mulf %578, %583 : vector<8x32xf32>
    %585 = arith.select %18, %584, %543 : vector<8x32xi1>, vector<8x32xf32>
    %586 = arith.select %18, %582, %544 : vector<8x32xi1>, vector<8x32xf32>
    %587 = vector.extract_strided_slice %395 {offsets = [24, 0], sizes = [8, 128], strides = [1, 1]} : vector<64x128xf32> to vector<8x128xf32>
    %588 = arith.truncf %564 : vector<8x32xf32> to vector<8x32xbf16>
    %cst_87 = arith.constant dense<0.000000e+00> : vector<8x128xf32>
    %589 = tpu.matmul %588, %397, %cst_87 {dimension_numbers = #tpu.dot_dimension_numbers<[1], [0], [0], [1], [0, 0, 1, 1], [], []>} : vector<8x32xbf16>, vector<32x128xbf16>, vector<8x128xf32> -> vector<8x128xf32>
    %590 = arith.addf %587, %589 : vector<8x128xf32>
    %591 = arith.negf %590 : vector<8x128xf32>
    %592 = math.exp %591 : vector<8x128xf32>
    %cst_88 = arith.constant 1.000000e+00 : f32
    %593 = vector.broadcast %cst_88 : f32 to vector<8x128xf32>
    %594 = arith.addf %593, %592 : vector<8x128xf32>
    %595 = arith.divf %593, %594 : vector<8x128xf32>
    %596 = math.tanh %590 : vector<8x128xf32>
    %597 = vector.extract_strided_slice %595 {offsets = [0, 0], sizes = [8, 32], strides = [1, 1]} : vector<8x128xf32> to vector<8x32xf32>
    %598 = vector.extract_strided_slice %595 {offsets = [0, 32], sizes = [8, 32], strides = [1, 1]} : vector<8x128xf32> to vector<8x32xf32>
    %599 = vector.extract_strided_slice %595 {offsets = [0, 96], sizes = [8, 32], strides = [1, 1]} : vector<8x128xf32> to vector<8x32xf32>
    %600 = vector.extract_strided_slice %596 {offsets = [0, 64], sizes = [8, 32], strides = [1, 1]} : vector<8x128xf32> to vector<8x32xf32>
    %601 = arith.mulf %598, %565 : vector<8x32xf32>
    %602 = arith.mulf %597, %600 : vector<8x32xf32>
    %603 = arith.addf %601, %602 : vector<8x32xf32>
    %604 = math.tanh %603 : vector<8x32xf32>
    %605 = arith.mulf %599, %604 : vector<8x32xf32>
    %606 = arith.select %15, %605, %564 : vector<8x32xi1>, vector<8x32xf32>
    %607 = arith.select %15, %603, %565 : vector<8x32xi1>, vector<8x32xf32>
    %608 = vector.extract_strided_slice %387 {offsets = [40, 0], sizes = [8, 128], strides = [1, 1]} : vector<64x128xf32> to vector<8x128xf32>
    %609 = arith.truncf %585 : vector<8x32xf32> to vector<8x32xbf16>
    %cst_89 = arith.constant dense<0.000000e+00> : vector<8x128xf32>
    %610 = tpu.matmul %609, %396, %cst_89 {dimension_numbers = #tpu.dot_dimension_numbers<[1], [0], [0], [1], [0, 0, 1, 1], [], []>} : vector<8x32xbf16>, vector<32x128xbf16>, vector<8x128xf32> -> vector<8x128xf32>
    %611 = arith.addf %608, %610 : vector<8x128xf32>
    %612 = arith.negf %611 : vector<8x128xf32>
    %613 = math.exp %612 : vector<8x128xf32>
    %cst_90 = arith.constant 1.000000e+00 : f32
    %614 = vector.broadcast %cst_90 : f32 to vector<8x128xf32>
    %615 = arith.addf %614, %613 : vector<8x128xf32>
    %616 = arith.divf %614, %615 : vector<8x128xf32>
    %617 = math.tanh %611 : vector<8x128xf32>
    %618 = vector.extract_strided_slice %616 {offsets = [0, 0], sizes = [8, 32], strides = [1, 1]} : vector<8x128xf32> to vector<8x32xf32>
    %619 = vector.extract_strided_slice %616 {offsets = [0, 32], sizes = [8, 32], strides = [1, 1]} : vector<8x128xf32> to vector<8x32xf32>
    %620 = vector.extract_strided_slice %616 {offsets = [0, 96], sizes = [8, 32], strides = [1, 1]} : vector<8x128xf32> to vector<8x32xf32>
    %621 = vector.extract_strided_slice %617 {offsets = [0, 64], sizes = [8, 32], strides = [1, 1]} : vector<8x128xf32> to vector<8x32xf32>
    %622 = arith.mulf %619, %586 : vector<8x32xf32>
    %623 = arith.mulf %618, %621 : vector<8x32xf32>
    %624 = arith.addf %622, %623 : vector<8x32xf32>
    %625 = math.tanh %624 : vector<8x32xf32>
    %626 = arith.mulf %620, %625 : vector<8x32xf32>
    %627 = arith.select %21, %626, %585 : vector<8x32xi1>, vector<8x32xf32>
    %628 = arith.select %21, %624, %586 : vector<8x32xi1>, vector<8x32xf32>
    %629 = vector.extract_strided_slice %395 {offsets = [16, 0], sizes = [8, 128], strides = [1, 1]} : vector<64x128xf32> to vector<8x128xf32>
    %630 = arith.truncf %606 : vector<8x32xf32> to vector<8x32xbf16>
    %cst_91 = arith.constant dense<0.000000e+00> : vector<8x128xf32>
    %631 = tpu.matmul %630, %397, %cst_91 {dimension_numbers = #tpu.dot_dimension_numbers<[1], [0], [0], [1], [0, 0, 1, 1], [], []>} : vector<8x32xbf16>, vector<32x128xbf16>, vector<8x128xf32> -> vector<8x128xf32>
    %632 = arith.addf %629, %631 : vector<8x128xf32>
    %633 = arith.negf %632 : vector<8x128xf32>
    %634 = math.exp %633 : vector<8x128xf32>
    %cst_92 = arith.constant 1.000000e+00 : f32
    %635 = vector.broadcast %cst_92 : f32 to vector<8x128xf32>
    %636 = arith.addf %635, %634 : vector<8x128xf32>
    %637 = arith.divf %635, %636 : vector<8x128xf32>
    %638 = math.tanh %632 : vector<8x128xf32>
    %639 = vector.extract_strided_slice %637 {offsets = [0, 0], sizes = [8, 32], strides = [1, 1]} : vector<8x128xf32> to vector<8x32xf32>
    %640 = vector.extract_strided_slice %637 {offsets = [0, 32], sizes = [8, 32], strides = [1, 1]} : vector<8x128xf32> to vector<8x32xf32>
    %641 = vector.extract_strided_slice %637 {offsets = [0, 96], sizes = [8, 32], strides = [1, 1]} : vector<8x128xf32> to vector<8x32xf32>
    %642 = vector.extract_strided_slice %638 {offsets = [0, 64], sizes = [8, 32], strides = [1, 1]} : vector<8x128xf32> to vector<8x32xf32>
    %643 = arith.mulf %640, %607 : vector<8x32xf32>
    %644 = arith.mulf %639, %642 : vector<8x32xf32>
    %645 = arith.addf %643, %644 : vector<8x32xf32>
    %646 = math.tanh %645 : vector<8x32xf32>
    %647 = arith.mulf %641, %646 : vector<8x32xf32>
    %648 = arith.select %12, %647, %606 : vector<8x32xi1>, vector<8x32xf32>
    %649 = arith.select %12, %645, %607 : vector<8x32xi1>, vector<8x32xf32>
    %650 = vector.extract_strided_slice %387 {offsets = [48, 0], sizes = [8, 128], strides = [1, 1]} : vector<64x128xf32> to vector<8x128xf32>
    %651 = arith.truncf %627 : vector<8x32xf32> to vector<8x32xbf16>
    %cst_93 = arith.constant dense<0.000000e+00> : vector<8x128xf32>
    %652 = tpu.matmul %651, %396, %cst_93 {dimension_numbers = #tpu.dot_dimension_numbers<[1], [0], [0], [1], [0, 0, 1, 1], [], []>} : vector<8x32xbf16>, vector<32x128xbf16>, vector<8x128xf32> -> vector<8x128xf32>
    %653 = arith.addf %650, %652 : vector<8x128xf32>
    %654 = arith.negf %653 : vector<8x128xf32>
    %655 = math.exp %654 : vector<8x128xf32>
    %cst_94 = arith.constant 1.000000e+00 : f32
    %656 = vector.broadcast %cst_94 : f32 to vector<8x128xf32>
    %657 = arith.addf %656, %655 : vector<8x128xf32>
    %658 = arith.divf %656, %657 : vector<8x128xf32>
    %659 = math.tanh %653 : vector<8x128xf32>
    %660 = vector.extract_strided_slice %658 {offsets = [0, 0], sizes = [8, 32], strides = [1, 1]} : vector<8x128xf32> to vector<8x32xf32>
    %661 = vector.extract_strided_slice %658 {offsets = [0, 32], sizes = [8, 32], strides = [1, 1]} : vector<8x128xf32> to vector<8x32xf32>
    %662 = vector.extract_strided_slice %658 {offsets = [0, 96], sizes = [8, 32], strides = [1, 1]} : vector<8x128xf32> to vector<8x32xf32>
    %663 = vector.extract_strided_slice %659 {offsets = [0, 64], sizes = [8, 32], strides = [1, 1]} : vector<8x128xf32> to vector<8x32xf32>
    %664 = arith.mulf %661, %628 : vector<8x32xf32>
    %665 = arith.mulf %660, %663 : vector<8x32xf32>
    %666 = arith.addf %664, %665 : vector<8x32xf32>
    %667 = math.tanh %666 : vector<8x32xf32>
    %668 = arith.mulf %662, %667 : vector<8x32xf32>
    %669 = arith.select %24, %668, %627 : vector<8x32xi1>, vector<8x32xf32>
    %670 = arith.select %24, %666, %628 : vector<8x32xi1>, vector<8x32xf32>
    %671 = vector.extract_strided_slice %395 {offsets = [8, 0], sizes = [8, 128], strides = [1, 1]} : vector<64x128xf32> to vector<8x128xf32>
    %672 = arith.truncf %648 : vector<8x32xf32> to vector<8x32xbf16>
    %cst_95 = arith.constant dense<0.000000e+00> : vector<8x128xf32>
    %673 = tpu.matmul %672, %397, %cst_95 {dimension_numbers = #tpu.dot_dimension_numbers<[1], [0], [0], [1], [0, 0, 1, 1], [], []>} : vector<8x32xbf16>, vector<32x128xbf16>, vector<8x128xf32> -> vector<8x128xf32>
    %674 = arith.addf %671, %673 : vector<8x128xf32>
    %675 = arith.negf %674 : vector<8x128xf32>
    %676 = math.exp %675 : vector<8x128xf32>
    %cst_96 = arith.constant 1.000000e+00 : f32
    %677 = vector.broadcast %cst_96 : f32 to vector<8x128xf32>
    %678 = arith.addf %677, %676 : vector<8x128xf32>
    %679 = arith.divf %677, %678 : vector<8x128xf32>
    %680 = math.tanh %674 : vector<8x128xf32>
    %681 = vector.extract_strided_slice %679 {offsets = [0, 0], sizes = [8, 32], strides = [1, 1]} : vector<8x128xf32> to vector<8x32xf32>
    %682 = vector.extract_strided_slice %679 {offsets = [0, 32], sizes = [8, 32], strides = [1, 1]} : vector<8x128xf32> to vector<8x32xf32>
    %683 = vector.extract_strided_slice %679 {offsets = [0, 96], sizes = [8, 32], strides = [1, 1]} : vector<8x128xf32> to vector<8x32xf32>
    %684 = vector.extract_strided_slice %680 {offsets = [0, 64], sizes = [8, 32], strides = [1, 1]} : vector<8x128xf32> to vector<8x32xf32>
    %685 = arith.mulf %682, %649 : vector<8x32xf32>
    %686 = arith.mulf %681, %684 : vector<8x32xf32>
    %687 = arith.addf %685, %686 : vector<8x32xf32>
    %688 = math.tanh %687 : vector<8x32xf32>
    %689 = arith.mulf %683, %688 : vector<8x32xf32>
    %690 = arith.select %9, %689, %648 : vector<8x32xi1>, vector<8x32xf32>
    %691 = arith.select %9, %687, %649 : vector<8x32xi1>, vector<8x32xf32>
    %692 = vector.extract_strided_slice %387 {offsets = [56, 0], sizes = [8, 128], strides = [1, 1]} : vector<64x128xf32> to vector<8x128xf32>
    %693 = arith.truncf %669 : vector<8x32xf32> to vector<8x32xbf16>
    %cst_97 = arith.constant dense<0.000000e+00> : vector<8x128xf32>
    %694 = tpu.matmul %693, %396, %cst_97 {dimension_numbers = #tpu.dot_dimension_numbers<[1], [0], [0], [1], [0, 0, 1, 1], [], []>} : vector<8x32xbf16>, vector<32x128xbf16>, vector<8x128xf32> -> vector<8x128xf32>
    %695 = arith.addf %692, %694 : vector<8x128xf32>
    %696 = arith.negf %695 : vector<8x128xf32>
    %697 = math.exp %696 : vector<8x128xf32>
    %cst_98 = arith.constant 1.000000e+00 : f32
    %698 = vector.broadcast %cst_98 : f32 to vector<8x128xf32>
    %699 = arith.addf %698, %697 : vector<8x128xf32>
    %700 = arith.divf %698, %699 : vector<8x128xf32>
    %701 = math.tanh %695 : vector<8x128xf32>
    %702 = vector.extract_strided_slice %700 {offsets = [0, 0], sizes = [8, 32], strides = [1, 1]} : vector<8x128xf32> to vector<8x32xf32>
    %703 = vector.extract_strided_slice %700 {offsets = [0, 32], sizes = [8, 32], strides = [1, 1]} : vector<8x128xf32> to vector<8x32xf32>
    %704 = vector.extract_strided_slice %700 {offsets = [0, 96], sizes = [8, 32], strides = [1, 1]} : vector<8x128xf32> to vector<8x32xf32>
    %705 = vector.extract_strided_slice %701 {offsets = [0, 64], sizes = [8, 32], strides = [1, 1]} : vector<8x128xf32> to vector<8x32xf32>
    %706 = arith.mulf %703, %670 : vector<8x32xf32>
    %707 = arith.mulf %702, %705 : vector<8x32xf32>
    %708 = arith.addf %706, %707 : vector<8x32xf32>
    %709 = math.tanh %708 : vector<8x32xf32>
    %710 = arith.mulf %704, %709 : vector<8x32xf32>
    %711 = arith.select %27, %710, %669 : vector<8x32xi1>, vector<8x32xf32>
    %712 = vector.extract_strided_slice %395 {offsets = [0, 0], sizes = [8, 128], strides = [1, 1]} : vector<64x128xf32> to vector<8x128xf32>
    %713 = arith.truncf %690 : vector<8x32xf32> to vector<8x32xbf16>
    %cst_99 = arith.constant dense<0.000000e+00> : vector<8x128xf32>
    %714 = tpu.matmul %713, %397, %cst_99 {dimension_numbers = #tpu.dot_dimension_numbers<[1], [0], [0], [1], [0, 0, 1, 1], [], []>} : vector<8x32xbf16>, vector<32x128xbf16>, vector<8x128xf32> -> vector<8x128xf32>
    %715 = arith.addf %712, %714 : vector<8x128xf32>
    %716 = arith.negf %715 : vector<8x128xf32>
    %717 = math.exp %716 : vector<8x128xf32>
    %cst_100 = arith.constant 1.000000e+00 : f32
    %718 = vector.broadcast %cst_100 : f32 to vector<8x128xf32>
    %719 = arith.addf %718, %717 : vector<8x128xf32>
    %720 = arith.divf %718, %719 : vector<8x128xf32>
    %721 = math.tanh %715 : vector<8x128xf32>
    %722 = vector.extract_strided_slice %720 {offsets = [0, 0], sizes = [8, 32], strides = [1, 1]} : vector<8x128xf32> to vector<8x32xf32>
    %723 = vector.extract_strided_slice %720 {offsets = [0, 32], sizes = [8, 32], strides = [1, 1]} : vector<8x128xf32> to vector<8x32xf32>
    %724 = vector.extract_strided_slice %720 {offsets = [0, 96], sizes = [8, 32], strides = [1, 1]} : vector<8x128xf32> to vector<8x32xf32>
    %725 = vector.extract_strided_slice %721 {offsets = [0, 64], sizes = [8, 32], strides = [1, 1]} : vector<8x128xf32> to vector<8x32xf32>
    %726 = arith.mulf %723, %691 : vector<8x32xf32>
    %727 = arith.mulf %722, %725 : vector<8x32xf32>
    %728 = arith.addf %726, %727 : vector<8x32xf32>
    %729 = math.tanh %728 : vector<8x32xf32>
    %730 = arith.mulf %724, %729 : vector<8x32xf32>
    %731 = arith.select %6, %730, %690 : vector<8x32xi1>, vector<8x32xf32>
    %732 = tpu.concatenate %711, %731 in 1 : vector<8x32xf32>, vector<8x32xf32> -> vector<8x64xf32>
    %733 = arith.truncf %732 : vector<8x64xf32> to vector<8x64xbf16>
    %c0_101 = arith.constant 0 : index
    %c0_102 = arith.constant 0 : index
    %734 = vector.load %arg17[%c0_101, %c0_102] : memref<64x2xbf16, #tpu.memory_space<vmem>>, vector<64x2xbf16>
    %cst_103 = arith.constant dense<0.000000e+00> : vector<8x2xf32>
    %735 = tpu.matmul %733, %734, %cst_103 {dimension_numbers = #tpu.dot_dimension_numbers<[1], [0], [0], [1], [0, 0, 1, 1], [], []>} : vector<8x64xbf16>, vector<64x2xbf16>, vector<8x2xf32> -> vector<8x2xf32>
    %c0_104 = arith.constant 0 : index
    %c0_105 = arith.constant 0 : index
    %736 = vector.load %arg18[%c0_104, %c0_105] : memref<1x2xf32, #tpu.memory_space<vmem>>, vector<1x2xf32>
    %737 = vector.broadcast %736 : vector<1x2xf32> to vector<8x2xf32>
    %738 = arith.addf %735, %737 : vector<8x2xf32>
    %c0_106 = arith.constant 0 : index
    %c0_107 = arith.constant 0 : index
    %739 = vector.load %arg19[%c0_106, %c0_107] : memref<8x2xf32, #tpu.memory_space<vmem>>, vector<8x2xf32>
    tpu.vector_store %arg19[%c0_106, %c0_107], %738 {strides = array<i32>} : memref<8x2xf32, #tpu.memory_space<vmem>>, vector<8x2xf32>,
    return
  }
  func.func @transform_0(%arg0: i32) -> (i32, i32) {
    %c0_i32 = arith.constant 0 : i32
    %c0_i32_0 = arith.constant 0 : i32
    %c0_i32_1 = arith.constant 0 : i32
    return %c0_i32, %c0_i32_0 : i32, i32
  }
  func.func @transform_1(%arg0: i32) -> (i32, i32) {
    %c0_i32 = arith.constant 0 : i32
    %c0_i32_0 = arith.constant 0 : i32
    %c0_i32_1 = arith.constant 0 : i32
    return %c0_i32, %c0_i32_0 : i32, i32
  }
  func.func @transform_2(%arg0: i32) -> (i32, i32) {
    %c0_i32 = arith.constant 0 : i32
    %c0_i32_0 = arith.constant 0 : i32
    %c0_i32_1 = arith.constant 0 : i32
    return %c0_i32, %c0_i32_0 : i32, i32
  }
  func.func @transform_3(%arg0: i32) -> (i32, i32) {
    %c0_i32 = arith.constant 0 : i32
    %c0_i32_0 = arith.constant 0 : i32
    %c0_i32_1 = arith.constant 0 : i32
    return %c0_i32, %c0_i32_0 : i32, i32
  }
  func.func @transform_4(%arg0: i32) -> (i32, i32) {
    %c0_i32 = arith.constant 0 : i32
    %c0_i32_0 = arith.constant 0 : i32
    %c0_i32_1 = arith.constant 0 : i32
    return %c0_i32, %c0_i32_0 : i32, i32
  }
  func.func @transform_5(%arg0: i32) -> (i32, i32) {
    %c0_i32 = arith.constant 0 : i32
    %c0_i32_0 = arith.constant 0 : i32
    %c0_i32_1 = arith.constant 0 : i32
    return %c0_i32, %c0_i32_0 : i32, i32
  }
  func.func @transform_6(%arg0: i32) -> (i32, i32) {
    %c0_i32 = arith.constant 0 : i32
    %c0_i32_0 = arith.constant 0 : i32
    %c0_i32_1 = arith.constant 0 : i32
    return %c0_i32, %c0_i32_0 : i32, i32
  }
  func.func @transform_7(%arg0: i32) -> (i32, i32) {
    %c0_i32 = arith.constant 0 : i32
    %c0_i32_0 = arith.constant 0 : i32
    %c0_i32_1 = arith.constant 0 : i32
    return %c0_i32, %c0_i32_0 : i32, i32
  }
  func.func @transform_8(%arg0: i32) -> (i32, i32) {
    %c0_i32 = arith.constant 0 : i32
    %c0_i32_0 = arith.constant 0 : i32
    %c0_i32_1 = arith.constant 0 : i32
    return %c0_i32, %c0_i32_0 : i32, i32
  }
  func.func @transform_9(%arg0: i32) -> (i32, i32) {
    %c0_i32 = arith.constant 0 : i32
    %c0_i32_0 = arith.constant 0 : i32
    %c0_i32_1 = arith.constant 0 : i32
    return %c0_i32, %c0_i32_0 : i32, i32
  }
  func.func @transform_10(%arg0: i32) -> (i32, i32) {
    %c0_i32 = arith.constant 0 : i32
    %c0_i32_0 = arith.constant 0 : i32
    %c0_i32_1 = arith.constant 0 : i32
    return %c0_i32, %c0_i32_0 : i32, i32
  }
  func.func @transform_11(%arg0: i32) -> (i32, i32) {
    %c0_i32 = arith.constant 0 : i32
    %c0_i32_0 = arith.constant 0 : i32
    %c0_i32_1 = arith.constant 0 : i32
    return %c0_i32, %c0_i32_0 : i32, i32
  }
  func.func @transform_12(%arg0: i32) -> (i32, i32) {
    %c0_i32 = arith.constant 0 : i32
    %c0_i32_0 = arith.constant 0 : i32
    %c0_i32_1 = arith.constant 0 : i32
    return %c0_i32, %c0_i32_0 : i32, i32
  }
  func.func @transform_13(%arg0: i32) -> (i32, i32) {
    %c0_i32 = arith.constant 0 : i32
    %c0_i32_0 = arith.constant 0 : i32
    %c0_i32_1 = arith.constant 0 : i32
    return %c0_i32, %c0_i32_0 : i32, i32
  }
  func.func @transform_14(%arg0: i32) -> (i32, i32) {
    %c0_i32 = arith.constant 0 : i32
    %c0_i32_0 = arith.constant 0 : i32
    %c0_i32_1 = arith.constant 0 : i32
    return %c0_i32, %c0_i32_0 : i32, i32
  }
  func.func @transform_15(%arg0: i32) -> (i32, i32) {
    %c0_i32 = arith.constant 0 : i32
    %c0_i32_0 = arith.constant 0 : i32
    %c0_i32_1 = arith.constant 0 : i32
    return %c0_i32, %c0_i32_0 : i32, i32
  }
  func.func @transform_16(%arg0: i32) -> (i32, i32) {
    %c0_i32 = arith.constant 0 : i32
    %c0_i32_0 = arith.constant 0 : i32
    %c0_i32_1 = arith.constant 0 : i32
    return %c0_i32, %c0_i32_0 : i32, i32
  }
  func.func @transform_17(%arg0: i32) -> (i32, i32) {
    %c0_i32 = arith.constant 0 : i32
    %c0_i32_0 = arith.constant 0 : i32
    %c0_i32_1 = arith.constant 0 : i32
    return %c0_i32, %c0_i32_0 : i32, i32
  }
  func.func @transform_18(%arg0: i32) -> (i32, i32) {
    %c0_i32 = arith.constant 0 : i32
    %c0_i32_0 = arith.constant 0 : i32
    %c0_i32_1 = arith.constant 0 : i32
    return %c0_i32, %c0_i32_0 : i32, i32
  }
}

</mosaic_0001>

<bundles_post_ra>
// kernel: lstm_model_forward.1
= control target key start
LH: loop header
LB: loop body
LE: loop exit
PB: predicated region body
PF: predicated region fallthrough
CT: control target
= control target key end

     0   :  { %vm143_vm0 = vcmask 130048   ;;  %v4127_v1 = vmov 0   ;;  %v4128_v6 = vmov 0.0   ;;  %vm4129_vm1 = vmmov 0   ;;  %s4132_s24 = smov 32   ;;  %s5333_s2 = inlined_call_operand.vmem [shape: bf16[16,128], index: 2, kind: input, shape index: {}]   ;;  %s5334_s0 = inlined_call_operand.vmem [shape: bf16[64,16], index: 0, kind: input, shape index: {}]   ;;  %s5335_s5 = inlined_call_operand.vmem [shape: bf16[16,128], index: 5, kind: input, shape index: {}]   ;;  %s5336_s7 = inlined_call_operand.vmem [shape: bf16[32,128], index: 7, kind: input, shape index: {}]   ;;  %s5337_s4 = inlined_call_operand.vmem [shape: bf16[32,128], index: 4, kind: input, shape index: {}]   ;;  %s5338_s1 = inlined_call_operand.vmem [shape: s32[8,1], index: 1, kind: input, shape index: {}]   ;;  %s5339_s3 = inlined_call_operand.vmem [shape: f32[1,128], index: 3, kind: input, shape index: {}]   ;;  %s5340_s6 = inlined_call_operand.vmem [shape: f32[1,128], index: 6, kind: input, shape index: {}]   ;;  %s5341_s9 = inlined_call_operand.vmem [shape: bf16[32,128], index: 9, kind: input, shape index: {}]   ;;  %s5342_s13 = inlined_call_operand.vmem [shape: bf16[32,128], index: 13, kind: input, shape index: {}]   ;;  %s5343_s8 = inlined_call_operand.vmem [shape: bf16[32,128], index: 8, kind: input, shape index: {}]   ;;  %s5344_s12 = inlined_call_operand.vmem [shape: bf16[32,128], index: 12, kind: input, shape index: {}]   ;;  %s5345_s11 = inlined_call_operand.vmem [shape: bf16[32,128], index: 11, kind: input, shape index: {}]   ;;  %s5346_s15 = inlined_call_operand.vmem [shape: bf16[32,128], index: 15, kind: input, shape index: {}]   ;;  %s5347_s10 = inlined_call_operand.vmem [shape: f32[1,128], index: 10, kind: input, shape index: {}]   ;;  %s5348_s14 = inlined_call_operand.vmem [shape: f32[1,128], index: 14, kind: input, shape index: {}]   ;;  %s5349_s16 = inlined_call_operand.vmem [shape: bf16[64,2], index: 16, kind: input, shape index: {}]   ;;  %s5350_s17 = inlined_call_operand.vmem [shape: f32[1,2], index: 17, kind: input, shape index: {}]   ;;  %s5351_s18 = inlined_call_operand.vmem [shape: f32[8,2], index: 18, kind: output, shape index: {}]  }
   0x1   :  { %5353 = sst [smem:[#allocation2_spill]] %s5333_s2  ;;  %3831 = vset.pattern.permute.xlu1 %v4127_v1  ;;  %v4263_v8 = vld [vmem:[%s5337_s4] sm:$0xff]   ;;  %v4271_v9 = vld [vmem:[%s5337_s4 + $0x8] sm:$0xff]   ;;  %v4130_v57 = vmov 7   ;;  %vm321_vm5 = vcmask 261120   ;;  %vm3164_vm12 = vcmask 523264  }
   0x2   :  { %5354 = sst [smem:[#allocation3_spill]] %s5334_s0  ;;  %s5356_s29 = sld [smem:[#allocation2_spill]]  ;;  %v4276_v10 = vld [vmem:[%s5336_s7] sm:$0xff]   ;;  %v4286_v11 = vld [vmem:[%s5336_s7 + $0x8] sm:$0xff]   ;;  %3840 = vset.pattern.permute.xlu0 %v4130_v57  ;;  %vm3208_vm13 = vcmask 15360  }
   0x3   :  { %5355 = sst [smem:[#allocation4_spill]] %s5335_s5  ;;  %s5357_s19 = sld [smem:[#allocation3_spill]]  ;;  %v62_v12 = vld [vmem:[%s5338_s1] sm:$0xff] }
   0x4   :  { %s5358_s5 = sld [smem:[#allocation4_spill]]  ;;  %64 = vperm.xlu1 %3831, %v62_v12   ;;  %v3214_v13 = vld [vmem:[%s5339_s3] ss:$0 sm:$0xff] }
   0x5   :  { %v3224_v28 = vld [vmem:[%s5340_s6] ss:$0 sm:$0xff]  ;;  %s4131_s6 = smov 64  }
   0x8   :  { %v3841_v0 = vld [vmem:[%s5356_s29] sm:$0xff]   ;;  %3832 = vset.pattern.permute.xlu1 %v4130_v57 }
   0x9   :  { %v3842_v2 = vld [vmem:[%s5357_s19 + $0x10] sm:$0xff]   ;;  %3801 = vmatprep.subr.bf16.mxu1 %v3841_v0  ;;  %v3843_v3 = vld [vmem:[%s5357_s19 + $0x18] sm:$0xff]   ;;  %3465 = vmatprep.subr.bf16.mxu0 %v3841_v0  ;;  %v3845_v5 = vld [vmem:[%s5357_s19] sm:$0xff]  }
   0xa   :  { %3802 = vmatpush3.bf16.msra.mxu1 %v3841_v0  ;;  %3471 = vmatprep.mubr.msk.bf16.mxu1 %vm143_vm0, %v3842_v2  ;;  %v3844_v4 = vld [vmem:[%s5358_s5] sm:$0xff]   ;;  %v3846_v7 = vld [vmem:[%s5357_s19 + $0x8] sm:$0xff]  }
   0xb   :  { %3466 = vmatpush3.bf16.msra.mxu0 %v3841_v0  ;;  %3475 = vmatprep.subr.bf16.mxu1 %v3844_v4 }
   0xc   :  { %3485 = vmatprep.subr.bf16.mxu0 %v4128_v6  ;;  %3467 = vmatprep.mubr.msk.bf16.mxu0 %vm143_vm0, %v3845_v5 }
   0xd   :  { %3472 = vmatmul.mubr.msk.bf16.vlgmr.msra.gmra.mrb[0].mxu1 %vm143_vm0, %v3843_v3 }
   0xe   :  { %3476 = vmatpush3.bf16.msra.mxu1 %v3844_v4  ;;  %3477 = vmatprep.mubr.msk.bf16.mxu1 %vm143_vm0, %v3845_v5 }
   0xf   :  { %3493 = vmatprep.subr.bf16.mxu1 %v4128_v6  ;;  %3468 = vmatmul.mubr.msk.bf16.vlgmr.msra.gmra.mrb[0].mxu0 %vm143_vm0, %v3846_v7 }
  0x10   :  { %3489 = vmatprep.mubr.msk.bf16.mxu0 %vm4129_vm1, %v4128_v6  ;;  %3486 = vmatpush3.bf16.msra.mxu0 %v4263_v8 }
  0x11   :  { %3487 = vmatprep.subr.bf16.mxu0 %v4128_v6 }
  0x14   :  { %3488 = vmatpush3.bf16.msra.mxu0 %v4271_v9 }
  0x15   :  { %3478 = vmatmul.mubr.msk.bf16.vlgmr.msra.gmra.mrb[4].mxu1 %vm143_vm0, %v3846_v7  ;;  %3501 = vmatprep.subr.bf16.mxu0 %v4128_v6 }
  0x16   :  { %3494 = vmatpush3.bf16.msra.mxu1 %v4276_v10  ;;  %3481 = vmatprep.mubr.msk.bf16.mxu1 %vm143_vm0, %v3842_v2 }
  0x17   :  { %3495 = vmatprep.subr.bf16.mxu1 %v4128_v6  ;;  %3490 = vmatmul.mubr.bf16.vlgmr.msra.gmra.mrb[4].mxu0 %v4127_v1 }
  0x18   :  { %3502 = vmatpush3.bf16.msra.mxu0 %v4263_v8  ;;  %3505 = vmatprep.mubr.msk.bf16.mxu0 %vm4129_vm1, %v4128_v6 }
  0x19   :  { %3503 = vmatprep.subr.bf16.mxu0 %v4128_v6 }
  0x1a   :  { %3496 = vmatpush3.bf16.msra.mxu1 %v4286_v11 }
  0x1b   :  { %3509 = vmatprep.subr.bf16.mxu1 %v4128_v6 }
  0x1c   :  { %3504 = vmatpush3.bf16.msra.mxu0 %v4271_v9 }
  0x1d   :  { %3482 = vmatmul.mubr.msk.bf16.gmra.mrb[8].mxu1 %vm143_vm0, %v3843_v3  ;;  %3517 = vmatprep.subr.bf16.mxu0 %v4128_v6  ;;  %v60_v3 = vlaneseq }
  0x1e   :  { %3497 = vmatprep.mubr.msk.bf16.mxu1 %vm4129_vm1, %v4128_v6 }
  0x1f   :  { %v61_v4 = vand.u32 127, %v60_v3 }
  0x25   :  { %3498 = vmatmul.mubr.bf16.vlgmr.msra.gmra.mrb[12].mxu1 %v4127_v1 }
  0x26   :  { %3510 = vmatpush3.bf16.msra.mxu1 %v4276_v10  ;;  %3513 = vmatprep.mubr.msk.bf16.mxu1 %vm4129_vm1, %v4128_v6 }
  0x27   :  { %3511 = vmatprep.subr.bf16.mxu1 %v4128_v6 }
  0x2a   :  { %3512 = vmatpush3.bf16.msra.mxu1 %v4286_v11 }
  0x2b   :  { %3525 = vmatprep.subr.bf16.mxu1 %v4128_v6 }
  0x83   :  { %v65_v5 = vpop.permute.xlu1 %64 }
  0x84   :  { %vm66_vm2 = vcmp.lt.s32.totalorder %v61_v4, %v65_v5 }
  0xe0   :  { %v3473_v14 = vpop.f32.mrb[0].mxu1 }
  0xe1   :  { %v4315_v15 = vadd.f32 %v3473_v14, %v3214_v13  ;;  %v206_v16 = vpop.f32.mrb[1].mxu1 }
  0xe2   :  { %v4317_v17 = vadd.f32 %v3214_v13, %v206_v16  ;;  %v3474_v18 = vpop.f32.mrb[2].mxu1  ;;  %v3469_v19 = vpop.f32.mrb[0].mxu0  ;;  %v4350_v16 = vsel %vm66_vm2, 1, %v4127_v1 }
  0xe3   :  { %v4319_v20 = vadd.f32 %v3474_v18, %v3214_v13  ;;  %v209_v21 = vpop.f32.mrb[3].mxu1  ;;  %v4321_v22 = vadd.f32 %v3469_v19, %v3214_v13  ;;  %v190_v23 = vpop.f32.mrb[1].mxu0 }
  0xe4   :  { %v4323_v24 = vadd.f32 %v3214_v13, %v209_v21  ;;  %v3470_v25 = vpop.f32.mrb[2].mxu0  ;;  %v191_v31 = vadd.f32 %v3214_v13, %v190_v23 }
  0xe5   :  { %v4325_v26 = vadd.f32 %v3470_v25, %v3214_v13  ;;  %v193_v27 = vpop.f32.mrb[3].mxu0 }
  0xe6   :  { %v4330_v29 = vadd.f32 %v3214_v13, %v193_v27 }
  0xe8   :  { %v3479_v30 = vpop.f32.mrb[4].mxu1 }
  0xe9   :  { %v4332_v32 = vadd.f32 %v3479_v30, %v3224_v28  ;;  %v270_v33 = vpop.f32.mrb[5].mxu1 }
  0xea   :  { %v4334_v34 = vadd.f32 %v3224_v28, %v270_v33  ;;  %v3480_v35 = vpop.f32.mrb[6].mxu1  ;;  %v359_v38 = vpop.f32.mrb[4].mxu0 }
  0xeb   :  { %v4336_v36 = vadd.f32 %v3480_v35, %v3224_v28  ;;  %v273_v37 = vpop.f32.mrb[7].mxu1  ;;  %v365_v40 = vadd.f32 %v359_v38, %v191_v31  ;;  %v3491_v41 = vpop.f32.mrb[5].mxu0 }
  0xec   :  { %v4338_v39 = vadd.f32 %v3224_v28, %v273_v37  ;;  %v362_v42 = vpop.f32.mrb[6].mxu0 }
  0xed   :  { %v3492_v43 = vpop.f32.mrb[7].mxu0  ;;  %v3232_v61 = vmul.f32 -1.442695, %v365_v40 }
  0xf0   :  { %v3483_v44 = vpop.f32.mrb[8].mxu1 }
  0xf1   :  { %v4340_v45 = vadd.f32 %v3483_v44, %v3224_v28  ;;  %v286_v46 = vpop.f32.mrb[9].mxu1 }
  0xf2   :  { %v4342_v47 = vadd.f32 %v3224_v28, %v286_v46  ;;  %v3484_v48 = vpop.f32.mrb[10].mxu1 }
  0xf3   :  { %v289_v49 = vpop.f32.mrb[11].mxu1  ;;  %v298_v51 = vadd.f32 %v3484_v48, %v3224_v28 }
  0xf4   :  { %v4344_v50 = vadd.f32 %v3224_v28, %v289_v49 }
  0xf8   :  { %v438_v52 = vpop.f32.mrb[12].mxu1 }
  0xf9   :  { %v444_v53 = vadd.f32 %v438_v52, %v298_v51  ;;  %v3499_v54 = vpop.f32.mrb[13].mxu1 }
  0xfa   :  { %v441_v55 = vpop.f32.mrb[14].mxu1 }
  0xfb   :  { %3867 = vtanh.f32 %v444_v53  ;;  %v3500_v56 = vpop.f32.mrb[15].mxu1  ;;  %v3235_v60 = vmul.f32 -1.442695, %v444_v53 }
  0xfc   :  { %3869 = vtanh.f32 %v365_v40 }
  0xfd   :  { %3871 = vpow2.f32 %v3235_v60 }
  0xfe   :  { %3873 = vpow2.f32 %v3232_v61  ;;  %v4133_v61 = vmov 6  }
 0x105   :  { %v3868_v58 = vpop.eup %3867 }
 0x106   :  { %454 = vrot.lane.b32.xlu0 %v3868_v58, %s4131_s6  ;;  %v3870_v59 = vpop.eup %3869 }
 0x107   :  { %v3872_v62 = vpop.eup %3871 }
 0x108   :  { %v448_v63 = vadd.f32 1.0, %v3872_v62  ;;  %v3874_v0 = vpop.eup %3873 }
 0x109   :  { %v369_v2 = vadd.f32 1.0, %v3874_v0 }
 0x10a   :  { %375 = vrot.lane.b32.xlu0 %v3870_v59, %s4131_s6  ;;  %3875 = vrcp.f32 %v448_v63 }
 0x10b   :  { %3877 = vrcp.f32 %v369_v2 }
 0x114   :  { %v3876_v7 = vpop.eup %3875 }
 0x115   :  { %v3878_v14 = vpop.eup %3877  ;;  %v452_v21 = vmul.f32 0.0, %v3876_v7 }
 0x116   :  { %v373_v27 = vmul.f32 0.0, %v3878_v14 }
 0x178   :  { %v455_v12 = vpop.permute.xlu0 %454 }
 0x179   :  { %v457_v13 = vmul.f32 %v3876_v7, %v455_v12 }
 0x17b   :  { %459 = vrot.lane.b32.xlu1 %v457_v13, %s4132_s24 }
 0x17c   :  { %v376_v18 = vpop.permute.xlu0 %375 }
 0x17d   :  { %v378_v19 = vmul.f32 %v3878_v14, %v376_v18 }
 0x17f   :  { %97 = vperm.xlu1 %3832, %v4350_v16   ;;  %380 = vrot.lane.b32.xlu0 %v378_v19, %s4132_s24 }
 0x183   :  { %3833 = vset.pattern.permute.xlu1 %v4127_v1 }
 0x184   :  { %69 = vperm.xlu1 %3833, %v4350_v16  }
 0x188   :  { %3834 = vset.pattern.permute.xlu1 %v4133_v61 }
 0x1ed   :  { %v460_v23 = vpop.permute.xlu1 %459 }
 0x1ee   :  { %v4356_v25 = vadd.f32 %v460_v23, %v452_v21  ;;  %v4134_v21 = vmov 1  }
 0x1f0   :  { %3879 = vtanh.f32 %v4356_v25 }
 0x1f1   :  { %v381_v28 = vpop.permute.xlu0 %380 }
 0x1f2   :  { %v4359_v30 = vadd.f32 %v381_v28, %v373_v27 }
 0x1f4   :  { %3881 = vtanh.f32 %v4359_v30 }
 0x1fa   :  { %v3880_v31 = vpop.eup %3879 }
 0x1fb   :  { %465 = vrot.lane.b32.xlu0 %v3880_v31, %s4131_s6 }
 0x1fe   :  { %v3882_v33 = vpop.eup %3881  ;;  %v4364_v35 = vpop.permute.xlu1 %97 }
 0x1ff   :  { %386 = vrot.lane.b32.xlu0 %v3882_v33, %s4131_s6  ;;  %vm99_vm3 = vcmp.eq.s32.totalorder %v4364_v35, 1  ;;  %v3324_v35 = vld [vmem:[%s5350_s17] ss:$0 sm:$0xff] }
 0x200   :  { %v4409_v23 = vsel %vm99_vm3, %v4356_v25, 0.0 }
 0x203   :  { %v4367_v40 = vpop.permute.xlu1 %69 }
 0x204   :  { %vm71_vm4 = vcmp.eq.s32.totalorder %v4367_v40, 1 }
 0x205   :  { %v4417_v33 = vsel %vm71_vm4, %v4359_v30, 0.0 }
 0x26d   :  { %v466_v37 = vpop.permute.xlu0 %465 }
 0x26e   :  { %v468_v38 = vmul.f32 %v3876_v7, %v466_v37 }
 0x270   :  { %v4371_v41 = vsel %vm99_vm3, %v468_v38, 0.0 }
 0x271   :  { %v387_v42 = vpop.permute.xlu0 %386  ;;  %v545_v43 = vpack.c.bf16 %v4371_v41, %v4371_v41 }
 0x272   :  { %v389_v44 = vmul.f32 %v3878_v14, %v387_v42 }
 0x273   :  { %547 = vrot.lane.b32.xlu1 %v545_v43, %s4132_s24 }
 0x274   :  { %v4379_v46 = vsel %vm71_vm4, %v389_v44, 0.0 }
 0x275   :  { %v471_v48 = vpack.c.bf16 %v4379_v46, %v4379_v46 }
 0x277   :  { %473 = vrot.lane.b32.xlu0 %v471_v48, %s4132_s24 }
 0x2e5   :  { %v548_v49 = vpop.permute.xlu1 %547 }
 0x2e6   :  { %3514 = vmatmul.mubr.msk.bf16.vlgmr.msra.gmra.mrb[16].mxu1 %vm321_vm5, %v548_v49 }
 0x2e7   :  { %3526 = vmatpush3.bf16.msra.mxu1 %v4276_v10  ;;  %3529 = vmatprep.mubr.msk.bf16.mxu1 %vm4129_vm1, %v4128_v6 }
 0x2e8   :  { %3527 = vmatprep.subr.bf16.mxu1 %v4128_v6 }
 0x2e9   :  { %v474_v51 = vpop.permute.xlu0 %473 }
 0x2ea   :  { %3506 = vmatmul.mubr.msk.bf16.vlgmr.msra.gmra.mrb[8].mxu0 %vm321_vm5, %v474_v51 }
 0x2eb   :  { %3518 = vmatpush3.bf16.msra.mxu0 %v4263_v8  ;;  %3528 = vmatpush3.bf16.msra.mxu1 %v4286_v11 }
 0x2ec   :  { %3519 = vmatprep.subr.bf16.mxu0 %v4128_v6  ;;  %3521 = vmatprep.mubr.msk.bf16.mxu0 %vm4129_vm1, %v4128_v6 }
 0x2ed   :  { %3541 = vmatprep.subr.bf16.mxu1 %v4128_v6 }
 0x2ef   :  { %3520 = vmatpush3.bf16.msra.mxu0 %v4271_v9 }
 0x2f0   :  { %3533 = vmatprep.subr.bf16.mxu0 %v4128_v6 }
 0x3b9   :  { %v586_v52 = vpop.f32.mrb[16].mxu1 }
 0x3ba   :  { %v592_v53 = vadd.f32 %v586_v52, %v4340_v45  ;;  %v3515_v54 = vpop.f32.mrb[17].mxu1 }
 0x3bb   :  { %v589_v55 = vpop.f32.mrb[18].mxu1 }
 0x3bc   :  { %3883 = vtanh.f32 %v592_v53  ;;  %v3516_v56 = vpop.f32.mrb[19].mxu1  ;;  %v3239_v45 = vmul.f32 -1.442695, %v592_v53 }
 0x3bd   :  { %v512_v57 = vpop.f32.mrb[8].mxu0 }
 0x3be   :  { %v518_v58 = vadd.f32 %v512_v57, %v4330_v29  ;;  %v3507_v59 = vpop.f32.mrb[9].mxu0 }
 0x3bf   :  { %v515_v60 = vpop.f32.mrb[10].mxu0 }
 0x3c0   :  { %3885 = vtanh.f32 %v518_v58  ;;  %v3508_v62 = vpop.f32.mrb[11].mxu0  ;;  %v3237_v2 = vmul.f32 -1.442695, %v518_v58 }
 0x3c1   :  { %3887 = vpow2.f32 %v3239_v45 }
 0x3c2   :  { %3889 = vpow2.f32 %v3237_v2 }
 0x3c6   :  { %v3884_v63 = vpop.eup %3883 }
 0x3c7   :  { %602 = vrot.lane.b32.xlu1 %v3884_v63, %s4131_s6 }
 0x3ca   :  { %v3886_v0 = vpop.eup %3885 }
 0x3cb   :  { %528 = vrot.lane.b32.xlu0 %v3886_v0, %s4131_s6  ;;  %v3888_v3 = vpop.eup %3887 }
 0x3cc   :  { %v596_v4 = vadd.f32 1.0, %v3888_v3  ;;  %v3890_v5 = vpop.eup %3889 }
 0x3cd   :  { %v522_v29 = vadd.f32 1.0, %v3890_v5 }
 0x3ce   :  { %3891 = vrcp.f32 %v596_v4  ;;  %v4135_v4 = vmov 5  }
 0x3cf   :  { %3893 = vrcp.f32 %v522_v29 }
 0x3d8   :  { %v3892_v7 = vpop.eup %3891 }
 0x3d9   :  { %v3894_v14 = vpop.eup %3893  ;;  %v600_v27 = vmul.f32 %v3892_v7, %v4409_v23 }
 0x3da   :  { %v526_v37 = vmul.f32 %v3894_v14, %v4417_v33 }
 0x439   :  { %v603_v12 = vpop.permute.xlu1 %602 }
 0x43a   :  { %v605_v13 = vmul.f32 %v3892_v7, %v603_v12 }
 0x43c   :  { %607 = vrot.lane.b32.xlu1 %v605_v13, %s4132_s24 }
 0x43d   :  { %v529_v18 = vpop.permute.xlu0 %528 }
 0x43e   :  { %v531_v19 = vmul.f32 %v3894_v14, %v529_v18 }
 0x440   :  { %93 = vperm.xlu1 %3834, %v4350_v16   ;;  %533 = vrot.lane.b32.xlu0 %v531_v19, %s4132_s24 }
 0x444   :  { %3835 = vset.pattern.permute.xlu1 %v4134_v21 }
 0x445   :  { %73 = vperm.xlu1 %3835, %v4350_v16  }
 0x449   :  { %3836 = vset.pattern.permute.xlu1 %v4135_v4 }
 0x4ae   :  { %v608_v28 = vpop.permute.xlu1 %607 }
 0x4af   :  { %v4412_v31 = vadd.f32 %v608_v28, %v600_v27 }
 0x4b1   :  { %3895 = vtanh.f32 %v4412_v31 }
 0x4b2   :  { %v534_v38 = vpop.permute.xlu0 %533 }
 0x4b3   :  { %v4421_v42 = vadd.f32 %v534_v38, %v526_v37 }
 0x4b5   :  { %3897 = vtanh.f32 %v4421_v42 }
 0x4bb   :  { %v3896_v25 = vpop.eup %3895 }
 0x4bc   :  { %613 = vrot.lane.b32.xlu0 %v3896_v25, %s4131_s6  ;;  %v4136_v25 = vmov 2  }
 0x4bf   :  { %v3898_v43 = vpop.eup %3897  ;;  %v4426_v44 = vpop.permute.xlu1 %93 }
 0x4c0   :  { %539 = vrot.lane.b32.xlu0 %v3898_v43, %s4131_s6  ;;  %vm95_vm6 = vcmp.eq.s32.totalorder %v4426_v44, 1  ;;  %v3864_v44 = vld [vmem:[%s5349_s16 + $0x8] sm:$0xff]  }
 0x4c1   :  { %v4474_v43 = vsel %vm95_vm6, %v4412_v31, %v4409_v23 }
 0x4c4   :  { %v4429_v49 = vpop.permute.xlu1 %73 }
 0x4c5   :  { %vm75_vm7 = vcmp.eq.s32.totalorder %v4429_v49, 1  ;;  %v3865_v49 = vld [vmem:[%s5349_s16 + $0x10] sm:$0xff]  }
 0x52e   :  { %v614_v48 = vpop.permute.xlu0 %613 }
 0x52f   :  { %v616_v30 = vmul.f32 %v3892_v7, %v614_v48 }
 0x531   :  { %v4434_v51 = vsel %vm95_vm6, %v616_v30, %v4371_v41 }
 0x532   :  { %v540_v52 = vpop.permute.xlu0 %539  ;;  %v693_v53 = vpack.c.bf16 %v4434_v51, %v4434_v51 }
 0x533   :  { %v542_v54 = vmul.f32 %v3894_v14, %v540_v52 }
 0x534   :  { %695 = vrot.lane.b32.xlu1 %v693_v53, %s4132_s24  ;;  %v4483_v53 = vsel %vm75_vm7, %v4421_v42, %v4417_v33 }
 0x535   :  { %v4443_v55 = vsel %vm75_vm7, %v542_v54, %v4379_v46 }
 0x536   :  { %v619_v56 = vpack.c.bf16 %v4443_v55, %v4443_v55 }
 0x538   :  { %621 = vrot.lane.b32.xlu0 %v619_v56, %s4132_s24 }
 0x5a6   :  { %v696_v57 = vpop.permute.xlu1 %695 }
 0x5a7   :  { %3530 = vmatmul.mubr.msk.bf16.vlgmr.msra.gmra.mrb[20].mxu1 %vm321_vm5, %v696_v57 }
 0x5a8   :  { %3542 = vmatpush3.bf16.msra.mxu1 %v4276_v10  ;;  %3545 = vmatprep.mubr.msk.bf16.mxu1 %vm4129_vm1, %v4128_v6 }
 0x5a9   :  { %3543 = vmatprep.subr.bf16.mxu1 %v4128_v6 }
 0x5aa   :  { %v622_v58 = vpop.permute.xlu0 %621 }
 0x5ab   :  { %3522 = vmatmul.mubr.msk.bf16.vlgmr.msra.gmra.mrb[12].mxu0 %vm321_vm5, %v622_v58 }
 0x5ac   :  { %3534 = vmatpush3.bf16.msra.mxu0 %v4263_v8  ;;  %3544 = vmatpush3.bf16.msra.mxu1 %v4286_v11 }
 0x5ad   :  { %3535 = vmatprep.subr.bf16.mxu0 %v4128_v6  ;;  %3537 = vmatprep.mubr.msk.bf16.mxu0 %vm4129_vm1, %v4128_v6 }
 0x5ae   :  { %3557 = vmatprep.subr.bf16.mxu1 %v4128_v6 }
 0x5b0   :  { %3536 = vmatpush3.bf16.msra.mxu0 %v4271_v9 }
 0x5b1   :  { %3549 = vmatprep.subr.bf16.mxu0 %v4128_v6 }
 0x67a   :  { %v734_v59 = vpop.f32.mrb[20].mxu1 }
 0x67b   :  { %v740_v60 = vadd.f32 %v734_v59, %v4344_v50  ;;  %v3531_v61 = vpop.f32.mrb[21].mxu1 }
 0x67c   :  { %v737_v62 = vpop.f32.mrb[22].mxu1 }
 0x67d   :  { %3899 = vtanh.f32 %v740_v60  ;;  %v3532_v63 = vpop.f32.mrb[23].mxu1  ;;  %v3243_v50 = vmul.f32 -1.442695, %v740_v60 }
 0x67e   :  { %v660_v0 = vpop.f32.mrb[12].mxu0 }
 0x67f   :  { %v666_v45 = vadd.f32 %v660_v0, %v4321_v22  ;;  %v3523_v2 = vpop.f32.mrb[13].mxu0 }
 0x680   :  { %v663_v3 = vpop.f32.mrb[14].mxu0 }
 0x681   :  { %3901 = vtanh.f32 %v666_v45  ;;  %v3524_v5 = vpop.f32.mrb[15].mxu0  ;;  %v3241_v12 = vmul.f32 -1.442695, %v666_v45 }
 0x682   :  { %3903 = vpow2.f32 %v3243_v50 }
 0x683   :  { %3905 = vpow2.f32 %v3241_v12 }
 0x687   :  { %v3900_v29 = vpop.eup %3899 }
 0x688   :  { %750 = vrot.lane.b32.xlu1 %v3900_v29, %s4131_s6 }
 0x68b   :  { %v3902_v7 = vpop.eup %3901 }
 0x68c   :  { %676 = vrot.lane.b32.xlu0 %v3902_v7, %s4131_s6  ;;  %v3904_v13 = vpop.eup %3903 }
 0x68d   :  { %v744_v14 = vadd.f32 1.0, %v3904_v13  ;;  %v3906_v18 = vpop.eup %3905 }
 0x68e   :  { %v670_v22 = vadd.f32 1.0, %v3906_v18 }
 0x68f   :  { %3907 = vrcp.f32 %v744_v14 }
 0x690   :  { %3909 = vrcp.f32 %v670_v22  ;;  %v4137_v22 = vmov 4  }
 0x699   :  { %v3908_v19 = vpop.eup %3907 }
 0x69a   :  { %v3910_v28 = vpop.eup %3909  ;;  %v748_v48 = vmul.f32 %v3908_v19, %v4474_v43 }
 0x69b   :  { %v674_v54 = vmul.f32 %v3910_v28, %v4483_v53 }
 0x6fa   :  { %v751_v21 = vpop.permute.xlu1 %750 }
 0x6fb   :  { %v753_v27 = vmul.f32 %v3908_v19, %v751_v21 }
 0x6fd   :  { %755 = vrot.lane.b32.xlu1 %v753_v27, %s4132_s24 }
 0x6fe   :  { %v677_v37 = vpop.permute.xlu0 %676 }
 0x6ff   :  { %v679_v38 = vmul.f32 %v3910_v28, %v677_v37 }
 0x701   :  { %89 = vperm.xlu1 %3836, %v4350_v16   ;;  %681 = vrot.lane.b32.xlu0 %v679_v38, %s4132_s24 }
 0x705   :  { %3837 = vset.pattern.permute.xlu1 %v4136_v25 }
 0x706   :  { %77 = vperm.xlu1 %3837, %v4350_v16  }
 0x70a   :  { %3838 = vset.pattern.permute.xlu1 %v4137_v22 }
 0x76f   :  { %v756_v30 = vpop.permute.xlu1 %755 }
 0x770   :  { %v4477_v52 = vadd.f32 %v756_v30, %v748_v48 }
 0x772   :  { %3911 = vtanh.f32 %v4477_v52 }
 0x773   :  { %v682_v56 = vpop.permute.xlu0 %681 }
 0x774   :  { %v4487_v57 = vadd.f32 %v682_v56, %v674_v54 }
 0x776   :  { %3913 = vtanh.f32 %v4487_v57 }
 0x77c   :  { %v3912_v23 = vpop.eup %3911 }
 0x77d   :  { %761 = vrot.lane.b32.xlu0 %v3912_v23, %s4131_s6 }
 0x780   :  { %v3914_v31 = vpop.eup %3913  ;;  %v4492_v58 = vpop.permute.xlu1 %89 }
 0x781   :  { %687 = vrot.lane.b32.xlu0 %v3914_v31, %s4131_s6  ;;  %vm91_vm8 = vcmp.eq.s32.totalorder %v4492_v58, 1 }
 0x785   :  { %v4495_v42 = vpop.permute.xlu1 %77 }
 0x786   :  { %vm79_vm9 = vcmp.eq.s32.totalorder %v4495_v42, 1 }
 0x7ef   :  { %v762_v59 = vpop.permute.xlu0 %761 }
 0x7f0   :  { %v764_v33 = vmul.f32 %v3908_v19, %v762_v59  ;;  %v4138_v59 = vmov 3  }
 0x7f2   :  { %v4500_v60 = vsel %vm91_vm8, %v764_v33, %v4434_v51  ;;  %v4540_v33 = vsel %vm91_vm8, %v4477_v52, %v4474_v43 }
 0x7f3   :  { %v688_v61 = vpop.permute.xlu0 %687  ;;  %v841_v62 = vpack.c.bf16 %v4500_v60, %v4500_v60 }
 0x7f4   :  { %v690_v63 = vmul.f32 %v3910_v28, %v688_v61 }
 0x7f5   :  { %843 = vrot.lane.b32.xlu1 %v841_v62, %s4132_s24 }
 0x7f6   :  { %v4509_v0 = vsel %vm79_vm9, %v690_v63, %v4443_v55 }
 0x7f7   :  { %v767_v45 = vpack.c.bf16 %v4509_v0, %v4509_v0 }
 0x7f9   :  { %769 = vrot.lane.b32.xlu0 %v767_v45, %s4132_s24  ;;  %v4549_v45 = vsel %vm79_vm9, %v4487_v57, %v4483_v53 }
 0x867   :  { %v844_v2 = vpop.permute.xlu1 %843 }
 0x868   :  { %3546 = vmatmul.mubr.msk.bf16.vlgmr.msra.gmra.mrb[24].mxu1 %vm321_vm5, %v844_v2 }
 0x869   :  { %3558 = vmatpush3.bf16.msra.mxu1 %v4276_v10  ;;  %3561 = vmatprep.mubr.msk.bf16.mxu1 %vm4129_vm1, %v4128_v6 }
 0x86a   :  { %3559 = vmatprep.subr.bf16.mxu1 %v4128_v6 }
 0x86b   :  { %v770_v3 = vpop.permute.xlu0 %769 }
 0x86c   :  { %3538 = vmatmul.mubr.msk.bf16.vlgmr.msra.gmra.mrb[16].mxu0 %vm321_vm5, %v770_v3 }
 0x86d   :  { %3550 = vmatpush3.bf16.msra.mxu0 %v4263_v8  ;;  %3560 = vmatpush3.bf16.msra.mxu1 %v4286_v11 }
 0x86e   :  { %3551 = vmatprep.subr.bf16.mxu0 %v4128_v6  ;;  %3553 = vmatprep.mubr.msk.bf16.mxu0 %vm4129_vm1, %v4128_v6 }
 0x86f   :  { %3573 = vmatprep.subr.bf16.mxu1 %v4128_v6 }
 0x871   :  { %3552 = vmatpush3.bf16.msra.mxu0 %v4271_v9 }
 0x872   :  { %3565 = vmatprep.subr.bf16.mxu0 %v4128_v6 }
 0x93b   :  { %v882_v4 = vpop.f32.mrb[24].mxu1 }
 0x93c   :  { %v888_v5 = vadd.f32 %v882_v4, %v4342_v47  ;;  %v3547_v29 = vpop.f32.mrb[25].mxu1 }
 0x93d   :  { %v885_v7 = vpop.f32.mrb[26].mxu1 }
 0x93e   :  { %3915 = vtanh.f32 %v888_v5  ;;  %v3548_v50 = vpop.f32.mrb[27].mxu1  ;;  %v3247_v47 = vmul.f32 -1.442695, %v888_v5 }
 0x93f   :  { %v808_v12 = vpop.f32.mrb[16].mxu0 }
 0x940   :  { %v814_v13 = vadd.f32 %v808_v12, %v4325_v26  ;;  %v3539_v14 = vpop.f32.mrb[17].mxu0 }
 0x941   :  { %v811_v18 = vpop.f32.mrb[18].mxu0 }
 0x942   :  { %3917 = vtanh.f32 %v814_v13  ;;  %v3540_v19 = vpop.f32.mrb[19].mxu0  ;;  %v3245_v28 = vmul.f32 -1.442695, %v814_v13 }
 0x943   :  { %3919 = vpow2.f32 %v3247_v47 }
 0x944   :  { %3921 = vpow2.f32 %v3245_v28 }
 0x948   :  { %v3916_v21 = vpop.eup %3915 }
 0x949   :  { %898 = vrot.lane.b32.xlu1 %v3916_v21, %s4131_s6 }
 0x94c   :  { %v3918_v27 = vpop.eup %3917 }
 0x94d   :  { %824 = vrot.lane.b32.xlu0 %v3918_v27, %s4131_s6  ;;  %v3920_v37 = vpop.eup %3919 }
 0x94e   :  { %v892_v38 = vadd.f32 1.0, %v3920_v37  ;;  %v3922_v25 = vpop.eup %3921 }
 0x94f   :  { %v818_v26 = vadd.f32 1.0, %v3922_v25 }
 0x950   :  { %3923 = vrcp.f32 %v892_v38 }
 0x951   :  { %3925 = vrcp.f32 %v818_v26 }
 0x95a   :  { %v3924_v48 = vpop.eup %3923 }
 0x95b   :  { %v3926_v56 = vpop.eup %3925  ;;  %v896_v61 = vmul.f32 %v3924_v48, %v4540_v33 }
 0x9bb   :  { %v899_v30 = vpop.permute.xlu1 %898 }
 0x9bc   :  { %v901_v54 = vmul.f32 %v3924_v48, %v899_v30 }
 0x9be   :  { %903 = vrot.lane.b32.xlu1 %v901_v54, %s4132_s24 }
 0x9bf   :  { %v825_v23 = vpop.permute.xlu0 %824 }
 0x9c0   :  { %v827_v31 = vmul.f32 %v3926_v56, %v825_v23 }
 0x9c2   :  { %85 = vperm.xlu1 %3838, %v4350_v16   ;;  %829 = vrot.lane.b32.xlu0 %v827_v31, %s4132_s24 }
 0x9c6   :  { %3839 = vset.pattern.permute.xlu1 %v4138_v59 }
 0x9c7   :  { %81 = vperm.xlu1 %3839, %v4350_v16   ;;  %v822_v16 = vmul.f32 %v3926_v56, %v4549_v45 }
 0xa30   :  { %v904_v62 = vpop.permute.xlu1 %903 }
 0xa31   :  { %v4543_v63 = vadd.f32 %v904_v62, %v896_v61 }
 0xa33   :  { %3927 = vtanh.f32 %v4543_v63 }
 0xa34   :  { %v830_v2 = vpop.permute.xlu0 %829 }
 0xa35   :  { %v4553_v3 = vadd.f32 %v830_v2, %v822_v16 }
 0xa37   :  { %3929 = vtanh.f32 %v4553_v3 }
 0xa3d   :  { %v3928_v43 = vpop.eup %3927 }
 0xa3e   :  { %909 = vrot.lane.b32.xlu0 %v3928_v43, %s4131_s6 }
 0xa41   :  { %v3930_v52 = vpop.eup %3929  ;;  %v4558_v4 = vpop.permute.xlu1 %85 }
 0xa42   :  { %835 = vrot.lane.b32.xlu0 %v3930_v52, %s4131_s6  ;;  %vm87_vm10 = vcmp.eq.s32.totalorder %v4558_v4, 1 }
 0xa46   :  { %v4561_v57 = vpop.permute.xlu1 %81 }
 0xa47   :  { %vm83_vm11 = vcmp.eq.s32.totalorder %v4561_v57, 1 }
 0xab0   :  { %v910_v5 = vpop.permute.xlu0 %909 }
 0xab1   :  { %v912_v53 = vmul.f32 %v3924_v48, %v910_v5  ;;  %v4604_v5 = vsel %vm87_vm10, %v4543_v63, %v4540_v33 }
 0xab3   :  { %v4566_v29 = vsel %vm87_vm10, %v912_v53, %v4500_v60 }
 0xab4   :  { %v836_v7 = vpop.permute.xlu0 %835  ;;  %v989_v50 = vpack.c.bf16 %v4566_v29, %v4566_v29 }
 0xab5   :  { %v838_v12 = vmul.f32 %v3926_v56, %v836_v7 }
 0xab6   :  { %991 = vrot.lane.b32.xlu1 %v989_v50, %s4132_s24 }
 0xab7   :  { %v4575_v13 = vsel %vm83_vm11, %v838_v12, %v4509_v0  ;;  %v4613_v12 = vsel %vm83_vm11, %v4553_v3, %v4549_v45 }
 0xab8   :  { %v915_v14 = vpack.c.bf16 %v4575_v13, %v4575_v13 }
 0xaba   :  { %917 = vrot.lane.b32.xlu0 %v915_v14, %s4132_s24 }
 0xb28   :  { %v992_v18 = vpop.permute.xlu1 %991 }
 0xb29   :  { %3562 = vmatmul.mubr.msk.bf16.vlgmr.msra.gmra.mrb[28].mxu1 %vm321_vm5, %v992_v18 }
 0xb2a   :  { %3574 = vmatpush3.bf16.msra.mxu1 %v4276_v10  ;;  %3577 = vmatprep.mubr.msk.bf16.mxu1 %vm4129_vm1, %v4128_v6 }
 0xb2b   :  { %3575 = vmatprep.subr.bf16.mxu1 %v4128_v6 }
 0xb2c   :  { %v918_v22 = vpop.permute.xlu0 %917 }
 0xb2d   :  { %3554 = vmatmul.mubr.msk.bf16.vlgmr.msra.gmra.mrb[20].mxu0 %vm321_vm5, %v918_v22 }
 0xb2e   :  { %3566 = vmatpush3.bf16.msra.mxu0 %v4263_v8  ;;  %3576 = vmatpush3.bf16.msra.mxu1 %v4286_v11 }
 0xb2f   :  { %3567 = vmatprep.subr.bf16.mxu0 %v4128_v6  ;;  %3569 = vmatprep.mubr.msk.bf16.mxu0 %vm4129_vm1, %v4128_v6 }
 0xb30   :  { %3589 = vmatprep.subr.bf16.mxu1 %v4128_v6 }
 0xb32   :  { %3568 = vmatpush3.bf16.msra.mxu0 %v4271_v9 }
 0xb33   :  { %3581 = vmatprep.subr.bf16.mxu0 %v4128_v6 }
 0xbfc   :  { %v1030_v19 = vpop.f32.mrb[28].mxu1 }
 0xbfd   :  { %v1036_v21 = vadd.f32 %v1030_v19, %v4336_v36  ;;  %v3563_v27 = vpop.f32.mrb[29].mxu1 }
 0xbfe   :  { %v1033_v47 = vpop.f32.mrb[30].mxu1 }
 0xbff   :  { %3931 = vtanh.f32 %v1036_v21  ;;  %v3564_v28 = vpop.f32.mrb[31].mxu1  ;;  %v3251_v56 = vmul.f32 -1.442695, %v1036_v21 }
 0xc00   :  { %v956_v37 = vpop.f32.mrb[20].mxu0 }
 0xc01   :  { %v962_v38 = vadd.f32 %v956_v37, %v4317_v17  ;;  %v3555_v25 = vpop.f32.mrb[21].mxu0 }
 0xc02   :  { %v959_v26 = vpop.f32.mrb[22].mxu0 }
 0xc03   :  { %3933 = vtanh.f32 %v962_v38  ;;  %v3556_v48 = vpop.f32.mrb[23].mxu0  ;;  %v3249_v36 = vmul.f32 -1.442695, %v962_v38 }
 0xc04   :  { %3935 = vpow2.f32 %v3251_v56 }
 0xc05   :  { %3937 = vpow2.f32 %v3249_v36 }
 0xc09   :  { %v3932_v30 = vpop.eup %3931 }
 0xc0a   :  { %1046 = vrot.lane.b32.xlu1 %v3932_v30, %s4131_s6 }
 0xc0d   :  { %v3934_v54 = vpop.eup %3933 }
 0xc0e   :  { %972 = vrot.lane.b32.xlu0 %v3934_v54, %s4131_s6  ;;  %v3936_v23 = vpop.eup %3935 }
 0xc0f   :  { %v1040_v31 = vadd.f32 1.0, %v3936_v23  ;;  %v3938_v59 = vpop.eup %3937 }
 0xc10   :  { %v966_v61 = vadd.f32 1.0, %v3938_v59 }
 0xc11   :  { %3939 = vrcp.f32 %v1040_v31 }
 0xc12   :  { %3941 = vrcp.f32 %v966_v61 }
 0xc1b   :  { %v3940_v17 = vpop.eup %3939 }
 0xc1c   :  { %v3942_v2 = vpop.eup %3941  ;;  %v1044_v53 = vmul.f32 %v3940_v17, %v4604_v5 }
 0xc1d   :  { %v970_v14 = vmul.f32 %v3942_v2, %v4613_v12 }
 0xc7c   :  { %v1047_v62 = vpop.permute.xlu1 %1046 }
 0xc7d   :  { %v1049_v16 = vmul.f32 %v3940_v17, %v1047_v62 }
 0xc7f   :  { %1051 = vrot.lane.b32.xlu1 %v1049_v16, %s4132_s24 }
 0xc80   :  { %v973_v43 = vpop.permute.xlu0 %972 }
 0xc81   :  { %v975_v52 = vmul.f32 %v3942_v2, %v973_v43 }
 0xc83   :  { %977 = vrot.lane.b32.xlu0 %v975_v52, %s4132_s24 }
 0xcf1   :  { %v1052_v7 = vpop.permute.xlu1 %1051 }
 0xcf2   :  { %v4607_v50 = vadd.f32 %v1052_v7, %v1044_v53 }
 0xcf4   :  { %3943 = vtanh.f32 %v4607_v50 }
 0xcf5   :  { %v978_v18 = vpop.permute.xlu0 %977 }
 0xcf6   :  { %v4617_v22 = vadd.f32 %v978_v18, %v970_v14  ;;  %v4662_v14 = vsel %vm83_vm11, %v4607_v50, %v4604_v5 }
 0xcf8   :  { %3945 = vtanh.f32 %v4617_v22 }
 0xcfe   :  { %v3944_v33 = vpop.eup %3943 }
 0xcff   :  { %1057 = vrot.lane.b32.xlu1 %v3944_v33, %s4131_s6 }
 0xd02   :  { %v3946_v63 = vpop.eup %3945 }
 0xd03   :  { %983 = vrot.lane.b32.xlu0 %v3946_v63, %s4131_s6 }
 0xd71   :  { %v1058_v19 = vpop.permute.xlu1 %1057 }
 0xd72   :  { %v1060_v21 = vmul.f32 %v3940_v17, %v1058_v19  ;;  %v4671_v19 = vsel %vm87_vm10, %v4617_v22, %v4613_v12 }
 0xd74   :  { %v4625_v45 = vsel %vm83_vm11, %v1060_v21, %v4566_v29 }
 0xd75   :  { %v984_v3 = vpop.permute.xlu0 %983  ;;  %v1137_v27 = vpack.c.bf16 %v4625_v45, %v4625_v45 }
 0xd76   :  { %v986_v47 = vmul.f32 %v3942_v2, %v984_v3 }
 0xd77   :  { %1139 = vrot.lane.b32.xlu1 %v1137_v27, %s4132_s24 }
 0xd78   :  { %v4633_v28 = vsel %vm87_vm10, %v986_v47, %v4575_v13 }
 0xd79   :  { %v1063_v37 = vpack.c.bf16 %v4633_v28, %v4633_v28 }
 0xd7b   :  { %1065 = vrot.lane.b32.xlu0 %v1063_v37, %s4132_s24 }
 0xde9   :  { %v1140_v38 = vpop.permute.xlu1 %1139 }
 0xdea   :  { %3578 = vmatmul.mubr.msk.bf16.vlgmr.msra.gmra.mrb[32].mxu1 %vm321_vm5, %v1140_v38 }
 0xdeb   :  { %3590 = vmatpush3.bf16.msra.mxu1 %v4276_v10  ;;  %3593 = vmatprep.mubr.msk.bf16.mxu1 %vm4129_vm1, %v4128_v6 }
 0xdec   :  { %3591 = vmatprep.subr.bf16.mxu1 %v4128_v6 }
 0xded   :  { %v1066_v25 = vpop.permute.xlu0 %1065 }
 0xdee   :  { %3570 = vmatmul.mubr.msk.bf16.vlgmr.msra.gmra.mrb[24].mxu0 %vm321_vm5, %v1066_v25 }
 0xdef   :  { %3582 = vmatpush3.bf16.msra.mxu0 %v4263_v8  ;;  %3592 = vmatpush3.bf16.msra.mxu1 %v4286_v11 }
 0xdf0   :  { %3583 = vmatprep.subr.bf16.mxu0 %v4128_v6  ;;  %3585 = vmatprep.mubr.msk.bf16.mxu0 %vm4129_vm1, %v4128_v6 }
 0xdf1   :  { %3605 = vmatprep.subr.bf16.mxu1 %v4128_v6 }
 0xdf3   :  { %3584 = vmatpush3.bf16.msra.mxu0 %v4271_v9 }
 0xdf4   :  { %3597 = vmatprep.subr.bf16.mxu0 %v4128_v6 }
 0xebd   :  { %v1178_v10 = vpop.f32.mrb[32].mxu1 }
 0xebe   :  { %v1184_v26 = vadd.f32 %v1178_v10, %v4332_v32  ;;  %v3579_v48 = vpop.f32.mrb[33].mxu1 }
 0xebf   :  { %v1181_v30 = vpop.f32.mrb[34].mxu1 }
 0xec0   :  { %3947 = vtanh.f32 %v1184_v26  ;;  %v3580_v8 = vpop.f32.mrb[35].mxu1  ;;  %v3255_v59 = vmul.f32 -1.442695, %v1184_v26  ;;  %v4123_v30 = vld [vmem:[%s5336_s7] sm:$0xff]  }
 0xec1   :  { %v1104_v54 = vpop.f32.mrb[24].mxu0 }
 0xec2   :  { %v1110_v11 = vadd.f32 %v1104_v54, %v4323_v24  ;;  %v3571_v56 = vpop.f32.mrb[25].mxu0  ;;  %v4124_v54 = vld [vmem:[%s5337_s4] sm:$0xff]  }
 0xec3   :  { %v1107_v36 = vpop.f32.mrb[26].mxu0  ;;  %v4126_v56 = vld [vmem:[%s5337_s4 + $0x8] sm:$0xff]  }
 0xec4   :  { %3949 = vtanh.f32 %v1110_v11  ;;  %v3572_v23 = vpop.f32.mrb[27].mxu0  ;;  %v3253_v32 = vmul.f32 -1.442695, %v1110_v11  ;;  %v4125_v11 = vld [vmem:[%s5336_s7 + $0x8] sm:$0xff]  }
 0xec5   :  { %3951 = vpow2.f32 %v3255_v59 }
 0xec6   :  { %3953 = vpow2.f32 %v3253_v32 }
 0xeca   :  { %v3948_v31 = vpop.eup %3947 }
 0xecb   :  { %1194 = vrot.lane.b32.xlu1 %v3948_v31, %s4131_s6 }
 0xece   :  { %v3950_v9 = vpop.eup %3949 }
 0xecf   :  { %1120 = vrot.lane.b32.xlu0 %v3950_v9, %s4131_s6  ;;  %v3952_v61 = vpop.eup %3951 }
 0xed0   :  { %v1188_v17 = vadd.f32 1.0, %v3952_v61  ;;  %v3954_v62 = vpop.eup %3953 }
 0xed1   :  { %v1114_v16 = vadd.f32 1.0, %v3954_v62 }
 0xed2   :  { %3955 = vrcp.f32 %v1188_v17 }
 0xed3   :  { %3957 = vrcp.f32 %v1114_v16 }
 0xedc   :  { %v3956_v24 = vpop.eup %3955 }
 0xedd   :  { %v3958_v52 = vpop.eup %3957  ;;  %v1192_v18 = vmul.f32 %v3956_v24, %v4662_v14 }
 0xede   :  { %v1118_v21 = vmul.f32 %v3958_v52, %v4671_v19 }
 0xf3d   :  { %v1195_v2 = vpop.permute.xlu1 %1194 }
 0xf3e   :  { %v1197_v43 = vmul.f32 %v3956_v24, %v1195_v2 }
 0xf40   :  { %1199 = vrot.lane.b32.xlu1 %v1197_v43, %s4132_s24 }
 0xf41   :  { %v1121_v53 = vpop.permute.xlu0 %1120 }
 0xf42   :  { %v1123_v7 = vmul.f32 %v3958_v52, %v1121_v53 }
 0xf44   :  { %1125 = vrot.lane.b32.xlu0 %v1123_v7, %s4132_s24 }
 0xfb2   :  { %v1200_v33 = vpop.permute.xlu1 %1199 }
 0xfb3   :  { %v4665_v63 = vadd.f32 %v1200_v33, %v1192_v18 }
 0xfb5   :  { %3959 = vtanh.f32 %v4665_v63 }
 0xfb6   :  { %v1126_v3 = vpop.permute.xlu0 %1125 }
 0xfb7   :  { %v4675_v27 = vadd.f32 %v1126_v3, %v1118_v21 }
 0xfb9   :  { %3961 = vtanh.f32 %v4675_v27 }
 0xfbf   :  { %v3960_v5 = vpop.eup %3959 }
 0xfc0   :  { %1205 = vrot.lane.b32.xlu1 %v3960_v5, %s4131_s6 }
 0xfc3   :  { %v3962_v50 = vpop.eup %3961 }
 0xfc4   :  { %1131 = vrot.lane.b32.xlu0 %v3962_v50, %s4131_s6 }
0x1032   :  { %v1206_v47 = vpop.permute.xlu1 %1205 }
0x1033   :  { %v1208_v37 = vmul.f32 %v3956_v24, %v1206_v47  ;;  %v4726_v47 = vsel %vm79_vm9, %v4665_v63, %v4662_v14 }
0x1035   :  { %v4683_v12 = vsel %vm79_vm9, %v1208_v37, %v4625_v45 }
0x1036   :  { %v1132_v22 = vpop.permute.xlu0 %1131  ;;  %v1285_v38 = vpack.c.bf16 %v4683_v12, %v4683_v12 }
0x1037   :  { %v1134_v25 = vmul.f32 %v3958_v52, %v1132_v22 }
0x1038   :  { %1287 = vrot.lane.b32.xlu1 %v1285_v38, %s4132_s24 }
0x1039   :  { %v4691_v10 = vsel %vm91_vm8, %v1134_v25, %v4633_v28  ;;  %v4733_v25 = vsel %vm91_vm8, %v4675_v27, %v4671_v19 }
0x103a   :  { %v1211_v26 = vpack.c.bf16 %v4691_v10, %v4691_v10 }
0x103c   :  { %1213 = vrot.lane.b32.xlu0 %v1211_v26, %s4132_s24 }
0x10aa   :  { %v1288_v48 = vpop.permute.xlu1 %1287 }
0x10ab   :  { %3594 = vmatmul.mubr.msk.bf16.vlgmr.msra.gmra.mrb[36].mxu1 %vm321_vm5, %v1288_v48 }
0x10ac   :  { %3606 = vmatpush3.bf16.msra.mxu1 %v4123_v30  ;;  %3609 = vmatprep.mubr.msk.bf16.mxu1 %vm4129_vm1, %v4128_v6 }
0x10ad   :  { %3607 = vmatprep.subr.bf16.mxu1 %v4128_v6 }
0x10ae   :  { %v1214_v8 = vpop.permute.xlu0 %1213 }
0x10af   :  { %3586 = vmatmul.mubr.msk.bf16.vlgmr.msra.gmra.mrb[28].mxu0 %vm321_vm5, %v1214_v8 }
0x10b0   :  { %3598 = vmatpush3.bf16.msra.mxu0 %v4124_v54  ;;  %3608 = vmatpush3.bf16.msra.mxu1 %v4125_v11 }
0x10b1   :  { %3599 = vmatprep.subr.bf16.mxu0 %v4128_v6  ;;  %3601 = vmatprep.mubr.msk.bf16.mxu0 %vm4129_vm1, %v4128_v6 }
0x10b4   :  { %3600 = vmatpush3.bf16.msra.mxu0 %v4126_v56 }
0x117e   :  { %v1326_v36 = vpop.f32.mrb[36].mxu1 }
0x117f   :  { %v1332_v23 = vadd.f32 %v1326_v36, %v4338_v39  ;;  %v3595_v31 = vpop.f32.mrb[37].mxu1 }
0x1180   :  { %v1329_v9 = vpop.f32.mrb[38].mxu1 }
0x1181   :  { %3963 = vtanh.f32 %v1332_v23  ;;  %v3596_v59 = vpop.f32.mrb[39].mxu1  ;;  %v3259_v43 = vmul.f32 -1.442695, %v1332_v23 }
0x1182   :  { %v1252_v32 = vpop.f32.mrb[28].mxu0 }
0x1183   :  { %v1258_v61 = vadd.f32 %v1252_v32, %v4315_v15  ;;  %v3587_v17 = vpop.f32.mrb[29].mxu0 }
0x1184   :  { %v1255_v62 = vpop.f32.mrb[30].mxu0 }
0x1185   :  { %3965 = vtanh.f32 %v1258_v61  ;;  %v3588_v16 = vpop.f32.mrb[31].mxu0  ;;  %v3257_v39 = vmul.f32 -1.442695, %v1258_v61 }
0x1186   :  { %3967 = vpow2.f32 %v3259_v43 }
0x1187   :  { %3969 = vpow2.f32 %v3257_v39 }
0x118b   :  { %v3964_v24 = vpop.eup %3963 }
0x118c   :  { %1342 = vrot.lane.b32.xlu1 %v3964_v24, %s4131_s6 }
0x118f   :  { %v3966_v2 = vpop.eup %3965 }
0x1190   :  { %1268 = vrot.lane.b32.xlu0 %v3966_v2, %s4131_s6  ;;  %v3968_v52 = vpop.eup %3967 }
0x1191   :  { %v1336_v53 = vadd.f32 1.0, %v3968_v52  ;;  %v3970_v7 = vpop.eup %3969 }
0x1192   :  { %v1262_v18 = vadd.f32 1.0, %v3970_v7 }
0x1193   :  { %3971 = vrcp.f32 %v1336_v53 }
0x1194   :  { %3973 = vrcp.f32 %v1262_v18 }
0x119d   :  { %v3972_v15 = vpop.eup %3971 }
0x119e   :  { %v3974_v3 = vpop.eup %3973  ;;  %v1340_v37 = vmul.f32 %v3972_v15, %v4726_v47 }
0x119f   :  { %v1266_v26 = vmul.f32 %v3974_v3, %v4733_v25 }
0x11fe   :  { %v1343_v33 = vpop.permute.xlu1 %1342 }
0x11ff   :  { %v1345_v21 = vmul.f32 %v3972_v15, %v1343_v33 }
0x1201   :  { %1347 = vrot.lane.b32.xlu1 %v1345_v21, %s4132_s24 }
0x1202   :  { %v1269_v5 = vpop.permute.xlu0 %1268 }
0x1203   :  { %v1271_v50 = vmul.f32 %v3974_v3, %v1269_v5 }
0x1205   :  { %1273 = vrot.lane.b32.xlu0 %v1271_v50, %s4132_s24 }
0x1273   :  { %v1348_v22 = vpop.permute.xlu1 %1347 }
0x1274   :  { %v1350_v38 = vadd.f32 %v1348_v22, %v1340_v37 }
0x1276   :  { %3975 = vtanh.f32 %v1350_v38 }
0x1277   :  { %v1274_v48 = vpop.permute.xlu0 %1273 }
0x1278   :  { %v1276_v30 = vadd.f32 %v1274_v48, %v1266_v26  ;;  %v1358_v26 = vsel %vm75_vm7, %v1350_v38, %v4726_v47  ;;  %v3851_v47 = vld [vmem:[%s5341_s9] sm:$0xff]   ;;  %v1510_v38 = vpack.c.bf16 %v4625_v45, %v4683_v12  ;;  %v1512_v45 = vpack.c.bf16 %v4371_v41, %v4434_v51 }
0x1279   :  { %3613 = vmatprep.subr.bf16.mxu0 %v3851_v47 }
0x127a   :  { %3977 = vtanh.f32 %v1276_v30 }
0x1280   :  { %v3976_v8 = vpop.eup %3975 }
0x1281   :  { %1353 = vrot.lane.b32.xlu1 %v3976_v8, %s4131_s6 }
0x1284   :  { %v3978_v14 = vpop.eup %3977 }
0x1285   :  { %1279 = vrot.lane.b32.xlu0 %v3978_v14, %s4131_s6 }
0x12f3   :  { %v1354_v63 = vpop.permute.xlu1 %1353 }
0x12f4   :  { %v1356_v54 = vmul.f32 %v3972_v15, %v1354_v63  ;;  %v1284_v63 = vsel %vm95_vm6, %v1276_v30, %v4733_v25  ;;  %v3852_v25 = vld [vmem:[%s5342_s13] sm:$0xff]   ;;  %v3853_v30 = vld [vmem:[%s5341_s9 + $0x8] sm:$0xff]  }
0x12f5   :  { %3637 = vmatprep.subr.bf16.mxu1 %v3852_v25 }
0x12f6   :  { %v4741_v11 = vsel %vm75_vm7, %v1356_v54, %v4683_v12  ;;  %v1506_v12 = vpack.c.bf16 %v4575_v13, %v4509_v0 }
0x12f7   :  { %v1280_v19 = vpop.permute.xlu0 %1279  ;;  %v1432_v27 = vpack.c.bf16 %v4741_v11, %v4741_v11 }
0x12f8   :  { %v1282_v56 = vmul.f32 %v3974_v3, %v1280_v19 }
0x12f9   :  { %1434 = vrot.lane.b32.xlu1 %v1432_v27, %s4132_s24 }
0x12fa   :  { %v4749_v36 = vsel %vm95_vm6, %v1282_v56, %v4691_v10 }
0x12fb   :  { %v1359_v23 = vpack.c.bf16 %v4749_v36, %v4749_v36 }
0x12fd   :  { %1361 = vrot.lane.b32.xlu0 %v1359_v23, %s4132_s24 }
0x136b   :  { %v1435_v31 = vpop.permute.xlu1 %1434 }
0x136c   :  { %3610 = vmatmul.mubr.msk.bf16.vlgmr.msra.gmra.mrb[40].mxu1 %vm321_vm5, %v1435_v31  ;;  %v3854_v31 = vld [vmem:[%s5342_s13 + $0x8] sm:$0xff]  }
0x136d   :  { %3638 = vmatpush3.bf16.msra.mxu1 %v3852_v25 }
0x136e   :  { %3639 = vmatprep.subr.bf16.mxu1 %v3854_v31 }
0x136f   :  { %v1362_v9 = vpop.permute.xlu0 %1361 }
0x1370   :  { %3602 = vmatmul.mubr.msk.bf16.vlgmr.msra.gmra.mrb[32].mxu0 %vm321_vm5, %v1362_v9  ;;  %v3855_v9 = vld [vmem:[%s5343_s8] sm:$0xff]  }
0x1371   :  { %3614 = vmatpush3.bf16.msra.mxu0 %v3851_v47  ;;  %3640 = vmatpush3.bf16.msra.mxu1 %v3854_v31 }
0x1372   :  { %3615 = vmatprep.subr.bf16.mxu0 %v3853_v30 }
0x1375   :  { %3616 = vmatpush3.bf16.msra.mxu0 %v3853_v30 }
0x1376   :  { %3625 = vmatprep.subr.bf16.mxu0 %v3855_v9 }
0x143f   :  { %v1473_v59 = vpop.f32.mrb[40].mxu1 }
0x1440   :  { %v1479_v32 = vadd.f32 %v1473_v59, %v4334_v34  ;;  %v3611_v61 = vpop.f32.mrb[41].mxu1  ;;  %v3856_v59 = vld [vmem:[%s5344_s12] sm:$0xff]  }
0x1441   :  { %v1476_v17 = vpop.f32.mrb[42].mxu1  ;;  %3649 = vmatprep.subr.bf16.mxu1 %v3856_v59 }
0x1442   :  { %3979 = vtanh.f32 %v1479_v32  ;;  %v3612_v62 = vpop.f32.mrb[43].mxu1  ;;  %v3263_v7 = vmul.f32 -1.442695, %v1479_v32 }
0x1443   :  { %v1400_v16 = vpop.f32.mrb[32].mxu0  ;;  %v1511_v62 = vpack.c.bf16 %v4500_v60, %v4566_v29  ;;  %v3857_v60 = vld [vmem:[%s5343_s8 + $0x8] sm:$0xff]  }
0x1444   :  { %v1406_v24 = vadd.f32 %v1400_v16, %v4319_v20  ;;  %v3603_v2 = vpop.f32.mrb[33].mxu0  ;;  %v3858_v29 = vld [vmem:[%s5344_s12 + $0x8] sm:$0xff]  }
0x1445   :  { %v1403_v43 = vpop.f32.mrb[34].mxu0 }
0x1446   :  { %3981 = vtanh.f32 %v1406_v24  ;;  %v3604_v39 = vpop.f32.mrb[35].mxu0  ;;  %v3261_v34 = vmul.f32 -1.442695, %v1406_v24  ;;  %v1505_v24 = vpack.c.bf16 %v4443_v55, %v4379_v46  ;;  %v4842_v43 = vld [vmem:[%s5346_s15] sm:$0xff]  }
0x1447   :  { %3983 = vpow2.f32 %v3263_v7  ;;  %v4858_v7 = vld [vmem:[%s5346_s15 + $0x8] sm:$0xff]  }
0x1448   :  { %3985 = vpow2.f32 %v3261_v34 }
0x144c   :  { %v3980_v52 = vpop.eup %3979 }
0x144d   :  { %1489 = vrot.lane.b32.xlu1 %v3980_v52, %s4131_s6 }
0x1450   :  { %v3982_v53 = vpop.eup %3981 }
0x1451   :  { %1416 = vrot.lane.b32.xlu0 %v3982_v53, %s4131_s6  ;;  %v3984_v18 = vpop.eup %3983  ;;  %v4853_v53 = vld [vmem:[%s5345_s11 + $0x8] sm:$0xff]  }
0x1452   :  { %v1483_v15 = vadd.f32 1.0, %v3984_v18  ;;  %v3986_v33 = vpop.eup %3985  ;;  %v3289_v18 = vld [vmem:[%s5348_s14] ss:$0 sm:$0xff] }
0x1453   :  { %v1410_v21 = vadd.f32 1.0, %v3986_v33 }
0x1454   :  { %3987 = vrcp.f32 %v1483_v15 }
0x1455   :  { %3989 = vrcp.f32 %v1410_v21 }
0x145e   :  { %v3988_v20 = vpop.eup %3987 }
0x145f   :  { %v3990_v50 = vpop.eup %3989  ;;  %v1487_v48 = vmul.f32 %v3988_v20, %v1358_v26 }
0x1460   :  { %v1414_v54 = vmul.f32 %v3990_v50, %v1284_v63 }
0x14bf   :  { %v1490_v3 = vpop.permute.xlu1 %1489 }
0x14c0   :  { %v1492_v5 = vmul.f32 %v3988_v20, %v1490_v3 }
0x14c2   :  { %1494 = vrot.lane.b32.xlu1 %v1492_v5, %s4132_s24 }
0x14c3   :  { %v1417_v37 = vpop.permute.xlu0 %1416 }
0x14c4   :  { %v1419_v22 = vmul.f32 %v3990_v50, %v1417_v37 }
0x14c6   :  { %1421 = vrot.lane.b32.xlu0 %v1419_v22, %s4132_s24 }
0x1534   :  { %v1495_v8 = vpop.permute.xlu1 %1494 }
0x1535   :  { %v1497_v14 = vadd.f32 %v1495_v8, %v1487_v48 }
0x1537   :  { %3991 = vtanh.f32 %v1497_v14 }
0x1538   :  { %v1422_v19 = vpop.permute.xlu0 %1421 }
0x1539   :  { %v1424_v27 = vadd.f32 %v1422_v19, %v1414_v54 }
0x153b   :  { %3993 = vtanh.f32 %v1424_v27 }
0x1541   :  { %v3992_v56 = vpop.eup %3991 }
0x1542   :  { %1500 = vrot.lane.b32.xlu1 %v3992_v56, %s4131_s6 }
0x1545   :  { %v3994_v23 = vpop.eup %3993 }
0x1546   :  { %1427 = vrot.lane.b32.xlu0 %v3994_v23, %s4131_s6 }
0x154a   :  { %1527 = vrot.lane.b32.xlu0 %v1510_v38, %s4132_s24 }
0x154e   :  { %1531 = vrot.lane.b32.xlu0 %v1512_v45, %s4132_s24 }
0x1552   :  { %1628 = vrot.lane.b32.xlu0 %v1506_v12, %s4132_s24 }
0x15b4   :  { %v1501_v41 = vpop.permute.xlu1 %1500 }
0x15b5   :  { %v1503_v51 = vmul.f32 %v3988_v20, %v1501_v41 }
0x15b7   :  { %v1504_v32 = vsel %vm71_vm4, %v1503_v51, %v4741_v11 }
0x15b8   :  { %v1428_v61 = vpop.permute.xlu0 %1427  ;;  %v1509_v0 = vpack.c.bf16 %v4741_v11, %v1504_v32  ;;  %v1507_v11 = vpack.c.bf16 %v4691_v10, %v4633_v28  ;;  %v4837_v10 = vld [vmem:[%s5345_s11] sm:$0xff]  }
0x15b9   :  { %v1430_v13 = vmul.f32 %v3990_v50, %v1428_v61 }
0x15ba   :  { %1525 = vrot.lane.b32.xlu1 %v1509_v0, %s4132_s24 }
0x15bb   :  { %v1431_v17 = vsel %vm99_vm3, %v1430_v13, %v4749_v36 }
0x15bc   :  { %v1508_v16 = vpack.c.bf16 %v1431_v17, %v4749_v36  ;;  %v1528_v36 = vpop.permute.xlu0 %1527 }
0x15be   :  { %1529 = vrot.lane.b32.xlu1 %v1511_v62, %s4132_s24  ;;  %1632 = vrot.lane.b32.xlu0 %v1508_v16, %s4132_s24 }
0x15c0   :  { %v1532_v55 = vpop.permute.xlu0 %1531 }
0x15c2   :  { %1626 = vrot.lane.b32.xlu1 %v1505_v24, %s4132_s24 }
0x15c4   :  { %v1629_v39 = vpop.permute.xlu0 %1628 }
0x15c6   :  { %1630 = vrot.lane.b32.xlu1 %v1507_v11, %s4132_s24 }
0x162c   :  { %v1526_v2 = vpop.permute.xlu1 %1525 }
0x162d   :  { %3617 = vmatprep.mubr.msk.bf16.mxu0 %vm321_vm5, %v1526_v2  ;;  %3641 = vmatprep.mubr.msk.bf16.mxu1 %vm321_vm5, %v1526_v2 }
0x162e   :  { %3618 = vmatmul.mubr.msk.bf16.vlgmr.msra.gmra.mrb[36].mxu0 %vm321_vm5, %v1528_v36  ;;  %3642 = vmatmul.mubr.msk.bf16.vlgmr.msra.gmra.mrb[44].mxu1 %vm321_vm5, %v1528_v36 }
0x162f   :  { %3626 = vmatpush3.bf16.msra.mxu0 %v3855_v9  ;;  %3650 = vmatpush3.bf16.msra.mxu1 %v3856_v59 }
0x1630   :  { %v1530_v46 = vpop.permute.xlu1 %1529  ;;  %3627 = vmatprep.subr.bf16.mxu0 %v3857_v60  ;;  %3651 = vmatprep.subr.bf16.mxu1 %v3858_v29  ;;  %v1633_v34 = vpop.permute.xlu0 %1632 }
0x1631   :  { %3621 = vmatprep.mubr.msk.bf16.mxu0 %vm321_vm5, %v1530_v46  ;;  %3645 = vmatprep.mubr.msk.bf16.mxu1 %vm321_vm5, %v1530_v46 }
0x1633   :  { %3628 = vmatpush3.bf16.msra.mxu0 %v3857_v60  ;;  %3652 = vmatpush3.bf16.msra.mxu1 %v3858_v29 }
0x1634   :  { %3661 = vmatprep.subr.bf16.mxu0 %v4128_v6  ;;  %3669 = vmatprep.subr.bf16.mxu1 %v4128_v6  ;;  %v1627_v28 = vpop.permute.xlu1 %1626 }
0x1636   :  { %3622 = vmatmul.mubr.msk.bf16.gmra.mrb[40].mxu0 %vm321_vm5, %v1532_v55  ;;  %3646 = vmatmul.mubr.msk.bf16.gmra.mrb[48].mxu1 %vm321_vm5, %v1532_v55 }
0x1637   :  { %3629 = vmatprep.mubr.msk.bf16.mxu0 %vm321_vm5, %v1627_v28  ;;  %3653 = vmatprep.mubr.msk.bf16.mxu1 %vm321_vm5, %v1627_v28 }
0x1638   :  { %v1631_v52 = vpop.permute.xlu1 %1630 }
0x163e   :  { %3630 = vmatmul.mubr.msk.bf16.vlgmr.msra.gmra.mrb[36].mxu0 %vm321_vm5, %v1629_v39  ;;  %3654 = vmatmul.mubr.msk.bf16.vlgmr.msra.gmra.mrb[44].mxu1 %vm321_vm5, %v1629_v39 }
0x163f   :  { %3633 = vmatprep.mubr.msk.bf16.mxu0 %vm321_vm5, %v1631_v52  ;;  %3657 = vmatprep.mubr.msk.bf16.mxu1 %vm321_vm5, %v1631_v52 }
0x1640   :  { %3662 = vmatpush3.bf16.msra.mxu0 %v4837_v10  ;;  %3670 = vmatpush3.bf16.msra.mxu1 %v4842_v43 }
0x1641   :  { %3663 = vmatprep.subr.bf16.mxu0 %v4128_v6  ;;  %3671 = vmatprep.subr.bf16.mxu1 %v4128_v6 }
0x1644   :  { %3664 = vmatpush3.bf16.msra.mxu0 %v4853_v53  ;;  %3672 = vmatpush3.bf16.msra.mxu1 %v4858_v7 }
0x1645   :  { %3677 = vmatprep.subr.bf16.mxu0 %v4128_v6  ;;  %3685 = vmatprep.subr.bf16.mxu1 %v4128_v6 }
0x1646   :  { %3634 = vmatmul.mubr.msk.bf16.gmra.mrb[40].mxu0 %vm321_vm5, %v1633_v34  ;;  %3658 = vmatmul.mubr.msk.bf16.gmra.mrb[48].mxu1 %vm321_vm5, %v1633_v34 }
0x1647   :  { %3665 = vmatprep.mubr.msk.bf16.mxu0 %vm4129_vm1, %v4128_v6  ;;  %3673 = vmatprep.mubr.msk.bf16.mxu1 %vm4129_vm1, %v4128_v6 }
0x164e   :  { %3666 = vmatmul.mubr.bf16.vlgmr.msra.gmra.mrb[44].mxu0 %v4127_v1  ;;  %3674 = vmatmul.mubr.bf16.vlgmr.msra.gmra.mrb[52].mxu1 %v4127_v1  ;;  %v3276_v1 = vld [vmem:[%s5347_s10] ss:$0 sm:$0xff] }
0x164f   :  { %3678 = vmatpush3.bf16.msra.mxu0 %v4837_v10  ;;  %3686 = vmatpush3.bf16.msra.mxu1 %v4842_v43 }
0x1650   :  { %3679 = vmatprep.subr.bf16.mxu0 %v4128_v6  ;;  %3687 = vmatprep.subr.bf16.mxu1 %v4128_v6 }
0x1651   :  { %3689 = vmatprep.mubr.msk.bf16.mxu1 %vm4129_vm1, %v4128_v6  ;;  %3681 = vmatprep.mubr.msk.bf16.mxu0 %vm4129_vm1, %v4128_v6 }
0x1653   :  { %3680 = vmatpush3.bf16.msra.mxu0 %v4853_v53  ;;  %3688 = vmatpush3.bf16.msra.mxu1 %v4858_v7 }
0x1654   :  { %3693 = vmatprep.subr.bf16.mxu0 %v4128_v6  ;;  %3701 = vmatprep.subr.bf16.mxu1 %v4128_v6 }
0x1711   :  { %v3631_v15 = vpop.f32.mrb[36].mxu0  ;;  %v3655_v33 = vpop.f32.mrb[44].mxu1 }
0x1712   :  { %v4892_v21 = vadd.f32 %v3631_v15, %v3276_v1  ;;  %v4894_v20 = vadd.f32 %v3655_v33, %v3289_v18  ;;  %v1692_v3 = vpop.f32.mrb[37].mxu0  ;;  %v1869_v5 = vpop.f32.mrb[45].mxu1 }
0x1713   :  { %v4896_v50 = vadd.f32 %v3289_v18, %v1869_v5  ;;  %v3632_v37 = vpop.f32.mrb[38].mxu0  ;;  %v3656_v22 = vpop.f32.mrb[46].mxu1  ;;  %v1730_v32 = vadd.f32 %v3276_v1, %v1692_v3 }
0x1714   :  { %v4898_v26 = vadd.f32 %v3632_v37, %v3276_v1  ;;  %v4900_v48 = vadd.f32 %v3656_v22, %v3289_v18  ;;  %v1695_v8 = vpop.f32.mrb[39].mxu0  ;;  %v1872_v14 = vpop.f32.mrb[47].mxu1 }
0x1715   :  { %v4902_v63 = vadd.f32 %v3276_v1, %v1695_v8  ;;  %v4904_v54 = vadd.f32 %v3289_v18, %v1872_v14 }
0x1719   :  { %v3635_v19 = vpop.f32.mrb[40].mxu0  ;;  %v3659_v27 = vpop.f32.mrb[48].mxu1 }
0x171a   :  { %v4906_v56 = vadd.f32 %v3635_v19, %v3276_v1  ;;  %v4908_v23 = vadd.f32 %v3659_v27, %v3289_v18  ;;  %v1708_v47 = vpop.f32.mrb[41].mxu0  ;;  %v1885_v38 = vpop.f32.mrb[49].mxu1 }
0x171b   :  { %v4910_v25 = vadd.f32 %v3276_v1, %v1708_v47  ;;  %v4912_v30 = vadd.f32 %v3289_v18, %v1885_v38  ;;  %v3636_v31 = vpop.f32.mrb[42].mxu0  ;;  %v3660_v45 = vpop.f32.mrb[50].mxu1 }
0x171c   :  { %v4914_v12 = vadd.f32 %v3636_v31, %v3276_v1  ;;  %v1711_v9 = vpop.f32.mrb[43].mxu0  ;;  %v1888_v59 = vpop.f32.mrb[51].mxu1  ;;  %v1914_v61 = vadd.f32 %v3660_v45, %v3289_v18 }
0x171d   :  { %v4916_v41 = vadd.f32 %v3276_v1, %v1711_v9  ;;  %v4918_v51 = vadd.f32 %v3289_v18, %v1888_v59 }
0x1721   :  { %v1969_v0 = vpop.f32.mrb[44].mxu0  ;;  %v2048_v13 = vpop.f32.mrb[52].mxu1 }
0x1722   :  { %v1975_v17 = vadd.f32 %v1969_v0, %v1730_v32  ;;  %v2054_v62 = vadd.f32 %v2048_v13, %v1914_v61  ;;  %v3667_v16 = vpop.f32.mrb[45].mxu0  ;;  %v3675_v24 = vpop.f32.mrb[53].mxu1 }
0x1723   :  { %v1972_v11 = vpop.f32.mrb[46].mxu0  ;;  %v2051_v2 = vpop.f32.mrb[54].mxu1 }
0x1724   :  { %3995 = vtanh.f32 %v1975_v17  ;;  %v3668_v60 = vpop.f32.mrb[47].mxu0  ;;  %v3676_v29 = vpop.f32.mrb[55].mxu1  ;;  %v3292_v55 = vmul.f32 -1.442695, %v1975_v17  ;;  %v3295_v28 = vmul.f32 -1.442695, %v2054_v62 }
0x1725   :  { %3997 = vtanh.f32 %v2054_v62 }
0x1726   :  { %3999 = vpow2.f32 %v3292_v55 }
0x1727   :  { %4001 = vpow2.f32 %v3295_v28 }
0x172e   :  { %v3996_v36 = vpop.eup %3995 }
0x172f   :  { %v3998_v46 = vpop.eup %3997  ;;  %1985 = vrot.lane.b32.xlu1 %v3996_v36, %s4131_s6 }
0x1730   :  { %2064 = vrot.lane.b32.xlu0 %v3998_v46, %s4131_s6  ;;  %v4000_v39 = vpop.eup %3999 }
0x1731   :  { %v4002_v52 = vpop.eup %4001  ;;  %v1979_v34 = vadd.f32 1.0, %v4000_v39 }
0x1732   :  { %v2058_v1 = vadd.f32 1.0, %v4002_v52 }
0x1733   :  { %4003 = vrcp.f32 %v1979_v34 }
0x1734   :  { %4005 = vrcp.f32 %v2058_v1 }
0x173d   :  { %v4004_v18 = vpop.eup %4003 }
0x173e   :  { %v4006_v33 = vpop.eup %4005  ;;  %v1983_v22 = vmul.f32 0.0, %v4004_v18 }
0x173f   :  { %v2062_v8 = vmul.f32 0.0, %v4006_v33 }
0x17a1   :  { %v1986_v15 = vpop.permute.xlu1 %1985 }
0x17a2   :  { %v2065_v3 = vpop.permute.xlu0 %2064  ;;  %v1988_v5 = vmul.f32 %v4004_v18, %v1986_v15 }
0x17a3   :  { %v2067_v37 = vmul.f32 %v4006_v33, %v2065_v3 }
0x17a4   :  { %1990 = vrot.lane.b32.xlu1 %v1988_v5, %s4132_s24 }
0x17a5   :  { %2069 = vrot.lane.b32.xlu0 %v2067_v37, %s4132_s24 }
0x1816   :  { %v1991_v14 = vpop.permute.xlu1 %1990 }
0x1817   :  { %v2070_v19 = vpop.permute.xlu0 %2069  ;;  %v4924_v27 = vadd.f32 %v1991_v14, %v1983_v22 }
0x1818   :  { %v4926_v47 = vadd.f32 %v2070_v19, %v2062_v8 }
0x1819   :  { %4007 = vtanh.f32 %v4924_v27  ;;  %v4969_v19 = vsel %vm71_vm4, %v4924_v27, 0.0 }
0x181a   :  { %4009 = vtanh.f32 %v4926_v47 }
0x1823   :  { %v4008_v38 = vpop.eup %4007 }
0x1824   :  { %v4010_v31 = vpop.eup %4009  ;;  %1996 = vrot.lane.b32.xlu1 %v4008_v38, %s4131_s6  ;;  %v4974_v38 = vsel %vm99_vm3, %v4926_v47, 0.0 }
0x1825   :  { %2075 = vrot.lane.b32.xlu0 %v4010_v31, %s4131_s6 }
0x1896   :  { %v1997_v45 = vpop.permute.xlu1 %1996 }
0x1897   :  { %v2076_v9 = vpop.permute.xlu0 %2075  ;;  %v1999_v59 = vmul.f32 %v4004_v18, %v1997_v45 }
0x1898   :  { %v2078_v32 = vmul.f32 %v4006_v33, %v2076_v9 }
0x1899   :  { %v4934_v61 = vsel %vm71_vm4, %v1999_v59, 0.0 }
0x189a   :  { %v4938_v0 = vsel %vm99_vm3, %v2078_v32, 0.0  ;;  %v2081_v13 = vpack.c.bf16 %v4934_v61, %v4934_v61 }
0x189b   :  { %v2155_v17 = vpack.c.bf16 %v4938_v0, %v4938_v0 }
0x189c   :  { %2083 = vrot.lane.b32.xlu1 %v2081_v13, %s4132_s24 }
0x189d   :  { %2157 = vrot.lane.b32.xlu0 %v2155_v17, %s4132_s24 }
0x190e   :  { %v2084_v62 = vpop.permute.xlu1 %2083 }
0x190f   :  { %v2158_v16 = vpop.permute.xlu0 %2157  ;;  %3682 = vmatmul.mubr.msk.bf16.vlgmr.msra.gmra.mrb[48].mxu0 %vm321_vm5, %v2084_v62 }
0x1910   :  { %3690 = vmatmul.mubr.msk.bf16.vlgmr.msra.gmra.mrb[56].mxu1 %vm321_vm5, %v2158_v16  ;;  %3694 = vmatpush3.bf16.msra.mxu0 %v4837_v10 }
0x1911   :  { %3702 = vmatpush3.bf16.msra.mxu1 %v4842_v43  ;;  %3695 = vmatprep.subr.bf16.mxu0 %v4128_v6 }
0x1912   :  { %3703 = vmatprep.subr.bf16.mxu1 %v4128_v6  ;;  %3705 = vmatprep.mubr.msk.bf16.mxu1 %vm4129_vm1, %v4128_v6 }
0x1913   :  { %3697 = vmatprep.mubr.msk.bf16.mxu0 %vm4129_vm1, %v4128_v6 }
0x1914   :  { %3696 = vmatpush3.bf16.msra.mxu0 %v4853_v53 }
0x1915   :  { %3704 = vmatpush3.bf16.msra.mxu1 %v4858_v7  ;;  %3709 = vmatprep.subr.bf16.mxu0 %v4128_v6 }
0x1916   :  { %3717 = vmatprep.subr.bf16.mxu1 %v4128_v6 }
0x19e2   :  { %v2122_v24 = vpop.f32.mrb[48].mxu0 }
0x19e3   :  { %v2128_v11 = vadd.f32 %v2122_v24, %v4902_v63  ;;  %v2196_v2 = vpop.f32.mrb[56].mxu1  ;;  %v3683_v60 = vpop.f32.mrb[49].mxu0 }
0x19e4   :  { %v2202_v29 = vadd.f32 %v2196_v2, %v4908_v23  ;;  %v3691_v36 = vpop.f32.mrb[57].mxu1  ;;  %v2125_v46 = vpop.f32.mrb[50].mxu0 }
0x19e5   :  { %4011 = vtanh.f32 %v2128_v11  ;;  %v2199_v55 = vpop.f32.mrb[58].mxu1  ;;  %v3684_v28 = vpop.f32.mrb[51].mxu0  ;;  %v3297_v1 = vmul.f32 -1.442695, %v2128_v11 }
0x19e6   :  { %4013 = vtanh.f32 %v2202_v29  ;;  %v3692_v39 = vpop.f32.mrb[59].mxu1  ;;  %v3299_v18 = vmul.f32 -1.442695, %v2202_v29 }
0x19e7   :  { %4015 = vpow2.f32 %v3297_v1 }
0x19e8   :  { %4017 = vpow2.f32 %v3299_v18 }
0x19ef   :  { %v4012_v52 = vpop.eup %4011 }
0x19f0   :  { %v4014_v34 = vpop.eup %4013  ;;  %2138 = vrot.lane.b32.xlu1 %v4012_v52, %s4131_s6 }
0x19f1   :  { %2212 = vrot.lane.b32.xlu0 %v4014_v34, %s4131_s6  ;;  %v4016_v63 = vpop.eup %4015 }
0x19f2   :  { %v4018_v15 = vpop.eup %4017  ;;  %v2132_v23 = vadd.f32 1.0, %v4016_v63 }
0x19f3   :  { %v2206_v33 = vadd.f32 1.0, %v4018_v15 }
0x19f4   :  { %4019 = vrcp.f32 %v2132_v23 }
0x19f5   :  { %4021 = vrcp.f32 %v2206_v33 }
0x19fe   :  { %v4020_v3 = vpop.eup %4019 }
0x19ff   :  { %v4022_v37 = vpop.eup %4021  ;;  %v2136_v31 = vmul.f32 %v4020_v3, %v4969_v19 }
0x1a00   :  { %v2210_v45 = vmul.f32 %v4022_v37, %v4974_v38 }
0x1a62   :  { %v2139_v5 = vpop.permute.xlu1 %2138 }
0x1a63   :  { %v2213_v22 = vpop.permute.xlu0 %2212  ;;  %v2141_v8 = vmul.f32 %v4020_v3, %v2139_v5 }
0x1a64   :  { %v2215_v14 = vmul.f32 %v4022_v37, %v2213_v22 }
0x1a65   :  { %2143 = vrot.lane.b32.xlu1 %v2141_v8, %s4132_s24 }
0x1a66   :  { %2217 = vrot.lane.b32.xlu0 %v2215_v14, %s4132_s24 }
0x1ad7   :  { %v2144_v9 = vpop.permute.xlu1 %2143 }
0x1ad8   :  { %v2218_v59 = vpop.permute.xlu0 %2217  ;;  %v4978_v32 = vadd.f32 %v2144_v9, %v2136_v31 }
0x1ad9   :  { %v4980_v13 = vadd.f32 %v2218_v59, %v2210_v45 }
0x1ada   :  { %4023 = vtanh.f32 %v4978_v32  ;;  %v5026_v59 = vsel %vm75_vm7, %v4978_v32, %v4969_v19 }
0x1adb   :  { %4025 = vtanh.f32 %v4980_v13 }
0x1ae4   :  { %v4024_v27 = vpop.eup %4023 }
0x1ae5   :  { %v4026_v17 = vpop.eup %4025  ;;  %2149 = vrot.lane.b32.xlu1 %v4024_v27, %s4131_s6  ;;  %v5032_v27 = vsel %vm95_vm6, %v4980_v13, %v4974_v38 }
0x1ae6   :  { %2223 = vrot.lane.b32.xlu0 %v4026_v17, %s4131_s6 }
0x1b57   :  { %v2150_v47 = vpop.permute.xlu1 %2149 }
0x1b58   :  { %v2224_v62 = vpop.permute.xlu0 %2223  ;;  %v2152_v16 = vmul.f32 %v4020_v3, %v2150_v47 }
0x1b59   :  { %v2226_v24 = vmul.f32 %v4022_v37, %v2224_v62 }
0x1b5a   :  { %v4989_v11 = vsel %vm75_vm7, %v2152_v16, %v4934_v61 }
0x1b5b   :  { %v4994_v2 = vsel %vm95_vm6, %v2226_v24, %v4938_v0  ;;  %v2229_v60 = vpack.c.bf16 %v4989_v11, %v4989_v11 }
0x1b5c   :  { %v2303_v29 = vpack.c.bf16 %v4994_v2, %v4994_v2 }
0x1b5d   :  { %2231 = vrot.lane.b32.xlu1 %v2229_v60, %s4132_s24 }
0x1b5e   :  { %2305 = vrot.lane.b32.xlu0 %v2303_v29, %s4132_s24 }
0x1bcf   :  { %v2232_v36 = vpop.permute.xlu1 %2231 }
0x1bd0   :  { %v2306_v46 = vpop.permute.xlu0 %2305  ;;  %3698 = vmatmul.mubr.msk.bf16.vlgmr.msra.gmra.mrb[52].mxu0 %vm321_vm5, %v2232_v36 }
0x1bd1   :  { %3706 = vmatmul.mubr.msk.bf16.vlgmr.msra.gmra.mrb[60].mxu1 %vm321_vm5, %v2306_v46  ;;  %3710 = vmatpush3.bf16.msra.mxu0 %v4837_v10 }
0x1bd2   :  { %3718 = vmatpush3.bf16.msra.mxu1 %v4842_v43  ;;  %3711 = vmatprep.subr.bf16.mxu0 %v4128_v6 }
0x1bd3   :  { %3719 = vmatprep.subr.bf16.mxu1 %v4128_v6  ;;  %3721 = vmatprep.mubr.msk.bf16.mxu1 %vm4129_vm1, %v4128_v6 }
0x1bd4   :  { %3713 = vmatprep.mubr.msk.bf16.mxu0 %vm4129_vm1, %v4128_v6 }
0x1bd5   :  { %3712 = vmatpush3.bf16.msra.mxu0 %v4853_v53 }
0x1bd6   :  { %3720 = vmatpush3.bf16.msra.mxu1 %v4858_v7  ;;  %3725 = vmatprep.subr.bf16.mxu0 %v4128_v6 }
0x1bd7   :  { %3733 = vmatprep.subr.bf16.mxu1 %v4128_v6 }
0x1ca3   :  { %v2270_v61 = vpop.f32.mrb[52].mxu0 }
0x1ca4   :  { %v2276_v0 = vadd.f32 %v2270_v61, %v4892_v21  ;;  %v2344_v55 = vpop.f32.mrb[60].mxu1  ;;  %v3699_v28 = vpop.f32.mrb[53].mxu0 }
0x1ca5   :  { %v2350_v39 = vadd.f32 %v2344_v55, %v4918_v51  ;;  %v3707_v52 = vpop.f32.mrb[61].mxu1  ;;  %v2273_v34 = vpop.f32.mrb[54].mxu0 }
0x1ca6   :  { %4027 = vtanh.f32 %v2276_v0  ;;  %v2347_v1 = vpop.f32.mrb[62].mxu1  ;;  %v3700_v18 = vpop.f32.mrb[55].mxu0  ;;  %v3301_v33 = vmul.f32 -1.442695, %v2276_v0 }
0x1ca7   :  { %4029 = vtanh.f32 %v2350_v39  ;;  %v3708_v63 = vpop.f32.mrb[63].mxu1  ;;  %v3303_v3 = vmul.f32 -1.442695, %v2350_v39 }
0x1ca8   :  { %4031 = vpow2.f32 %v3301_v33 }
0x1ca9   :  { %4033 = vpow2.f32 %v3303_v3 }
0x1cb0   :  { %v4028_v15 = vpop.eup %4027 }
0x1cb1   :  { %v4030_v23 = vpop.eup %4029  ;;  %2286 = vrot.lane.b32.xlu1 %v4028_v15, %s4131_s6 }
0x1cb2   :  { %2360 = vrot.lane.b32.xlu0 %v4030_v23, %s4131_s6  ;;  %v4032_v21 = vpop.eup %4031 }
0x1cb3   :  { %v4034_v5 = vpop.eup %4033  ;;  %v2280_v51 = vadd.f32 1.0, %v4032_v21 }
0x1cb4   :  { %v2354_v37 = vadd.f32 1.0, %v4034_v5 }
0x1cb5   :  { %4035 = vrcp.f32 %v2280_v51 }
0x1cb6   :  { %4037 = vrcp.f32 %v2354_v37 }
0x1cbf   :  { %v4036_v22 = vpop.eup %4035 }
0x1cc0   :  { %v4038_v14 = vpop.eup %4037  ;;  %v2284_v17 = vmul.f32 %v4036_v22, %v5026_v59 }
0x1cc1   :  { %v2358_v47 = vmul.f32 %v4038_v14, %v5032_v27 }
0x1d23   :  { %v2287_v8 = vpop.permute.xlu1 %2286 }
0x1d24   :  { %v2361_v31 = vpop.permute.xlu0 %2360  ;;  %v2289_v45 = vmul.f32 %v4036_v22, %v2287_v8 }
0x1d25   :  { %v2363_v9 = vmul.f32 %v4038_v14, %v2361_v31 }
0x1d26   :  { %2291 = vrot.lane.b32.xlu1 %v2289_v45, %s4132_s24 }
0x1d27   :  { %2365 = vrot.lane.b32.xlu0 %v2363_v9, %s4132_s24 }
0x1d98   :  { %v2292_v62 = vpop.permute.xlu1 %2291 }
0x1d99   :  { %v2366_v16 = vpop.permute.xlu0 %2365  ;;  %v5036_v24 = vadd.f32 %v2292_v62, %v2284_v17 }
0x1d9a   :  { %v5038_v60 = vadd.f32 %v2366_v16, %v2358_v47 }
0x1d9b   :  { %4039 = vtanh.f32 %v5036_v24  ;;  %v5084_v47 = vsel %vm79_vm9, %v5036_v24, %v5026_v59 }
0x1d9c   :  { %4041 = vtanh.f32 %v5038_v60  ;;  %v5090_v62 = vsel %vm91_vm8, %v5038_v60, %v5032_v27 }
0x1da5   :  { %v4040_v19 = vpop.eup %4039 }
0x1da6   :  { %v4042_v32 = vpop.eup %4041  ;;  %2297 = vrot.lane.b32.xlu1 %v4040_v19, %s4131_s6 }
0x1da7   :  { %2371 = vrot.lane.b32.xlu0 %v4042_v32, %s4131_s6 }
0x1e18   :  { %v2298_v38 = vpop.permute.xlu1 %2297 }
0x1e19   :  { %v2372_v13 = vpop.permute.xlu0 %2371  ;;  %v2300_v29 = vmul.f32 %v4036_v22, %v2298_v38 }
0x1e1a   :  { %v2374_v36 = vmul.f32 %v4038_v14, %v2372_v13 }
0x1e1b   :  { %v5047_v46 = vsel %vm79_vm9, %v2300_v29, %v4989_v11 }
0x1e1c   :  { %v5052_v61 = vsel %vm91_vm8, %v2374_v36, %v4994_v2  ;;  %v2377_v0 = vpack.c.bf16 %v5047_v46, %v5047_v46 }
0x1e1d   :  { %v2451_v55 = vpack.c.bf16 %v5052_v61, %v5052_v61 }
0x1e1e   :  { %2379 = vrot.lane.b32.xlu1 %v2377_v0, %s4132_s24 }
0x1e1f   :  { %2453 = vrot.lane.b32.xlu0 %v2451_v55, %s4132_s24 }
0x1e90   :  { %v2380_v28 = vpop.permute.xlu1 %2379 }
0x1e91   :  { %v2454_v39 = vpop.permute.xlu0 %2453  ;;  %3714 = vmatmul.mubr.msk.bf16.vlgmr.msra.gmra.mrb[56].mxu0 %vm321_vm5, %v2380_v28 }
0x1e92   :  { %3722 = vmatmul.mubr.msk.bf16.vlgmr.msra.gmra.mrb[64].mxu1 %vm321_vm5, %v2454_v39  ;;  %3726 = vmatpush3.bf16.msra.mxu0 %v4837_v10 }
0x1e93   :  { %3734 = vmatpush3.bf16.msra.mxu1 %v4842_v43  ;;  %3727 = vmatprep.subr.bf16.mxu0 %v4128_v6 }
0x1e94   :  { %3735 = vmatprep.subr.bf16.mxu1 %v4128_v6  ;;  %3737 = vmatprep.mubr.msk.bf16.mxu1 %vm4129_vm1, %v4128_v6 }
0x1e95   :  { %3729 = vmatprep.mubr.msk.bf16.mxu0 %vm4129_vm1, %v4128_v6 }
0x1e96   :  { %3728 = vmatpush3.bf16.msra.mxu0 %v4853_v53 }
0x1e97   :  { %3736 = vmatpush3.bf16.msra.mxu1 %v4858_v7  ;;  %3741 = vmatprep.subr.bf16.mxu0 %v4128_v6 }
0x1e98   :  { %3749 = vmatprep.subr.bf16.mxu1 %v4128_v6 }
0x1f64   :  { %v2418_v11 = vpop.f32.mrb[56].mxu0 }
0x1f65   :  { %v2424_v2 = vadd.f32 %v2418_v11, %v4898_v26  ;;  %v2492_v52 = vpop.f32.mrb[64].mxu1  ;;  %v3715_v34 = vpop.f32.mrb[57].mxu0 }
0x1f66   :  { %v2498_v1 = vadd.f32 %v2492_v52, %v4912_v30  ;;  %v3723_v18 = vpop.f32.mrb[65].mxu1  ;;  %v2421_v63 = vpop.f32.mrb[58].mxu0 }
0x1f67   :  { %4043 = vtanh.f32 %v2424_v2  ;;  %v2495_v15 = vpop.f32.mrb[66].mxu1  ;;  %v3716_v23 = vpop.f32.mrb[59].mxu0  ;;  %v3305_v5 = vmul.f32 -1.442695, %v2424_v2 }
0x1f68   :  { %4045 = vtanh.f32 %v2498_v1  ;;  %v3724_v33 = vpop.f32.mrb[67].mxu1  ;;  %v3307_v51 = vmul.f32 -1.442695, %v2498_v1 }
0x1f69   :  { %4047 = vpow2.f32 %v3305_v5 }
0x1f6a   :  { %4049 = vpow2.f32 %v3307_v51 }
0x1f71   :  { %v4044_v3 = vpop.eup %4043 }
0x1f72   :  { %v4046_v21 = vpop.eup %4045  ;;  %2434 = vrot.lane.b32.xlu1 %v4044_v3, %s4131_s6 }
0x1f73   :  { %2508 = vrot.lane.b32.xlu0 %v4046_v21, %s4131_s6  ;;  %v4048_v26 = vpop.eup %4047 }
0x1f74   :  { %v4050_v37 = vpop.eup %4049  ;;  %v2428_v30 = vadd.f32 1.0, %v4048_v26 }
0x1f75   :  { %v2502_v22 = vadd.f32 1.0, %v4050_v37 }
0x1f76   :  { %4051 = vrcp.f32 %v2428_v30 }
0x1f77   :  { %4053 = vrcp.f32 %v2502_v22 }
0x1f80   :  { %v4052_v8 = vpop.eup %4051 }
0x1f81   :  { %v4054_v31 = vpop.eup %4053  ;;  %v2432_v16 = vmul.f32 %v4052_v8, %v5084_v47 }
0x1f82   :  { %v2506_v19 = vmul.f32 %v4054_v31, %v5090_v62 }
0x1fe4   :  { %v2435_v14 = vpop.permute.xlu1 %2434 }
0x1fe5   :  { %v2509_v45 = vpop.permute.xlu0 %2508  ;;  %v2437_v9 = vmul.f32 %v4052_v8, %v2435_v14 }
0x1fe6   :  { %v2511_v17 = vmul.f32 %v4054_v31, %v2509_v45 }
0x1fe7   :  { %2439 = vrot.lane.b32.xlu1 %v2437_v9, %s4132_s24 }
0x1fe8   :  { %2513 = vrot.lane.b32.xlu0 %v2511_v17, %s4132_s24 }
0x2059   :  { %v2440_v32 = vpop.permute.xlu1 %2439 }
0x205a   :  { %v2514_v38 = vpop.permute.xlu0 %2513  ;;  %v5094_v13 = vadd.f32 %v2440_v32, %v2432_v16 }
0x205b   :  { %v5096_v29 = vadd.f32 %v2514_v38, %v2506_v19 }
0x205c   :  { %4055 = vtanh.f32 %v5094_v13  ;;  %v5142_v17 = vsel %vm83_vm11, %v5094_v13, %v5084_v47 }
0x205d   :  { %4057 = vtanh.f32 %v5096_v29  ;;  %v5148_v16 = vsel %vm87_vm10, %v5096_v29, %v5090_v62 }
0x2066   :  { %v4056_v59 = vpop.eup %4055 }
0x2067   :  { %v4058_v24 = vpop.eup %4057  ;;  %2445 = vrot.lane.b32.xlu1 %v4056_v59, %s4131_s6 }
0x2068   :  { %2519 = vrot.lane.b32.xlu0 %v4058_v24, %s4131_s6 }
0x20d9   :  { %v2446_v27 = vpop.permute.xlu1 %2445 }
0x20da   :  { %v2520_v60 = vpop.permute.xlu0 %2519  ;;  %v2448_v36 = vmul.f32 %v4052_v8, %v2446_v27 }
0x20db   :  { %v2522_v0 = vmul.f32 %v4054_v31, %v2520_v60 }
0x20dc   :  { %v5105_v55 = vsel %vm83_vm11, %v2448_v36, %v5047_v46 }
0x20dd   :  { %v5110_v28 = vsel %vm87_vm10, %v2522_v0, %v5052_v61  ;;  %v2525_v39 = vpack.c.bf16 %v5105_v55, %v5105_v55 }
0x20de   :  { %v2599_v11 = vpack.c.bf16 %v5110_v28, %v5110_v28 }
0x20df   :  { %2527 = vrot.lane.b32.xlu1 %v2525_v39, %s4132_s24 }
0x20e0   :  { %2601 = vrot.lane.b32.xlu0 %v2599_v11, %s4132_s24 }
0x2151   :  { %v2528_v2 = vpop.permute.xlu1 %2527 }
0x2152   :  { %v2602_v52 = vpop.permute.xlu0 %2601  ;;  %3730 = vmatmul.mubr.msk.bf16.vlgmr.msra.gmra.mrb[60].mxu0 %vm321_vm5, %v2528_v2 }
0x2153   :  { %3738 = vmatmul.mubr.msk.bf16.vlgmr.msra.gmra.mrb[68].mxu1 %vm321_vm5, %v2602_v52  ;;  %3742 = vmatpush3.bf16.msra.mxu0 %v4837_v10 }
0x2154   :  { %3750 = vmatpush3.bf16.msra.mxu1 %v4842_v43  ;;  %3743 = vmatprep.subr.bf16.mxu0 %v4128_v6 }
0x2155   :  { %3751 = vmatprep.subr.bf16.mxu1 %v4128_v6  ;;  %3753 = vmatprep.mubr.msk.bf16.mxu1 %vm4129_vm1, %v4128_v6 }
0x2156   :  { %3745 = vmatprep.mubr.msk.bf16.mxu0 %vm4129_vm1, %v4128_v6 }
0x2157   :  { %3744 = vmatpush3.bf16.msra.mxu0 %v4853_v53 }
0x2158   :  { %3752 = vmatpush3.bf16.msra.mxu1 %v4858_v7  ;;  %3757 = vmatprep.subr.bf16.mxu0 %v4128_v6 }
0x2159   :  { %3765 = vmatprep.subr.bf16.mxu1 %v4128_v6 }
0x2225   :  { %v2566_v46 = vpop.f32.mrb[60].mxu0 }
0x2226   :  { %v2572_v61 = vadd.f32 %v2566_v46, %v4910_v25  ;;  %v2640_v34 = vpop.f32.mrb[68].mxu1  ;;  %v3731_v1 = vpop.f32.mrb[61].mxu0 }
0x2227   :  { %v2646_v18 = vadd.f32 %v2640_v34, %v4900_v48  ;;  %v3739_v63 = vpop.f32.mrb[69].mxu1  ;;  %v2569_v15 = vpop.f32.mrb[62].mxu0 }
0x2228   :  { %4059 = vtanh.f32 %v2572_v61  ;;  %v2643_v23 = vpop.f32.mrb[70].mxu1  ;;  %v3732_v33 = vpop.f32.mrb[63].mxu0  ;;  %v3309_v51 = vmul.f32 -1.442695, %v2572_v61 }
0x2229   :  { %4061 = vtanh.f32 %v2646_v18  ;;  %v3740_v3 = vpop.f32.mrb[71].mxu1  ;;  %v3311_v26 = vmul.f32 -1.442695, %v2646_v18 }
0x222a   :  { %4063 = vpow2.f32 %v3309_v51 }
0x222b   :  { %4065 = vpow2.f32 %v3311_v26 }
0x2232   :  { %v4060_v21 = vpop.eup %4059 }
0x2233   :  { %v4062_v5 = vpop.eup %4061  ;;  %2582 = vrot.lane.b32.xlu1 %v4060_v21, %s4131_s6 }
0x2234   :  { %2656 = vrot.lane.b32.xlu0 %v4062_v5, %s4131_s6  ;;  %v4064_v25 = vpop.eup %4063 }
0x2235   :  { %v4066_v37 = vpop.eup %4065  ;;  %v2576_v48 = vadd.f32 1.0, %v4064_v25 }
0x2236   :  { %v2650_v30 = vadd.f32 1.0, %v4066_v37 }
0x2237   :  { %4067 = vrcp.f32 %v2576_v48 }
0x2238   :  { %4069 = vrcp.f32 %v2650_v30 }
0x2241   :  { %v4068_v22 = vpop.eup %4067 }
0x2242   :  { %v4070_v14 = vpop.eup %4069  ;;  %v2580_v19 = vmul.f32 %v4068_v22, %v5142_v17 }
0x2243   :  { %v2654_v32 = vmul.f32 %v4070_v14, %v5148_v16 }
0x22a5   :  { %v2583_v8 = vpop.permute.xlu1 %2582 }
0x22a6   :  { %v2657_v31 = vpop.permute.xlu0 %2656  ;;  %v2585_v45 = vmul.f32 %v4068_v22, %v2583_v8 }
0x22a7   :  { %v2659_v9 = vmul.f32 %v4070_v14, %v2657_v31 }
0x22a8   :  { %2587 = vrot.lane.b32.xlu1 %v2585_v45, %s4132_s24 }
0x22a9   :  { %2661 = vrot.lane.b32.xlu0 %v2659_v9, %s4132_s24 }
0x231a   :  { %v2588_v38 = vpop.permute.xlu1 %2587 }
0x231b   :  { %v2662_v59 = vpop.permute.xlu0 %2661  ;;  %v5152_v24 = vadd.f32 %v2588_v38, %v2580_v19 }
0x231c   :  { %v5154_v27 = vadd.f32 %v2662_v59, %v2654_v32 }
0x231d   :  { %4071 = vtanh.f32 %v5152_v24  ;;  %v5200_v31 = vsel %vm87_vm10, %v5152_v24, %v5142_v17 }
0x231e   :  { %4073 = vtanh.f32 %v5154_v27  ;;  %v5206_v45 = vsel %vm83_vm11, %v5154_v27, %v5148_v16 }
0x2327   :  { %v4072_v47 = vpop.eup %4071 }
0x2328   :  { %v4074_v13 = vpop.eup %4073  ;;  %2593 = vrot.lane.b32.xlu1 %v4072_v47, %s4131_s6 }
0x2329   :  { %2667 = vrot.lane.b32.xlu0 %v4074_v13, %s4131_s6 }
0x239a   :  { %v2594_v62 = vpop.permute.xlu1 %2593 }
0x239b   :  { %v2668_v29 = vpop.permute.xlu0 %2667  ;;  %v2596_v60 = vmul.f32 %v4068_v22, %v2594_v62 }
0x239c   :  { %v2670_v36 = vmul.f32 %v4070_v14, %v2668_v29 }
0x239d   :  { %v5163_v0 = vsel %vm87_vm10, %v2596_v60, %v5105_v55 }
0x239e   :  { %v5168_v39 = vsel %vm83_vm11, %v2670_v36, %v5110_v28  ;;  %v2673_v11 = vpack.c.bf16 %v5163_v0, %v5163_v0 }
0x239f   :  { %v2747_v2 = vpack.c.bf16 %v5168_v39, %v5168_v39 }
0x23a0   :  { %2675 = vrot.lane.b32.xlu1 %v2673_v11, %s4132_s24 }
0x23a1   :  { %2749 = vrot.lane.b32.xlu0 %v2747_v2, %s4132_s24 }
0x2412   :  { %v2676_v52 = vpop.permute.xlu1 %2675 }
0x2413   :  { %v2750_v46 = vpop.permute.xlu0 %2749  ;;  %3746 = vmatmul.mubr.msk.bf16.vlgmr.msra.gmra.mrb[64].mxu0 %vm321_vm5, %v2676_v52 }
0x2414   :  { %3754 = vmatmul.mubr.msk.bf16.vlgmr.msra.gmra.mrb[72].mxu1 %vm321_vm5, %v2750_v46  ;;  %3758 = vmatpush3.bf16.msra.mxu0 %v4837_v10 }
0x2415   :  { %3766 = vmatpush3.bf16.msra.mxu1 %v4842_v43  ;;  %3759 = vmatprep.subr.bf16.mxu0 %v4128_v6 }
0x2416   :  { %3767 = vmatprep.subr.bf16.mxu1 %v4128_v6  ;;  %3769 = vmatprep.mubr.msk.bf16.mxu1 %vm4129_vm1, %v4128_v6 }
0x2417   :  { %3761 = vmatprep.mubr.msk.bf16.mxu0 %vm4129_vm1, %v4128_v6 }
0x2418   :  { %3760 = vmatpush3.bf16.msra.mxu0 %v4853_v53 }
0x2419   :  { %3768 = vmatpush3.bf16.msra.mxu1 %v4858_v7  ;;  %3773 = vmatprep.subr.bf16.mxu0 %v4128_v6 }
0x241a   :  { %3781 = vmatprep.subr.bf16.mxu1 %v4128_v6 }
0x24e6   :  { %v2714_v55 = vpop.f32.mrb[64].mxu0 }
0x24e7   :  { %v2720_v28 = vadd.f32 %v2714_v55, %v4916_v41  ;;  %v2788_v61 = vpop.f32.mrb[72].mxu1  ;;  %v3747_v34 = vpop.f32.mrb[65].mxu0 }
0x24e8   :  { %v2794_v1 = vadd.f32 %v2788_v61, %v4894_v20  ;;  %v3755_v18 = vpop.f32.mrb[73].mxu1  ;;  %v2717_v63 = vpop.f32.mrb[66].mxu0 }
0x24e9   :  { %4075 = vtanh.f32 %v2720_v28  ;;  %v2791_v15 = vpop.f32.mrb[74].mxu1  ;;  %v3748_v23 = vpop.f32.mrb[67].mxu0  ;;  %v3313_v5 = vmul.f32 -1.442695, %v2720_v28 }
0x24ea   :  { %4077 = vtanh.f32 %v2794_v1  ;;  %v3756_v33 = vpop.f32.mrb[75].mxu1  ;;  %v3315_v51 = vmul.f32 -1.442695, %v2794_v1 }
0x24eb   :  { %4079 = vpow2.f32 %v3313_v5 }
0x24ec   :  { %4081 = vpow2.f32 %v3315_v51 }
0x24f3   :  { %v4076_v3 = vpop.eup %4075 }
0x24f4   :  { %v4078_v21 = vpop.eup %4077  ;;  %2730 = vrot.lane.b32.xlu1 %v4076_v3, %s4131_s6 }
0x24f5   :  { %2804 = vrot.lane.b32.xlu0 %v4078_v21, %s4131_s6  ;;  %v4080_v41 = vpop.eup %4079 }
0x24f6   :  { %v4082_v26 = vpop.eup %4081  ;;  %v2724_v20 = vadd.f32 1.0, %v4080_v41 }
0x24f7   :  { %v2798_v25 = vadd.f32 1.0, %v4082_v26 }
0x24f8   :  { %4083 = vrcp.f32 %v2724_v20 }
0x24f9   :  { %4085 = vrcp.f32 %v2798_v25 }
0x2502   :  { %v4084_v37 = vpop.eup %4083 }
0x2503   :  { %v4086_v30 = vpop.eup %4085  ;;  %v2728_v9 = vmul.f32 %v4084_v37, %v5200_v31 }
0x2504   :  { %v2802_v19 = vmul.f32 %v4086_v30, %v5206_v45 }
0x2566   :  { %v2731_v48 = vpop.permute.xlu1 %2730 }
0x2567   :  { %v2805_v22 = vpop.permute.xlu0 %2804  ;;  %v2733_v8 = vmul.f32 %v4084_v37, %v2731_v48 }
0x2568   :  { %v2807_v14 = vmul.f32 %v4086_v30, %v2805_v22 }
0x2569   :  { %2735 = vrot.lane.b32.xlu1 %v2733_v8, %s4132_s24 }
0x256a   :  { %2809 = vrot.lane.b32.xlu0 %v2807_v14, %s4132_s24 }
0x25db   :  { %v2736_v32 = vpop.permute.xlu1 %2735 }
0x25dc   :  { %v2810_v38 = vpop.permute.xlu0 %2809  ;;  %v5210_v59 = vadd.f32 %v2736_v32, %v2728_v9 }
0x25dd   :  { %v5212_v47 = vadd.f32 %v2810_v38, %v2802_v19 }
0x25de   :  { %4087 = vtanh.f32 %v5210_v59  ;;  %v5257_v51 = vsel %vm91_vm8, %v5210_v59, %v5200_v31 }
0x25df   :  { %4089 = vtanh.f32 %v5212_v47  ;;  %v5263_v41 = vsel %vm79_vm9, %v5212_v47, %v5206_v45 }
0x25e8   :  { %v4088_v4 = vpop.eup %4087 }
0x25e9   :  { %v4090_v17 = vpop.eup %4089  ;;  %2741 = vrot.lane.b32.xlu1 %v4088_v4, %s4131_s6 }
0x25ea   :  { %2815 = vrot.lane.b32.xlu0 %v4090_v17, %s4131_s6 }
0x265b   :  { %v2742_v57 = vpop.permute.xlu1 %2741 }
0x265c   :  { %v2816_v16 = vpop.permute.xlu0 %2815  ;;  %v2744_v24 = vmul.f32 %v4084_v37, %v2742_v57 }
0x265d   :  { %v2818_v27 = vmul.f32 %v4086_v30, %v2816_v16 }
0x265e   :  { %v5221_v13 = vsel %vm91_vm8, %v2744_v24, %v5163_v0 }
0x265f   :  { %v5226_v62 = vsel %vm79_vm9, %v2818_v27, %v5168_v39  ;;  %v2821_v29 = vpack.c.bf16 %v5221_v13, %v5221_v13 }
0x2660   :  { %v2895_v60 = vpack.c.bf16 %v5226_v62, %v5226_v62 }
0x2661   :  { %2823 = vrot.lane.b32.xlu1 %v2821_v29, %s4132_s24 }
0x2662   :  { %2897 = vrot.lane.b32.xlu0 %v2895_v60, %s4132_s24 }
0x26d3   :  { %v2824_v36 = vpop.permute.xlu1 %2823 }
0x26d4   :  { %v2898_v11 = vpop.permute.xlu0 %2897  ;;  %3762 = vmatmul.mubr.msk.bf16.vlgmr.msra.gmra.mrb[68].mxu0 %vm321_vm5, %v2824_v36 }
0x26d5   :  { %3770 = vmatmul.mubr.msk.bf16.vlgmr.msra.gmra.mrb[76].mxu1 %vm321_vm5, %v2898_v11  ;;  %3774 = vmatpush3.bf16.msra.mxu0 %v4837_v10 }
0x26d6   :  { %3782 = vmatpush3.bf16.msra.mxu1 %v4842_v43  ;;  %3775 = vmatprep.subr.bf16.mxu0 %v4128_v6 }
0x26d7   :  { %3783 = vmatprep.subr.bf16.mxu1 %v4128_v6  ;;  %3785 = vmatprep.mubr.msk.bf16.mxu1 %vm4129_vm1, %v4128_v6 }
0x26d8   :  { %3777 = vmatprep.mubr.msk.bf16.mxu0 %vm4129_vm1, %v4128_v6 }
0x26d9   :  { %3776 = vmatpush3.bf16.msra.mxu0 %v4853_v53 }
0x26da   :  { %3784 = vmatpush3.bf16.msra.mxu1 %v4858_v7  ;;  %3789 = vmatprep.subr.bf16.mxu0 %v4128_v6 }
0x27a7   :  { %v2862_v0 = vpop.f32.mrb[68].mxu0 }
0x27a8   :  { %v2868_v10 = vadd.f32 %v2862_v0, %v4906_v56  ;;  %v2936_v43 = vpop.f32.mrb[76].mxu1  ;;  %v3763_v39 = vpop.f32.mrb[69].mxu0 }
0x27a9   :  { %v2942_v2 = vadd.f32 %v2936_v43, %v4904_v54  ;;  %v3771_v52 = vpop.f32.mrb[77].mxu1  ;;  %v2865_v46 = vpop.f32.mrb[70].mxu0 }
0x27aa   :  { %4091 = vtanh.f32 %v2868_v10  ;;  %v2939_v55 = vpop.f32.mrb[78].mxu1  ;;  %v3764_v28 = vpop.f32.mrb[71].mxu0  ;;  %v3317_v7 = vmul.f32 -1.442695, %v2868_v10 }
0x27ab   :  { %4093 = vtanh.f32 %v2942_v2  ;;  %v3772_v61 = vpop.f32.mrb[79].mxu1  ;;  %v3319_v1 = vmul.f32 -1.442695, %v2942_v2 }
0x27ac   :  { %4095 = vpow2.f32 %v3317_v7 }
0x27ad   :  { %4097 = vpow2.f32 %v3319_v1 }
0x27b4   :  { %v4092_v34 = vpop.eup %4091 }
0x27b5   :  { %v4094_v53 = vpop.eup %4093  ;;  %2878 = vrot.lane.b32.xlu1 %v4092_v34, %s4131_s6 }
0x27b6   :  { %2952 = vrot.lane.b32.xlu0 %v4094_v53, %s4131_s6  ;;  %v4096_v56 = vpop.eup %4095 }
0x27b7   :  { %v4098_v18 = vpop.eup %4097  ;;  %v2872_v54 = vadd.f32 1.0, %v4096_v56 }
0x27b8   :  { %v2946_v63 = vadd.f32 1.0, %v4098_v18 }
0x27b9   :  { %4099 = vrcp.f32 %v2872_v54 }
0x27ba   :  { %4101 = vrcp.f32 %v2946_v63  ;;  %v3863_v63 = vld [vmem:[%s5349_s16] sm:$0xff]  }
0x27c3   :  { %v4100_v15 = vpop.eup %4099 }
0x27c4   :  { %v4102_v33 = vpop.eup %4101  ;;  %v2876_v26 = vmul.f32 %v4100_v15, %v5257_v51 }
0x27c5   :  { %v2950_v20 = vmul.f32 %v4102_v33, %v5263_v41 }
0x2827   :  { %v2879_v23 = vpop.permute.xlu1 %2878 }
0x2828   :  { %v2953_v3 = vpop.permute.xlu0 %2952  ;;  %v2881_v21 = vmul.f32 %v4100_v15, %v2879_v23 }
0x2829   :  { %v2955_v5 = vmul.f32 %v4102_v33, %v2953_v3 }
0x282a   :  { %2883 = vrot.lane.b32.xlu1 %v2881_v21, %s4132_s24 }
0x282b   :  { %2957 = vrot.lane.b32.xlu0 %v2955_v5, %s4132_s24 }
0x289c   :  { %v2884_v25 = vpop.permute.xlu1 %2883 }
0x289d   :  { %v2958_v37 = vpop.permute.xlu0 %2957  ;;  %v2886_v48 = vadd.f32 %v2884_v25, %v2876_v26 }
0x289e   :  { %v2960_v30 = vadd.f32 %v2958_v37, %v2950_v20 }
0x289f   :  { %4103 = vtanh.f32 %v2886_v48  ;;  %v2894_v61 = vsel %vm95_vm6, %v2886_v48, %v5257_v51 }
0x28a0   :  { %4105 = vtanh.f32 %v2960_v30  ;;  %v2968_v34 = vsel %vm75_vm7, %v2960_v30, %v5263_v41 }
0x28a9   :  { %v4104_v22 = vpop.eup %4103 }
0x28aa   :  { %v4106_v58 = vpop.eup %4105  ;;  %2889 = vrot.lane.b32.xlu1 %v4104_v22, %s4131_s6 }
0x28ab   :  { %2963 = vrot.lane.b32.xlu0 %v4106_v58, %s4131_s6 }
0x291c   :  { %v2890_v8 = vpop.permute.xlu1 %2889 }
0x291d   :  { %v2964_v42 = vpop.permute.xlu0 %2963  ;;  %v2892_v14 = vmul.f32 %v4100_v15, %v2890_v8 }
0x291e   :  { %v2966_v31 = vmul.f32 %v4102_v33, %v2964_v42  ;;  %v3866_v33 = vld [vmem:[%s5349_s16 + $0x18] sm:$0xff]  }
0x291f   :  { %v5272_v45 = vsel %vm95_vm6, %v2892_v14, %v5221_v13 }
0x2920   :  { %v5277_v9 = vsel %vm75_vm7, %v2966_v31, %v5226_v62  ;;  %v2969_v19 = vpack.c.bf16 %v5272_v45, %v5272_v45 }
0x2921   :  { %v3042_v32 = vpack.c.bf16 %v5277_v9, %v5277_v9 }
0x2922   :  { %2971 = vrot.lane.b32.xlu1 %v2969_v19, %s4132_s24 }
0x2923   :  { %3044 = vrot.lane.b32.xlu0 %v3042_v32, %s4132_s24 }
0x2994   :  { %v2972_v38 = vpop.permute.xlu1 %2971 }
0x2995   :  { %v3045_v59 = vpop.permute.xlu0 %3044  ;;  %3778 = vmatmul.mubr.msk.bf16.vlgmr.msra.gmra.mrb[72].mxu0 %vm321_vm5, %v2972_v38 }
0x2996   :  { %3786 = vmatmul.mubr.msk.bf16.vlgmr.msra.gmra.mrb[80].mxu1 %vm321_vm5, %v3045_v59  ;;  %3797 = vmatprep.mubr.msk.bf16.mxu0 %vm4129_vm1, %v4128_v6 }
0x2997   :  { %3790 = vmatpush3.bf16.msra.mxu0 %v3863_v63 }
0x2998   :  { %3791 = vmatprep.subr.bf16.mxu0 %v4128_v6 }
0x299b   :  { %3792 = vmatpush3.bf16.msra.mxu0 %v3864_v44 }
0x299c   :  { %3793 = vmatprep.subr.bf16.mxu0 %v4128_v6 }
0x299f   :  { %3794 = vmatpush3.bf16.msra.mxu0 %v3865_v49 }
0x29a0   :  { %3795 = vmatprep.subr.bf16.mxu0 %v4128_v6 }
0x29a3   :  { %3796 = vmatpush3.bf16.msra.mxu0 %v3866_v33 }
0x2a68   :  { %v3010_v47 = vpop.f32.mrb[72].mxu0 }
0x2a69   :  { %v3016_v4 = vadd.f32 %v3010_v47, %v4914_v12  ;;  %v3083_v17 = vpop.f32.mrb[80].mxu1  ;;  %v3779_v57 = vpop.f32.mrb[73].mxu0 }
0x2a6a   :  { %v3089_v16 = vadd.f32 %v3083_v17, %v4896_v50  ;;  %v3787_v24 = vpop.f32.mrb[81].mxu1  ;;  %v3013_v27 = vpop.f32.mrb[74].mxu0 }
0x2a6b   :  { %4107 = vtanh.f32 %v3016_v4  ;;  %v3086_v13 = vpop.f32.mrb[82].mxu1  ;;  %v3780_v62 = vpop.f32.mrb[75].mxu0  ;;  %v3321_v11 = vmul.f32 -1.442695, %v3016_v4 }
0x2a6c   :  { %4109 = vtanh.f32 %v3089_v16  ;;  %v3788_v29 = vpop.f32.mrb[83].mxu1  ;;  %v3323_v0 = vmul.f32 -1.442695, %v3089_v16 }
0x2a6d   :  { %4111 = vpow2.f32 %v3321_v11 }
0x2a6e   :  { %4113 = vpow2.f32 %v3323_v0 }
0x2a75   :  { %v4108_v60 = vpop.eup %4107 }
0x2a76   :  { %v4110_v36 = vpop.eup %4109  ;;  %3026 = vrot.lane.b32.xlu1 %v4108_v60, %s4131_s6 }
0x2a77   :  { %3099 = vrot.lane.b32.xlu0 %v4110_v36, %s4131_s6  ;;  %v4112_v12 = vpop.eup %4111 }
0x2a78   :  { %v4114_v10 = vpop.eup %4113  ;;  %v3020_v50 = vadd.f32 1.0, %v4112_v12 }
0x2a79   :  { %v3093_v43 = vadd.f32 1.0, %v4114_v10 }
0x2a7a   :  { %4115 = vrcp.f32 %v3020_v50 }
0x2a7b   :  { %4117 = vrcp.f32 %v3093_v43 }
0x2a84   :  { %v4116_v39 = vpop.eup %4115 }
0x2a85   :  { %v4118_v52 = vpop.eup %4117  ;;  %v3024_v53 = vmul.f32 %v4116_v39, %v2894_v61 }
0x2a86   :  { %v3097_v7 = vmul.f32 %v4118_v52, %v2968_v34 }
0x2ae8   :  { %v3027_v2 = vpop.permute.xlu1 %3026 }
0x2ae9   :  { %v3100_v46 = vpop.permute.xlu0 %3099  ;;  %v3029_v55 = vmul.f32 %v4116_v39, %v3027_v2 }
0x2aea   :  { %v3102_v28 = vmul.f32 %v4118_v52, %v3100_v46 }
0x2aeb   :  { %3031 = vrot.lane.b32.xlu1 %v3029_v55, %s4132_s24 }
0x2aec   :  { %3104 = vrot.lane.b32.xlu0 %v3102_v28, %s4132_s24 }
0x2b5d   :  { %v3032_v1 = vpop.permute.xlu1 %3031 }
0x2b5e   :  { %v3105_v56 = vpop.permute.xlu0 %3104  ;;  %v3034_v18 = vadd.f32 %v3032_v1, %v3024_v53 }
0x2b5f   :  { %v3107_v54 = vadd.f32 %v3105_v56, %v3097_v7 }
0x2b60   :  { %4119 = vtanh.f32 %v3034_v18 }
0x2b61   :  { %4121 = vtanh.f32 %v3107_v54 }
0x2b6a   :  { %v4120_v15 = vpop.eup %4119 }
0x2b6b   :  { %v4122_v23 = vpop.eup %4121  ;;  %3037 = vrot.lane.b32.xlu1 %v4120_v15, %s4131_s6 }
0x2b6c   :  { %3110 = vrot.lane.b32.xlu0 %v4122_v23, %s4131_s6 }
0x2bdd   :  { %v3038_v3 = vpop.permute.xlu1 %3037 }
0x2bde   :  { %v3111_v21 = vpop.permute.xlu0 %3110  ;;  %v3040_v5 = vmul.f32 %v4116_v39, %v3038_v3 }
0x2bdf   :  { %v3113_v51 = vmul.f32 %v4118_v52, %v3111_v21 }
0x2be0   :  { %v3041_v41 = vsel %vm99_vm3, %v3040_v5, %v5272_v45 }
0x2be1   :  { %v3114_v26 = vsel %vm71_vm4, %v3113_v51, %v5277_v9  ;;  %3116 = vrot.lane.b32.xlu1 %v3041_v41, %s4132_s24 }
0x2be2   :  { %3120 = vrot.lane.b32.xlu0 %v3114_v26, %s4131_s6 }
0x2c53   :  { %v3117_v6 = vpop.permute.xlu1 %3116 }
0x2c54   :  { %v3121_v20 = vpop.permute.xlu0 %3120 }
0x2c55   :  { %v3123_v25 = vsel %vm321_vm5, %v3117_v6, %v3121_v20 }
0x2c56   :  { %v3124_v37 = vpack.c.bf16 %v3123_v25, %v3123_v25 }
0x2c58   :  { %3798 = vmatmul.mubr.msk.bf16.vlgmr.msra.gmra.mrb[76].mxu0 %vm3164_vm12, %v3124_v37 }
0x2d2b   :  { %v3202_v48 = vpop.f32.mrb[76].mxu0 }
0x2d2c   :  { %v3203_v30 = vadd.f32 %v3324_v35, %v3202_v48  ;;  %v3799_v40 = vpop.f32.mrb[77].mxu0 }
0x2d2d   :  { %v3205_v22 = vpop.f32.mrb[78].mxu0 }
0x2d2e   :  { %3209 = vst.msk [vmem:[%s5351_s18] sm:$0xff] %vm3208_vm13, %v3203_v30  ;;  %v3800_v58 = vpop.f32.mrb[79].mxu0 }

</bundles_post_ra>
